<compile_context>
chip_gen: v7x
topology: tpu7x:2x2x1
jax: 0.10.0
libtpu: 0.0.40
codegen_flags: <defaults>
</compile_context>

<pallas_src>
import functools

import jax
import jax.numpy as jnp
from jax import lax
from jax.experimental import pallas as pl
from jax.experimental.pallas import tpu as pltpu


# ---------------------------------------------------------------------------
# Fused kernel: 3x3 conv (pad=1, stride s) + folded-BN bias + optional
# residual add + optional ReLU.  One grid step = (one batch element,
# one Cout tile, one tile of TH output rows).
# ---------------------------------------------------------------------------
def _conv3x3_bn_kernel(x_ref, w_ref, b_ref, *rest,
                       stride, th, wo, apply_relu, has_residual):
    if has_residual:
        res_ref, out_ref = rest
    else:
        (out_ref,) = rest

    cin = x_ref.shape[-1]
    tco = w_ref.shape[-1]

    # First padded-input row needed by this tile of output rows.
    h_tile = pl.program_id(2)
    h0 = pl.multiple_of(h_tile * (th * stride), th * stride)

    # BN bias folded in as the accumulator init (scale already folded into w).
    acc = jnp.broadcast_to(b_ref[...].astype(jnp.float32), (th * wo, tco))

    # 9 taps of the 3x3 kernel -> 9 (TH*Wo, Cin) x (Cin, TCo) MXU matmuls.
    for kh in range(3):
        if stride == 1:
            rows = x_ref[0, pl.ds(h0 + kh, th), :, :]          # (th, Wp, cin)
            row_span = th
        else:
            row_span = stride * (th - 1) + 1
            rows = x_ref[0, pl.ds(h0 + kh, row_span), :, :]    # (span, Wp, cin)
        for kw in range(3):
            if stride == 1:
                patch = lax.slice(rows, (0, kw, 0), (th, kw + wo, cin))
            else:
                patch = lax.slice(
                    rows, (0, kw, 0),
                    (row_span, kw + stride * (wo - 1) + 1, cin),
                    (1, stride, 1))
            acc = acc + jnp.dot(patch.reshape(th * wo, cin),
                                w_ref[kh * 3 + kw],
                                preferred_element_type=jnp.float32)

    y = acc
    if has_residual:
        y = y + res_ref[0].reshape(th * wo, tco).astype(jnp.float32)
    if apply_relu:
        y = jnp.maximum(y, 0.0)
    out_ref[0] = y.reshape(th, wo, tco).astype(out_ref.dtype)


def _pick_tile(dim, target):
    """Largest divisor of `dim` that is <= target."""
    t = 1
    for d in range(1, min(dim, target) + 1):
        if dim % d == 0:
            t = d
    return t


def conv3x3_bn(x_pad, w_oihw, scale, bias, *, stride=1, relu=True,
               residual=None, out_dtype=jnp.float32):
    """Fused conv3x3(pad=1, stride) + folded BN (+ residual) (+ ReLU).

    x_pad: NHWC, already zero-padded by 1 on H and W (bf16 preferred).
    w_oihw: (Cout, Cin, 3, 3) f32.  scale/bias: folded BN per-channel terms.
    """
    x_pad = x_pad.astype(jnp.bfloat16)
    n, hp, wp, cin = x_pad.shape
    cout = w_oihw.shape[0]
    h, w_sp = hp - 2, wp - 2
    ho = (h - 1) // stride + 1
    wo = (w_sp - 1) // stride + 1

    # Tile output rows and output channels; lane (channel) dim stays last.
    th = _pick_tile(ho, 8)
    tco = _pick_tile(cout, 128)

    # Fold BN scale into the weights, repack OIHW -> (9, Cin, Cout), cast bf16.
    w_f = jnp.transpose(w_oihw * scale[:, None, None, None], (2, 3, 1, 0))
    w_taps = w_f.reshape(9, cin, cout).astype(jnp.bfloat16)
    bias2 = bias.reshape(1, cout).astype(jnp.float32)

    in_specs = [
        # Whole padded image per batch element; index depends on batch only,
        # so it is not re-DMA'd across the Cout / row-tile sweep.
        pl.BlockSpec((1, hp, wp, cin), lambda b, co, hh: (b, 0, 0, 0)),
        pl.BlockSpec((9, cin, tco), lambda b, co, hh: (0, 0, co)),
        pl.BlockSpec((1, tco), lambda b, co, hh: (0, co)),
    ]
    args = [x_pad, w_taps, bias2]

    has_residual = residual is not None
    if has_residual:
        in_specs.append(
            pl.BlockSpec((1, th, wo, tco), lambda b, co, hh: (b, hh, 0, co)))
        args.append(residual)  # native dtype; cast in-kernel

    kernel = functools.partial(
        _conv3x3_bn_kernel, stride=stride, th=th, wo=wo,
        apply_relu=relu, has_residual=has_residual)

    return pl.pallas_call(
        kernel,
        out_shape=jax.ShapeDtypeStruct((n, ho, wo, cout), out_dtype),
        grid=(n, cout // tco, ho // th),
        in_specs=in_specs,
        out_specs=pl.BlockSpec((1, th, wo, tco), lambda b, co, hh: (b, hh, 0, co)),
        compiler_params=pltpu.CompilerParams(
            dimension_semantics=("parallel", "parallel", "parallel"),
            vmem_limit_bytes=32 * 1024 * 1024),
    )(*args)


# ---------------------------------------------------------------------------
# Block: parameters + forward
# ---------------------------------------------------------------------------
def _fold_bn(gamma, beta, mean, var, eps=1e-5):
    scale = gamma / jnp.sqrt(var + eps)
    bias = beta - mean * scale
    return scale, bias


def init_block_params(key, in_channels, out_channels, size_matching=False):
    def conv_and_bn(k, cin, cout):
        kw, kg, kb, km, kv = jax.random.split(k, 5)
        w = 0.1 * jax.random.normal(kw, (cout, cin, 3, 3), jnp.float32)
        gamma = jax.random.uniform(kg, (cout,), jnp.float32, 0.5, 1.5)
        beta = 0.1 * jax.random.normal(kb, (cout,), jnp.float32)
        mean = 0.1 * jax.random.normal(km, (cout,), jnp.float32)
        var = jax.random.uniform(kv, (cout,), jnp.float32, 0.5, 1.5)
        s, b = _fold_bn(gamma, beta, mean, var)
        return w, s, b

    k1, k2, k3 = jax.random.split(key, 3)
    params = {}
    params["w1"], params["s1"], params["b1"] = conv_and_bn(k1, in_channels,
                                                           out_channels)
    # NB: the PyTorch module declares conv2 with `in_channels` inputs even
    # though it consumes conv1's output — it only works when in == out.
    params["w2"], params["s2"], params["b2"] = conv_and_bn(k2, in_channels,
                                                           out_channels)
    if size_matching:
        params["wsc"], params["ssc"], params["bsc"] = conv_and_bn(
            k3, in_channels, out_channels)
    return params


def block_forward(params, x_nchw, size_matching=False):
    # NCHW (PyTorch) -> NHWC; bf16 activations for the MXU (f32 accumulation).
    x_nhwc = jnp.transpose(x_nchw, (0, 2, 3, 1)).astype(jnp.bfloat16)
    x_pad = jnp.pad(x_nhwc, ((0, 0), (1, 1), (1, 1), (0, 0)))
    stride = 2 if size_matching else 1

    # conv1 -> BN -> ReLU   (bf16 intermediate: halves its HBM traffic)
    y = conv3x3_bn(x_pad, params["w1"], params["s1"], params["b1"],
                   stride=stride, relu=True, out_dtype=jnp.bfloat16)
    # shortcut branch (matches the module: BN + ReLU on the shortcut conv)
    if size_matching:
        res = conv3x3_bn(x_pad, params["wsc"], params["ssc"], params["bsc"],
                         stride=2, relu=True, out_dtype=jnp.bfloat16)
    else:
        res = x_nhwc

    # TODO(synk): fold this re-pad into conv1 (padded output) to save one
    # HBM round trip of the bf16 intermediate.
    y_pad = jnp.pad(y, ((0, 0), (1, 1), (1, 1), (0, 0)))

    # conv2 -> BN, + residual, ReLU  (fused in one kernel), f32 block output.
    out = conv3x3_bn(y_pad, params["w2"], params["s2"], params["b2"],
                     stride=1, relu=True, residual=res, out_dtype=jnp.float32)

    # back to NCHW
    return jnp.transpose(out, (0, 3, 1, 2))


# ---------------------------------------------------------------------------
# Pure-JAX reference with identical quantization points (for the check)
# ---------------------------------------------------------------------------
def _conv_ref(x, w, stride):
    return lax.conv_general_dilated(
        x, w, (stride, stride), ((1, 1), (1, 1)),
        dimension_numbers=("NCHW", "OIHW", "NCHW"),
        preferred_element_type=jnp.float32)


def block_ref(params, x, size_matching=False):
    def fold_w(w, s):
        return (w * s[:, None, None, None]).astype(jnp.bfloat16)

    def add_b(y, b):
        return y + b[None, :, None, None]

    stride = 2 if size_matching else 1
    xb = x.astype(jnp.bfloat16)
    y = jnp.maximum(
        add_b(_conv_ref(xb, fold_w(params["w1"], params["s1"]), stride),
              params["b1"]), 0.0)
    if size_matching:
        r = jnp.maximum(
            add_b(_conv_ref(xb, fold_w(params["wsc"], params["ssc"]), 2),
                  params["bsc"]), 0.0)
        r = r.astype(jnp.bfloat16).astype(jnp.float32)
    else:
        r = xb.astype(jnp.float32)
    yb = y.astype(jnp.bfloat16)
    out = add_b(_conv_ref(yb, fold_w(params["w2"], params["s2"]), 1),
                params["b2"])
    return jnp.maximum(out + r, 0.0)


if __name__ == "__main__":
    N, C, H, W = 2, 8, 16, 16  # in_channels == out_channels (required by module)
    key = jax.random.PRNGKey(0)
    kx, kp = jax.random.split(key)
    x = jax.random.normal(kx, (N, C, H, W), jnp.float32)

    params = init_block_params(kp, C, C, size_matching=False)

    fwd = jax.jit(functools.partial(block_forward, size_matching=False))
    out = jax.block_until_ready(fwd(params, x))
    ref = block_ref(params, x, size_matching=False)

    assert out.shape == (N, C, H, W), out.shape
    err = float(jnp.max(jnp.abs(out - ref)))
    assert err < 2e-3, err
    print("KERNEL_OK")
</pallas_src>

<mosaic_0001>
module attributes {stable_mosaic.version = 11 : i64} {
  func.func @_conv3x3_bn_kernel(%arg0: i32, %arg1: i32, %arg2: i32, %arg3: memref<1x18x18x8xbf16, #tpu.memory_space<vmem>>, %arg4: memref<9x8x8xbf16, #tpu.memory_space<vmem>>, %arg5: memref<1x8xf32, #tpu.memory_space<vmem>>, %arg6: memref<1x8x16x8xbf16, #tpu.memory_space<vmem>>, %arg7: memref<1x8x16x8xf32, #tpu.memory_space<vmem>>) attributes {dimension_semantics = [#tpu.dimension_semantics<parallel>, #tpu.dimension_semantics<parallel>, #tpu.dimension_semantics<parallel>], iteration_bounds = array<i64: 2, 1, 2>, scalar_prefetch = 0 : i64, scratch_operands = 0 : i64, tpu.core_type = #tpu.core_type<tc>, window_params = [{transform_indices = @transform_0, window_bounds = array<i64: 1, 18, 18, 8>}, {transform_indices = @transform_1, window_bounds = array<i64: 9, 8, 8>}, {transform_indices = @transform_2, window_bounds = array<i64: 1, 8>}, {transform_indices = @transform_3, window_bounds = array<i64: 1, 8, 16, 8>}, {transform_indices = @transform_4, window_bounds = array<i64: 1, 8, 16, 8>}]} {
    %c8_i32 = arith.constant 8 : i32
    %0 = arith.muli %arg2, %c8_i32 : i32
    %1 = tpu.assume_multiple %0, 8 : i32
    %c0 = arith.constant 0 : index
    %c0_0 = arith.constant 0 : index
    %2 = vector.load %arg5[%c0, %c0_0] : memref<1x8xf32, #tpu.memory_space<vmem>>, vector<1x8xf32>
    %3 = vector.shape_cast %2 : vector<1x8xf32> to vector<1x8xf32>
    %4 = vector.broadcast %3 : vector<1x8xf32> to vector<128x8xf32>
    %c0_i32 = arith.constant 0 : i32
    %5 = arith.addi %1, %c0_i32 : i32
    %c0_1 = arith.constant 0 : index
    %6 = arith.index_cast %5 : i32 to index
    %c0_2 = arith.constant 0 : index
    %c0_3 = arith.constant 0 : index
    %7 = vector.load %arg3[%c0_1, %6, %c0_2, %c0_3] : memref<1x18x18x8xbf16, #tpu.memory_space<vmem>>, vector<1x8x18x8xbf16>
    %8 = vector.shape_cast %7 : vector<1x8x18x8xbf16> to vector<8x18x8xbf16>
    %9 = vector.extract_strided_slice %8 {offsets = [0, 0, 0], sizes = [8, 16, 8], strides = [1, 1, 1]} : vector<8x18x8xbf16> to vector<8x16x8xbf16>
    %10 = vector.shape_cast %9 : vector<8x16x8xbf16> to vector<128x8xbf16>
    %c0_4 = arith.constant 0 : index
    %c0_5 = arith.constant 0 : index
    %c0_6 = arith.constant 0 : index
    %11 = vector.load %arg4[%c0_4, %c0_5, %c0_6] : memref<9x8x8xbf16, #tpu.memory_space<vmem>>, vector<1x8x8xbf16>
    %12 = vector.shape_cast %11 : vector<1x8x8xbf16> to vector<8x8xbf16>
    %cst = arith.constant dense<0.000000e+00> : vector<128x8xf32>
    %13 = tpu.matmul %10, %12, %cst {dimension_numbers = #tpu.dot_dimension_numbers<[1], [0], [0], [1], [0, 0, 1, 1], [], []>} : vector<128x8xbf16>, vector<8x8xbf16>, vector<128x8xf32> -> vector<128x8xf32>
    %14 = arith.addf %4, %13 : vector<128x8xf32>
    %15 = vector.extract_strided_slice %8 {offsets = [0, 1, 0], sizes = [8, 16, 8], strides = [1, 1, 1]} : vector<8x18x8xbf16> to vector<8x16x8xbf16>
    %16 = vector.shape_cast %15 : vector<8x16x8xbf16> to vector<128x8xbf16>
    %c1 = arith.constant 1 : index
    %c0_7 = arith.constant 0 : index
    %c0_8 = arith.constant 0 : index
    %17 = vector.load %arg4[%c1, %c0_7, %c0_8] : memref<9x8x8xbf16, #tpu.memory_space<vmem>>, vector<1x8x8xbf16>
    %18 = vector.shape_cast %17 : vector<1x8x8xbf16> to vector<8x8xbf16>
    %cst_9 = arith.constant dense<0.000000e+00> : vector<128x8xf32>
    %19 = tpu.matmul %16, %18, %cst_9 {dimension_numbers = #tpu.dot_dimension_numbers<[1], [0], [0], [1], [0, 0, 1, 1], [], []>} : vector<128x8xbf16>, vector<8x8xbf16>, vector<128x8xf32> -> vector<128x8xf32>
    %20 = arith.addf %14, %19 : vector<128x8xf32>
    %21 = vector.extract_strided_slice %8 {offsets = [0, 2, 0], sizes = [8, 16, 8], strides = [1, 1, 1]} : vector<8x18x8xbf16> to vector<8x16x8xbf16>
    %22 = vector.shape_cast %21 : vector<8x16x8xbf16> to vector<128x8xbf16>
    %c2 = arith.constant 2 : index
    %c0_10 = arith.constant 0 : index
    %c0_11 = arith.constant 0 : index
    %23 = vector.load %arg4[%c2, %c0_10, %c0_11] : memref<9x8x8xbf16, #tpu.memory_space<vmem>>, vector<1x8x8xbf16>
    %24 = vector.shape_cast %23 : vector<1x8x8xbf16> to vector<8x8xbf16>
    %cst_12 = arith.constant dense<0.000000e+00> : vector<128x8xf32>
    %25 = tpu.matmul %22, %24, %cst_12 {dimension_numbers = #tpu.dot_dimension_numbers<[1], [0], [0], [1], [0, 0, 1, 1], [], []>} : vector<128x8xbf16>, vector<8x8xbf16>, vector<128x8xf32> -> vector<128x8xf32>
    %26 = arith.addf %20, %25 : vector<128x8xf32>
    %c1_i32 = arith.constant 1 : i32
    %27 = arith.addi %1, %c1_i32 : i32
    %c0_13 = arith.constant 0 : index
    %28 = arith.index_cast %27 : i32 to index
    %c0_14 = arith.constant 0 : index
    %c0_15 = arith.constant 0 : index
    %29 = vector.load %arg3[%c0_13, %28, %c0_14, %c0_15] : memref<1x18x18x8xbf16, #tpu.memory_space<vmem>>, vector<1x8x18x8xbf16>
    %30 = vector.shape_cast %29 : vector<1x8x18x8xbf16> to vector<8x18x8xbf16>
    %31 = vector.extract_strided_slice %30 {offsets = [0, 0, 0], sizes = [8, 16, 8], strides = [1, 1, 1]} : vector<8x18x8xbf16> to vector<8x16x8xbf16>
    %32 = vector.shape_cast %31 : vector<8x16x8xbf16> to vector<128x8xbf16>
    %c3 = arith.constant 3 : index
    %c0_16 = arith.constant 0 : index
    %c0_17 = arith.constant 0 : index
    %33 = vector.load %arg4[%c3, %c0_16, %c0_17] : memref<9x8x8xbf16, #tpu.memory_space<vmem>>, vector<1x8x8xbf16>
    %34 = vector.shape_cast %33 : vector<1x8x8xbf16> to vector<8x8xbf16>
    %cst_18 = arith.constant dense<0.000000e+00> : vector<128x8xf32>
    %35 = tpu.matmul %32, %34, %cst_18 {dimension_numbers = #tpu.dot_dimension_numbers<[1], [0], [0], [1], [0, 0, 1, 1], [], []>} : vector<128x8xbf16>, vector<8x8xbf16>, vector<128x8xf32> -> vector<128x8xf32>
    %36 = arith.addf %26, %35 : vector<128x8xf32>
    %37 = vector.extract_strided_slice %30 {offsets = [0, 1, 0], sizes = [8, 16, 8], strides = [1, 1, 1]} : vector<8x18x8xbf16> to vector<8x16x8xbf16>
    %38 = vector.shape_cast %37 : vector<8x16x8xbf16> to vector<128x8xbf16>
    %c4 = arith.constant 4 : index
    %c0_19 = arith.constant 0 : index
    %c0_20 = arith.constant 0 : index
    %39 = vector.load %arg4[%c4, %c0_19, %c0_20] : memref<9x8x8xbf16, #tpu.memory_space<vmem>>, vector<1x8x8xbf16>
    %40 = vector.shape_cast %39 : vector<1x8x8xbf16> to vector<8x8xbf16>
    %cst_21 = arith.constant dense<0.000000e+00> : vector<128x8xf32>
    %41 = tpu.matmul %38, %40, %cst_21 {dimension_numbers = #tpu.dot_dimension_numbers<[1], [0], [0], [1], [0, 0, 1, 1], [], []>} : vector<128x8xbf16>, vector<8x8xbf16>, vector<128x8xf32> -> vector<128x8xf32>
    %42 = arith.addf %36, %41 : vector<128x8xf32>
    %43 = vector.extract_strided_slice %30 {offsets = [0, 2, 0], sizes = [8, 16, 8], strides = [1, 1, 1]} : vector<8x18x8xbf16> to vector<8x16x8xbf16>
    %44 = vector.shape_cast %43 : vector<8x16x8xbf16> to vector<128x8xbf16>
    %c5 = arith.constant 5 : index
    %c0_22 = arith.constant 0 : index
    %c0_23 = arith.constant 0 : index
    %45 = vector.load %arg4[%c5, %c0_22, %c0_23] : memref<9x8x8xbf16, #tpu.memory_space<vmem>>, vector<1x8x8xbf16>
    %46 = vector.shape_cast %45 : vector<1x8x8xbf16> to vector<8x8xbf16>
    %cst_24 = arith.constant dense<0.000000e+00> : vector<128x8xf32>
    %47 = tpu.matmul %44, %46, %cst_24 {dimension_numbers = #tpu.dot_dimension_numbers<[1], [0], [0], [1], [0, 0, 1, 1], [], []>} : vector<128x8xbf16>, vector<8x8xbf16>, vector<128x8xf32> -> vector<128x8xf32>
    %48 = arith.addf %42, %47 : vector<128x8xf32>
    %c2_i32 = arith.constant 2 : i32
    %49 = arith.addi %1, %c2_i32 : i32
    %c0_25 = arith.constant 0 : index
    %50 = arith.index_cast %49 : i32 to index
    %c0_26 = arith.constant 0 : index
    %c0_27 = arith.constant 0 : index
    %51 = vector.load %arg3[%c0_25, %50, %c0_26, %c0_27] : memref<1x18x18x8xbf16, #tpu.memory_space<vmem>>, vector<1x8x18x8xbf16>
    %52 = vector.shape_cast %51 : vector<1x8x18x8xbf16> to vector<8x18x8xbf16>
    %53 = vector.extract_strided_slice %52 {offsets = [0, 0, 0], sizes = [8, 16, 8], strides = [1, 1, 1]} : vector<8x18x8xbf16> to vector<8x16x8xbf16>
    %54 = vector.shape_cast %53 : vector<8x16x8xbf16> to vector<128x8xbf16>
    %c6 = arith.constant 6 : index
    %c0_28 = arith.constant 0 : index
    %c0_29 = arith.constant 0 : index
    %55 = vector.load %arg4[%c6, %c0_28, %c0_29] : memref<9x8x8xbf16, #tpu.memory_space<vmem>>, vector<1x8x8xbf16>
    %56 = vector.shape_cast %55 : vector<1x8x8xbf16> to vector<8x8xbf16>
    %cst_30 = arith.constant dense<0.000000e+00> : vector<128x8xf32>
    %57 = tpu.matmul %54, %56, %cst_30 {dimension_numbers = #tpu.dot_dimension_numbers<[1], [0], [0], [1], [0, 0, 1, 1], [], []>} : vector<128x8xbf16>, vector<8x8xbf16>, vector<128x8xf32> -> vector<128x8xf32>
    %58 = arith.addf %48, %57 : vector<128x8xf32>
    %59 = vector.extract_strided_slice %52 {offsets = [0, 1, 0], sizes = [8, 16, 8], strides = [1, 1, 1]} : vector<8x18x8xbf16> to vector<8x16x8xbf16>
    %60 = vector.shape_cast %59 : vector<8x16x8xbf16> to vector<128x8xbf16>
    %c7 = arith.constant 7 : index
    %c0_31 = arith.constant 0 : index
    %c0_32 = arith.constant 0 : index
    %61 = vector.load %arg4[%c7, %c0_31, %c0_32] : memref<9x8x8xbf16, #tpu.memory_space<vmem>>, vector<1x8x8xbf16>
    %62 = vector.shape_cast %61 : vector<1x8x8xbf16> to vector<8x8xbf16>
    %cst_33 = arith.constant dense<0.000000e+00> : vector<128x8xf32>
    %63 = tpu.matmul %60, %62, %cst_33 {dimension_numbers = #tpu.dot_dimension_numbers<[1], [0], [0], [1], [0, 0, 1, 1], [], []>} : vector<128x8xbf16>, vector<8x8xbf16>, vector<128x8xf32> -> vector<128x8xf32>
    %64 = arith.addf %58, %63 : vector<128x8xf32>
    %65 = vector.extract_strided_slice %52 {offsets = [0, 2, 0], sizes = [8, 16, 8], strides = [1, 1, 1]} : vector<8x18x8xbf16> to vector<8x16x8xbf16>
    %66 = vector.shape_cast %65 : vector<8x16x8xbf16> to vector<128x8xbf16>
    %c8 = arith.constant 8 : index
    %c0_34 = arith.constant 0 : index
    %c0_35 = arith.constant 0 : index
    %67 = vector.load %arg4[%c8, %c0_34, %c0_35] : memref<9x8x8xbf16, #tpu.memory_space<vmem>>, vector<1x8x8xbf16>
    %68 = vector.shape_cast %67 : vector<1x8x8xbf16> to vector<8x8xbf16>
    %cst_36 = arith.constant dense<0.000000e+00> : vector<128x8xf32>
    %69 = tpu.matmul %66, %68, %cst_36 {dimension_numbers = #tpu.dot_dimension_numbers<[1], [0], [0], [1], [0, 0, 1, 1], [], []>} : vector<128x8xbf16>, vector<8x8xbf16>, vector<128x8xf32> -> vector<128x8xf32>
    %70 = arith.addf %64, %69 : vector<128x8xf32>
    %c0_37 = arith.constant 0 : index
    %c0_38 = arith.constant 0 : index
    %c0_39 = arith.constant 0 : index
    %c0_40 = arith.constant 0 : index
    %71 = vector.load %arg6[%c0_37, %c0_38, %c0_39, %c0_40] : memref<1x8x16x8xbf16, #tpu.memory_space<vmem>>, vector<1x8x16x8xbf16>
    %72 = vector.shape_cast %71 : vector<1x8x16x8xbf16> to vector<8x16x8xbf16>
    %73 = vector.shape_cast %72 : vector<8x16x8xbf16> to vector<128x8xbf16>
    %74 = arith.extf %73 : vector<128x8xbf16> to vector<128x8xf32>
    %75 = arith.addf %70, %74 : vector<128x8xf32>
    %cst_41 = arith.constant 0.000000e+00 : f32
    %76 = vector.broadcast %cst_41 : f32 to vector<128x8xf32>
    %77 = arith.maximumf %75, %76 : vector<128x8xf32>
    %78 = vector.shape_cast %77 : vector<128x8xf32> to vector<8x16x8xf32>
    %c0_42 = arith.constant 0 : index
    %c0_43 = arith.constant 0 : index
    %c0_44 = arith.constant 0 : index
    %c0_45 = arith.constant 0 : index
    %79 = vector.load %arg7[%c0_42, %c0_43, %c0_44, %c0_45] : memref<1x8x16x8xf32, #tpu.memory_space<vmem>>, vector<1x8x16x8xf32>
    %80 = vector.shape_cast %79 : vector<1x8x16x8xf32> to vector<8x16x8xf32>
    %81 = vector.shape_cast %78 : vector<8x16x8xf32> to vector<1x8x16x8xf32>
    tpu.vector_store %arg7[%c0_42, %c0_43, %c0_44, %c0_45], %81 {strides = array<i32>} : memref<1x8x16x8xf32, #tpu.memory_space<vmem>>, vector<1x8x16x8xf32>,
    return
  }
  func.func @transform_0(%arg0: i32, %arg1: i32, %arg2: i32) -> (i32, i32, i32, i32) {
    %c0_i32 = arith.constant 0 : i32
    %c0_i32_0 = arith.constant 0 : i32
    %c0_i32_1 = arith.constant 0 : i32
    %c0_i32_2 = arith.constant 0 : i32
    return %arg0, %c0_i32, %c0_i32_0, %c0_i32_1 : i32, i32, i32, i32
  }
  func.func @transform_1(%arg0: i32, %arg1: i32, %arg2: i32) -> (i32, i32, i32) {
    %c0_i32 = arith.constant 0 : i32
    %c0_i32_0 = arith.constant 0 : i32
    %c0_i32_1 = arith.constant 0 : i32
    return %c0_i32, %c0_i32_0, %arg1 : i32, i32, i32
  }
  func.func @transform_2(%arg0: i32, %arg1: i32, %arg2: i32) -> (i32, i32) {
    %c0_i32 = arith.constant 0 : i32
    %c0_i32_0 = arith.constant 0 : i32
    return %c0_i32, %arg1 : i32, i32
  }
  func.func @transform_3(%arg0: i32, %arg1: i32, %arg2: i32) -> (i32, i32, i32, i32) {
    %c0_i32 = arith.constant 0 : i32
    %c0_i32_0 = arith.constant 0 : i32
    return %arg0, %arg2, %c0_i32, %arg1 : i32, i32, i32, i32
  }
  func.func @transform_4(%arg0: i32, %arg1: i32, %arg2: i32) -> (i32, i32, i32, i32) {
    %c0_i32 = arith.constant 0 : i32
    %c0_i32_0 = arith.constant 0 : i32
    return %arg0, %arg2, %c0_i32, %arg1 : i32, i32, i32, i32
  }
}

module attributes {stable_mosaic.version = 11 : i64} {
  func.func @_conv3x3_bn_kernel(%arg0: i32, %arg1: i32, %arg2: i32, %arg3: memref<1x18x18x8xbf16, #tpu.memory_space<vmem>>, %arg4: memref<9x8x8xbf16, #tpu.memory_space<vmem>>, %arg5: memref<1x8xf32, #tpu.memory_space<vmem>>, %arg6: memref<1x8x16x8xbf16, #tpu.memory_space<vmem>>) attributes {dimension_semantics = [#tpu.dimension_semantics<parallel>, #tpu.dimension_semantics<parallel>, #tpu.dimension_semantics<parallel>], iteration_bounds = array<i64: 2, 1, 2>, scalar_prefetch = 0 : i64, scratch_operands = 0 : i64, tpu.core_type = #tpu.core_type<tc>, window_params = [{transform_indices = @transform_0, window_bounds = array<i64: 1, 18, 18, 8>}, {transform_indices = @transform_1, window_bounds = array<i64: 9, 8, 8>}, {transform_indices = @transform_2, window_bounds = array<i64: 1, 8>}, {transform_indices = @transform_3, window_bounds = array<i64: 1, 8, 16, 8>}]} {
    %c8_i32 = arith.constant 8 : i32
    %0 = arith.muli %arg2, %c8_i32 : i32
    %1 = tpu.assume_multiple %0, 8 : i32
    %c0 = arith.constant 0 : index
    %c0_0 = arith.constant 0 : index
    %2 = vector.load %arg5[%c0, %c0_0] : memref<1x8xf32, #tpu.memory_space<vmem>>, vector<1x8xf32>
    %3 = vector.shape_cast %2 : vector<1x8xf32> to vector<1x8xf32>
    %4 = vector.broadcast %3 : vector<1x8xf32> to vector<128x8xf32>
    %c0_i32 = arith.constant 0 : i32
    %5 = arith.addi %1, %c0_i32 : i32
    %c0_1 = arith.constant 0 : index
    %6 = arith.index_cast %5 : i32 to index
    %c0_2 = arith.constant 0 : index
    %c0_3 = arith.constant 0 : index
    %7 = vector.load %arg3[%c0_1, %6, %c0_2, %c0_3] : memref<1x18x18x8xbf16, #tpu.memory_space<vmem>>, vector<1x8x18x8xbf16>
    %8 = vector.shape_cast %7 : vector<1x8x18x8xbf16> to vector<8x18x8xbf16>
    %9 = vector.extract_strided_slice %8 {offsets = [0, 0, 0], sizes = [8, 16, 8], strides = [1, 1, 1]} : vector<8x18x8xbf16> to vector<8x16x8xbf16>
    %10 = vector.shape_cast %9 : vector<8x16x8xbf16> to vector<128x8xbf16>
    %c0_4 = arith.constant 0 : index
    %c0_5 = arith.constant 0 : index
    %c0_6 = arith.constant 0 : index
    %11 = vector.load %arg4[%c0_4, %c0_5, %c0_6] : memref<9x8x8xbf16, #tpu.memory_space<vmem>>, vector<1x8x8xbf16>
    %12 = vector.shape_cast %11 : vector<1x8x8xbf16> to vector<8x8xbf16>
    %cst = arith.constant dense<0.000000e+00> : vector<128x8xf32>
    %13 = tpu.matmul %10, %12, %cst {dimension_numbers = #tpu.dot_dimension_numbers<[1], [0], [0], [1], [0, 0, 1, 1], [], []>} : vector<128x8xbf16>, vector<8x8xbf16>, vector<128x8xf32> -> vector<128x8xf32>
    %14 = arith.addf %4, %13 : vector<128x8xf32>
    %15 = vector.extract_strided_slice %8 {offsets = [0, 1, 0], sizes = [8, 16, 8], strides = [1, 1, 1]} : vector<8x18x8xbf16> to vector<8x16x8xbf16>
    %16 = vector.shape_cast %15 : vector<8x16x8xbf16> to vector<128x8xbf16>
    %c1 = arith.constant 1 : index
    %c0_7 = arith.constant 0 : index
    %c0_8 = arith.constant 0 : index
    %17 = vector.load %arg4[%c1, %c0_7, %c0_8] : memref<9x8x8xbf16, #tpu.memory_space<vmem>>, vector<1x8x8xbf16>
    %18 = vector.shape_cast %17 : vector<1x8x8xbf16> to vector<8x8xbf16>
    %cst_9 = arith.constant dense<0.000000e+00> : vector<128x8xf32>
    %19 = tpu.matmul %16, %18, %cst_9 {dimension_numbers = #tpu.dot_dimension_numbers<[1], [0], [0], [1], [0, 0, 1, 1], [], []>} : vector<128x8xbf16>, vector<8x8xbf16>, vector<128x8xf32> -> vector<128x8xf32>
    %20 = arith.addf %14, %19 : vector<128x8xf32>
    %21 = vector.extract_strided_slice %8 {offsets = [0, 2, 0], sizes = [8, 16, 8], strides = [1, 1, 1]} : vector<8x18x8xbf16> to vector<8x16x8xbf16>
    %22 = vector.shape_cast %21 : vector<8x16x8xbf16> to vector<128x8xbf16>
    %c2 = arith.constant 2 : index
    %c0_10 = arith.constant 0 : index
    %c0_11 = arith.constant 0 : index
    %23 = vector.load %arg4[%c2, %c0_10, %c0_11] : memref<9x8x8xbf16, #tpu.memory_space<vmem>>, vector<1x8x8xbf16>
    %24 = vector.shape_cast %23 : vector<1x8x8xbf16> to vector<8x8xbf16>
    %cst_12 = arith.constant dense<0.000000e+00> : vector<128x8xf32>
    %25 = tpu.matmul %22, %24, %cst_12 {dimension_numbers = #tpu.dot_dimension_numbers<[1], [0], [0], [1], [0, 0, 1, 1], [], []>} : vector<128x8xbf16>, vector<8x8xbf16>, vector<128x8xf32> -> vector<128x8xf32>
    %26 = arith.addf %20, %25 : vector<128x8xf32>
    %c1_i32 = arith.constant 1 : i32
    %27 = arith.addi %1, %c1_i32 : i32
    %c0_13 = arith.constant 0 : index
    %28 = arith.index_cast %27 : i32 to index
    %c0_14 = arith.constant 0 : index
    %c0_15 = arith.constant 0 : index
    %29 = vector.load %arg3[%c0_13, %28, %c0_14, %c0_15] : memref<1x18x18x8xbf16, #tpu.memory_space<vmem>>, vector<1x8x18x8xbf16>
    %30 = vector.shape_cast %29 : vector<1x8x18x8xbf16> to vector<8x18x8xbf16>
    %31 = vector.extract_strided_slice %30 {offsets = [0, 0, 0], sizes = [8, 16, 8], strides = [1, 1, 1]} : vector<8x18x8xbf16> to vector<8x16x8xbf16>
    %32 = vector.shape_cast %31 : vector<8x16x8xbf16> to vector<128x8xbf16>
    %c3 = arith.constant 3 : index
    %c0_16 = arith.constant 0 : index
    %c0_17 = arith.constant 0 : index
    %33 = vector.load %arg4[%c3, %c0_16, %c0_17] : memref<9x8x8xbf16, #tpu.memory_space<vmem>>, vector<1x8x8xbf16>
    %34 = vector.shape_cast %33 : vector<1x8x8xbf16> to vector<8x8xbf16>
    %cst_18 = arith.constant dense<0.000000e+00> : vector<128x8xf32>
    %35 = tpu.matmul %32, %34, %cst_18 {dimension_numbers = #tpu.dot_dimension_numbers<[1], [0], [0], [1], [0, 0, 1, 1], [], []>} : vector<128x8xbf16>, vector<8x8xbf16>, vector<128x8xf32> -> vector<128x8xf32>
    %36 = arith.addf %26, %35 : vector<128x8xf32>
    %37 = vector.extract_strided_slice %30 {offsets = [0, 1, 0], sizes = [8, 16, 8], strides = [1, 1, 1]} : vector<8x18x8xbf16> to vector<8x16x8xbf16>
    %38 = vector.shape_cast %37 : vector<8x16x8xbf16> to vector<128x8xbf16>
    %c4 = arith.constant 4 : index
    %c0_19 = arith.constant 0 : index
    %c0_20 = arith.constant 0 : index
    %39 = vector.load %arg4[%c4, %c0_19, %c0_20] : memref<9x8x8xbf16, #tpu.memory_space<vmem>>, vector<1x8x8xbf16>
    %40 = vector.shape_cast %39 : vector<1x8x8xbf16> to vector<8x8xbf16>
    %cst_21 = arith.constant dense<0.000000e+00> : vector<128x8xf32>
    %41 = tpu.matmul %38, %40, %cst_21 {dimension_numbers = #tpu.dot_dimension_numbers<[1], [0], [0], [1], [0, 0, 1, 1], [], []>} : vector<128x8xbf16>, vector<8x8xbf16>, vector<128x8xf32> -> vector<128x8xf32>
    %42 = arith.addf %36, %41 : vector<128x8xf32>
    %43 = vector.extract_strided_slice %30 {offsets = [0, 2, 0], sizes = [8, 16, 8], strides = [1, 1, 1]} : vector<8x18x8xbf16> to vector<8x16x8xbf16>
    %44 = vector.shape_cast %43 : vector<8x16x8xbf16> to vector<128x8xbf16>
    %c5 = arith.constant 5 : index
    %c0_22 = arith.constant 0 : index
    %c0_23 = arith.constant 0 : index
    %45 = vector.load %arg4[%c5, %c0_22, %c0_23] : memref<9x8x8xbf16, #tpu.memory_space<vmem>>, vector<1x8x8xbf16>
    %46 = vector.shape_cast %45 : vector<1x8x8xbf16> to vector<8x8xbf16>
    %cst_24 = arith.constant dense<0.000000e+00> : vector<128x8xf32>
    %47 = tpu.matmul %44, %46, %cst_24 {dimension_numbers = #tpu.dot_dimension_numbers<[1], [0], [0], [1], [0, 0, 1, 1], [], []>} : vector<128x8xbf16>, vector<8x8xbf16>, vector<128x8xf32> -> vector<128x8xf32>
    %48 = arith.addf %42, %47 : vector<128x8xf32>
    %c2_i32 = arith.constant 2 : i32
    %49 = arith.addi %1, %c2_i32 : i32
    %c0_25 = arith.constant 0 : index
    %50 = arith.index_cast %49 : i32 to index
    %c0_26 = arith.constant 0 : index
    %c0_27 = arith.constant 0 : index
    %51 = vector.load %arg3[%c0_25, %50, %c0_26, %c0_27] : memref<1x18x18x8xbf16, #tpu.memory_space<vmem>>, vector<1x8x18x8xbf16>
    %52 = vector.shape_cast %51 : vector<1x8x18x8xbf16> to vector<8x18x8xbf16>
    %53 = vector.extract_strided_slice %52 {offsets = [0, 0, 0], sizes = [8, 16, 8], strides = [1, 1, 1]} : vector<8x18x8xbf16> to vector<8x16x8xbf16>
    %54 = vector.shape_cast %53 : vector<8x16x8xbf16> to vector<128x8xbf16>
    %c6 = arith.constant 6 : index
    %c0_28 = arith.constant 0 : index
    %c0_29 = arith.constant 0 : index
    %55 = vector.load %arg4[%c6, %c0_28, %c0_29] : memref<9x8x8xbf16, #tpu.memory_space<vmem>>, vector<1x8x8xbf16>
    %56 = vector.shape_cast %55 : vector<1x8x8xbf16> to vector<8x8xbf16>
    %cst_30 = arith.constant dense<0.000000e+00> : vector<128x8xf32>
    %57 = tpu.matmul %54, %56, %cst_30 {dimension_numbers = #tpu.dot_dimension_numbers<[1], [0], [0], [1], [0, 0, 1, 1], [], []>} : vector<128x8xbf16>, vector<8x8xbf16>, vector<128x8xf32> -> vector<128x8xf32>
    %58 = arith.addf %48, %57 : vector<128x8xf32>
    %59 = vector.extract_strided_slice %52 {offsets = [0, 1, 0], sizes = [8, 16, 8], strides = [1, 1, 1]} : vector<8x18x8xbf16> to vector<8x16x8xbf16>
    %60 = vector.shape_cast %59 : vector<8x16x8xbf16> to vector<128x8xbf16>
    %c7 = arith.constant 7 : index
    %c0_31 = arith.constant 0 : index
    %c0_32 = arith.constant 0 : index
    %61 = vector.load %arg4[%c7, %c0_31, %c0_32] : memref<9x8x8xbf16, #tpu.memory_space<vmem>>, vector<1x8x8xbf16>
    %62 = vector.shape_cast %61 : vector<1x8x8xbf16> to vector<8x8xbf16>
    %cst_33 = arith.constant dense<0.000000e+00> : vector<128x8xf32>
    %63 = tpu.matmul %60, %62, %cst_33 {dimension_numbers = #tpu.dot_dimension_numbers<[1], [0], [0], [1], [0, 0, 1, 1], [], []>} : vector<128x8xbf16>, vector<8x8xbf16>, vector<128x8xf32> -> vector<128x8xf32>
    %64 = arith.addf %58, %63 : vector<128x8xf32>
    %65 = vector.extract_strided_slice %52 {offsets = [0, 2, 0], sizes = [8, 16, 8], strides = [1, 1, 1]} : vector<8x18x8xbf16> to vector<8x16x8xbf16>
    %66 = vector.shape_cast %65 : vector<8x16x8xbf16> to vector<128x8xbf16>
    %c8 = arith.constant 8 : index
    %c0_34 = arith.constant 0 : index
    %c0_35 = arith.constant 0 : index
    %67 = vector.load %arg4[%c8, %c0_34, %c0_35] : memref<9x8x8xbf16, #tpu.memory_space<vmem>>, vector<1x8x8xbf16>
    %68 = vector.shape_cast %67 : vector<1x8x8xbf16> to vector<8x8xbf16>
    %cst_36 = arith.constant dense<0.000000e+00> : vector<128x8xf32>
    %69 = tpu.matmul %66, %68, %cst_36 {dimension_numbers = #tpu.dot_dimension_numbers<[1], [0], [0], [1], [0, 0, 1, 1], [], []>} : vector<128x8xbf16>, vector<8x8xbf16>, vector<128x8xf32> -> vector<128x8xf32>
    %70 = arith.addf %64, %69 : vector<128x8xf32>
    %cst_37 = arith.constant 0.000000e+00 : f32
    %71 = vector.broadcast %cst_37 : f32 to vector<128x8xf32>
    %72 = arith.maximumf %70, %71 : vector<128x8xf32>
    %73 = vector.shape_cast %72 : vector<128x8xf32> to vector<8x16x8xf32>
    %74 = arith.truncf %73 : vector<8x16x8xf32> to vector<8x16x8xbf16>
    %c0_38 = arith.constant 0 : index
    %c0_39 = arith.constant 0 : index
    %c0_40 = arith.constant 0 : index
    %c0_41 = arith.constant 0 : index
    %75 = vector.load %arg6[%c0_38, %c0_39, %c0_40, %c0_41] : memref<1x8x16x8xbf16, #tpu.memory_space<vmem>>, vector<1x8x16x8xbf16>
    %76 = vector.shape_cast %75 : vector<1x8x16x8xbf16> to vector<8x16x8xbf16>
    %77 = vector.shape_cast %74 : vector<8x16x8xbf16> to vector<1x8x16x8xbf16>
    tpu.vector_store %arg6[%c0_38, %c0_39, %c0_40, %c0_41], %77 {strides = array<i32>} : memref<1x8x16x8xbf16, #tpu.memory_space<vmem>>, vector<1x8x16x8xbf16>,
    return
  }
  func.func @transform_0(%arg0: i32, %arg1: i32, %arg2: i32) -> (i32, i32, i32, i32) {
    %c0_i32 = arith.constant 0 : i32
    %c0_i32_0 = arith.constant 0 : i32
    %c0_i32_1 = arith.constant 0 : i32
    %c0_i32_2 = arith.constant 0 : i32
    return %arg0, %c0_i32, %c0_i32_0, %c0_i32_1 : i32, i32, i32, i32
  }
  func.func @transform_1(%arg0: i32, %arg1: i32, %arg2: i32) -> (i32, i32, i32) {
    %c0_i32 = arith.constant 0 : i32
    %c0_i32_0 = arith.constant 0 : i32
    %c0_i32_1 = arith.constant 0 : i32
    return %c0_i32, %c0_i32_0, %arg1 : i32, i32, i32
  }
  func.func @transform_2(%arg0: i32, %arg1: i32, %arg2: i32) -> (i32, i32) {
    %c0_i32 = arith.constant 0 : i32
    %c0_i32_0 = arith.constant 0 : i32
    return %c0_i32, %arg1 : i32, i32
  }
  func.func @transform_3(%arg0: i32, %arg1: i32, %arg2: i32) -> (i32, i32, i32, i32) {
    %c0_i32 = arith.constant 0 : i32
    %c0_i32_0 = arith.constant 0 : i32
    return %arg0, %arg2, %c0_i32, %arg1 : i32, i32, i32, i32
  }
}

</mosaic_0001>

<bundles_post_ra>
// kernel: block_forward.3
= control target key start
LH: loop header
LB: loop body
LE: loop exit
PB: predicated region body
PF: predicated region fallthrough
CT: control target
= control target key end

     0   :  { %s3792_s15 = smov 0   ;;  %s3794_s16 = smov 0   ;;  %s4918_s0 = inlined_call_operand.vmem [shape: bf16[2,18,18,8], index: 0, kind: input, shape index: {}]   ;;  %s4919_s1 = inlined_call_operand.vmem [shape: bf16[9,8,8], index: 1, kind: input, shape index: {}]   ;;  %s4920_s2 = inlined_call_operand.vmem [shape: f32[1,8], index: 2, kind: input, shape index: {}]   ;;  %s4921_s3 = inlined_call_operand.vmem [shape: bf16[2,16,16,8], index: 3, kind: input, shape index: {}]   ;;  %s4922_s4 = inlined_call_operand.vmem [shape: f32[2,16,16,8], index: 4, kind: output, shape index: {}]  }
   0x1   :  { %s3796_s17 = smov 0   ;;  %s3798_s18 = smov 0  }
   0x2   :  { %s3800_s19 = smov 0  }
   0x3 LB: > { %s26_s20 = sadd.s32 1, %s3757_s17  ;;  %s33_s21 = sadd.s32 1, %s3761_s18  ;;  %s3765_s19 = sphi %s3800_s19, %s14_s19   ;;  %s3761_s18 = sphi %s3798_s18, %s5021_s18   ;;  %s3757_s17 = sphi %s3796_s17, %s5020_s17   ;;  %s3753_s16 = sphi %s3794_s16, %s5019_s16   ;;  %s3749_s15 = sphi %s3792_s15, %s5018_s15  }
   0x4   : > { %p27_p0 = scmp.ge.s32.totalorder %s26_s20, 2  ;;  %p2978_p1 = scmp.ge.s32.totalorder %s3765_s19, 1 }
   0x5   : > { %p225_p2 = scmp.lt.s32.totalorder %s3765_s19, 5 }
   0x6   : > { %s5023_s20 = smov (%p27_p0, %s26_s20), 0  ;;  %s5025_s21 = smov (!%p27_p0, %s33_s21), %s3761_s18 }
   0x7   : > { %p226_p3 = pnand %p2978_p1, %p225_p2  ;;  %p35_p4 = scmp.ge.s32.totalorder %s5025_s21, 2 }
   0x9   : > { %s5027_s21 = smov (%p35_p4, %s5025_s21), 0  ;;  %229 = sbr.rel (%p226_p3) target bundleno = 407 (0x197), region = 36 }
  0x10   : > { %v355_v0 = vld [vmem:[%s4919_s1] sm:$0xf]  ;;  %vm421_vm0 = vcmask 1043456   ;;  %p279_p5 = scmp.lt.s32.totalorder %s3753_s16, 1  ;;  %v3832_v2 = vld [vmem:[%s4919_s1 + $0x10] sm:$0xf] }
  0x11   : > { %3651 = vmatprep.subr.msk.bf16.mxu1 %vm421_vm0, %v355_v0  ;;  %v423_v1 = vsel %vm421_vm0, %v355_v0, 0  ;;  %4943 = vst [vmem:[#allocation2_spill] sm:$0xff] %v3832_v2  ;;  %v3008_v3 = vld [vmem:[%s4919_s1 + $0x4] sm:$0xf]  ;;  %3655 = vmatprep.subr.msk.bf16.mxu0 %vm421_vm0, %v3832_v2  ;;  %v3843_v4 = vsel %vm421_vm0, %v3832_v2, 0  ;;  %s3222_s28 = smul.u32 96, %s3749_s15 }
  0x12   : > { %3344 = vmatpush3.bf16.msra.mxu1 %v423_v1  ;;  %s5029_s16 = smov (!%p279_p5, %s3753_s16), 1  ;;  %4944 = vst [vmem:[#allocation3_spill] sm:$0xff] %v3843_v4  ;;  %3416 = vmatpush3.bf16.msra.mxu0 %v3843_v4  ;;  %v3118_v5 = vld [vmem:[%s4919_s1 + $0x14] sm:$0xf]  ;;  %v3854_v6 = vld [vmem:[%s4919_s1 + $0x18] sm:$0xf] }
  0x13   : > { %3652 = vmatprep.subr.msk.bf16.mxu1 %vm421_vm0, %v3008_v3  ;;  %s3661_s7 = smul.u32 216, %s5029_s16  ;;  %3657 = vmatprep.subr.msk.bf16.mxu0 %vm421_vm0, %v3118_v5  ;;  %v3033_v7 = vld [vmem:[%s4919_s1 + $0x8] sm:$0xf]  ;;  %v3864_v8 = vld [vmem:[%s4919_s1 + $0x1c] sm:$0xf]  ;;  %vm396_vm1 = vcmask 64512  }
  0x14   : > { %v784_v9 = vsel %vm421_vm0, %v3008_v3, 0  ;;  %v3871_v10 = vsel %vm421_vm0, %v3118_v5, 0  ;;  %v3875_v11 = vsel %vm421_vm0, %v3854_v6, 0  ;;  %v3880_v12 = vsel %vm421_vm0, %v3033_v7, 0  ;;  %v3889_v14 = vld [vmem:[%s4919_s1 + $0xc] sm:$0xf] }
  0x15   : > { %s283_s14 = scalar_lea.vmem %s4918_s0, %s3661_s7  ;;  %v3884_v13 = vsel %vm421_vm0, %v3864_v8, 0  ;;  %v3894_v15 = vld [vmem:[%s4919_s1 + $0x20] sm:$0xf]  ;;  %v3919_v27 = vsel %vm421_vm0, %v3889_v14, 0  ;;  %vm538_vm2 = vsmask.f32 3328 }
  0x16   : > { %s3877_s22 = scalar_lea.vmem %s283_s14, %s3222_s28  ;;  %4945 = vst [vmem:[#allocation4_spill] sm:$0xff] %v3919_v27  ;;  %v3936_v37 = vsel %vm421_vm0, %v3894_v15, 0  ;;  %vm539_vm3 = vsmask.f32 7440  ;;  %vm907_vm5 = vcmask 1042432   ;;  %vm908_vm6 = vcmask 1046532  }
  0x17   : > { %v3897_v16 = vld [vmem:[%s3877_s22] sm:$0xf]  ;;  %v3900_v17 = vld [vmem:[%s3877_s22 + $0x4] sm:$0xf]  ;;  %v3903_v18 = vld [vmem:[%s3877_s22 + $0xc] sm:$0xf] }
  0x18   : > { %v2992_v19 = vcombine.low %v3897_v16, %v3900_v17  ;;  %v542_v20 = vshrl.u32 %v3897_v16, 16  ;;  %v545_v21 = vshll.u32 %v3897_v16, 16  ;;  %v551_v22 = vshll.u32 %v3900_v17, 16  ;;  %v3911_v23 = vld [vmem:[%s3877_s22 + $0x10] sm:$0xf]  ;;  %4946 = vst [vmem:[#allocation5_spill] sm:$0xff] %v3936_v37  ;;  %vm4017_vm4 = vmor %vm538_vm2, %vm539_vm3 }
  0x19   : > { %v555_v24 = vshrl.u32 %v3900_v17, 16  ;;  %v4924_v25 = vrot.slane %v3900_v17, 5  ;;  %v2993_v26 = vcombine.low %v3903_v18, %v3911_v23  ;;  %v566_v31 = vshrl.u32 %v3903_v18, 16  ;;  %v3926_v32 = vld [vmem:[%s3877_s22 + $0x18] sm:$0xf]  ;;  %vm4113_vm7 = vmor %vm907_vm5, %vm908_vm6  ;;  %s2980_s27 = sshll.u32 %s3749_s15, 3 }
  0x1a   : > { %3345 = vmatprep.mubr.msk.bf16.mxu1 %vm396_vm1, %v2992_v19  ;;  %v544_v28 = vrot.slane %v542_v20, 4  ;;  %v547_v29 = vrot.slane %v545_v21, 5  ;;  %v3922_v30 = vrot.slane %v551_v22, 5  ;;  %v569_v34 = vshll.u32 %v3903_v18, 16  ;;  %v3932_v36 = vld [vmem:[%s3877_s22 + $0x1c] sm:$0xf] }
  0x1b   : > { %v557_v33 = vrot.slane %v555_v24, 4  ;;  %3346 = vmatmul.mubr.msk.bf16.vlgmr.msra.gmra.mrb[0].mxu1 %vm396_vm1, %v2993_v26  ;;  %v575_v35 = vshll.u32 %v3911_v23, 16  ;;  %v568_v40 = vrot.slane %v566_v31, 4  ;;  %v579_v41 = vshrl.u32 %v3911_v23, 16  ;;  %v3941_v42 = vld [vmem:[%s3877_s22 + $0x24] sm:$0xf] }
  0x1c   : > { %v548_v38 = vor.u32 %v547_v29, %v544_v28  ;;  %3362 = vmatpush3.bf16.msra.mxu1 %v784_v9  ;;  %v571_v44 = vrot.slane %v569_v34, 5  ;;  %v4923_v46 = vrot.slane %v3911_v23, 5  ;;  %v3948_v47 = vld [vmem:[%s3877_s22 + $0x28] sm:$0xf]  ;;  %v3953_v48 = vrot.slane %v4924_v25, 4  ;;  %p294_p6 = scmp.lt.s32.totalorder %s2980_s27, 15 }
  0x1d   : > { %v558_v43 = vor.u32 %v557_v33, %v3922_v30  ;;  %v3944_v45 = vrot.slane %v575_v35, 5  ;;  %3653 = vmatprep.subr.msk.bf16.mxu1 %vm421_vm0, %v3033_v7  ;;  %v581_v49 = vrot.slane %v579_v41, 4  ;;  %v2994_v51 = vcombine.low %v3926_v32, %v3932_v36  ;;  %v3959_v52 = vld [vmem:[%s3877_s22 + $0xc] sm:$0xf]  ;;  %v3967_v57 = vld [vmem:[%s3877_s22 + $0x10] sm:$0xf] }
  0x1e   : > { %v3961_v53 = vrot.slane %v548_v38, 4  ;;  %v572_v55 = vor.u32 %v571_v44, %v568_v40  ;;  %v3972_v59 = vrot.slane %v4923_v46, 4  ;;  %v2995_v61 = vcombine.low %v3941_v42, %v3948_v47  ;;  %v3979_v62 = vld [vmem:[%s3877_s22 + $0x14] sm:$0x1]  ;;  %v3982_v63 = vld [vmem:[%s3877_s22 + $0x18] sm:$0xf] }
  0x1f   : > { %v3963_v54 = vrot.slane %v558_v43, 4  ;;  %v582_v58 = vor.u32 %v581_v49, %v3944_v45  ;;  %3349 = vmatprep.mubr.msk.bf16.mxu1 %vm396_vm1, %v2994_v51  ;;  %v1343_v5 = vshrl.u32 %v3959_v52, 16  ;;  %v1346_v9 = vshll.u32 %v3959_v52, 16  ;;  %v3994_v21 = vld [vmem:[%s3877_s22 + $0x1c] sm:$0xf]  ;;  %s5031_s27 = smov (!%p294_p6, %s2980_s27), 15 }
  0x20   : > { %v3984_v0 = vrot.slane %v572_v55, 4  ;;  %v1352_v19 = vshll.u32 %v3967_v57, 16  ;;  %v1356_v20 = vshrl.u32 %v3967_v57, 16  ;;  %v1362_v26 = vshll.u32 %v3979_v62, 16  ;;  %v4000_v28 = vld [vmem:[%s3877_s22 + $0x20] sm:$0x1] }
  0x21   : > { %v1345_v24 = vrot.slane %v1343_v5, 4  ;;  %v1367_v29 = vshrl.u32 %v3982_v63, 16  ;;  %v1348_v31 = vrot.slane %v1346_v9, 5  ;;  %v1370_v35 = vshll.u32 %v3982_v63, 16  ;;  %v4011_v5 = vld [vmem:[%s3877_s22 + $0x34] sm:$0xf] }
  0x22   : > { %v1354_v33 = vrot.slane %v1352_v19, 5  ;;  %v1358_v34 = vrot.slane %v1356_v20, 4  ;;  %v1364_v38 = vrot.slane %v1362_v26, 5  ;;  %v1376_v41 = vshll.u32 %v3994_v21, 16  ;;  %v4026_v50 = vld [vmem:[%s3877_s22 + $0x40] sm:$0xf] }
  0x23   : > { %3350 = vmatmul.mubr.msk.bf16.gmra.mrb[4].mxu1 %vm396_vm1, %v2995_v61  ;;  %v1369_v40 = vrot.slane %v1367_v29, 4  ;;  %v1380_v43 = vshrl.u32 %v3994_v21, 16  ;;  %v1349_v44 = vor.u32 %v1348_v31, %v1345_v24  ;;  %v1372_v51 = vrot.slane %v1370_v35, 5  ;;  %v4008_v61 = vld [vmem:[%s3877_s22 + $0x30] sm:$0xf]  ;;  %s2981_s28 = sshll.u32 %s5031_s27, 1 }
  0x24   : > { %v1359_v49 = vor.u32 %v1358_v34, %v1354_v33  ;;  %v1386_v55 = vshll.u32 %v4000_v28, 16  ;;  %v4013_v9 = vrot.slane %v582_v58, 4  ;;  %v1378_v24 = vrot.slane %v1376_v41, 5  ;;  %v4023_v35 = vld [vmem:[%s3877_s22 + $0x3c] sm:$0xf]  ;;  %s2982_s29 = sshll.u32 %s5029_s16, 5 }
  0x25   : > { %v1382_v26 = vrot.slane %v1380_v43, 4  ;;  %v1350_v29 = vrot.slane %v1349_v44, 4  ;;  %v1373_v34 = vor.u32 %v1372_v51, %v1369_v40  ;;  %v2996_v25 = vcombine.low %v4008_v61, %v4011_v5  ;;  %v4032_v22 = vld [vmem:[%s3877_s22 + $0x24] sm:$0xf]  ;;  %v4073_v1 = vld [vmem:[%s3877_s22 + $0x48] sm:$0xf]  ;;  %s301_s30 = sadd.s32 %s2982_s29, %s2981_s28 }
  0x26   : > { %v1360_v31 = vrot.slane %v1359_v49, 4  ;;  %v1388_v46 = vrot.slane %v1386_v55, 5  ;;  %v4040_v49 = vld [vmem:[%s3877_s22 + $0x28] sm:$0xf]  ;;  %v2997_v7 = vcombine.low %v4023_v35, %v4026_v50  ;;  %v4077_v56 = vld [vmem:[%s3877_s22 + $0x4c] sm:$0xf] }
  0x27   : > { %v1383_v58 = vor.u32 %v1382_v26, %v1378_v24  ;;  %v1355_v41 = vsel %vm4017_vm4, %v1350_v29, %v1354_v33  ;;  %v1374_v43 = vrot.slane %v1373_v34, 4  ;;  %3353 = vmatprep.mubr.msk.bf16.mxu1 %vm396_vm1, %v2996_v25  ;;  %v4047_v33 = vld [vmem:[%s3877_s22 + $0x2c] sm:$0x1]  ;;  %v4050_v29 = vld [vmem:[%s3877_s22 + $0x30] sm:$0xf]  ;;  %v1391_v34 = vshrl.u32 %v4032_v22, 16 }
  0x28   : > { %v1365_v40 = vsel %vm4017_vm4, %v1360_v31, %v1364_v38  ;;  %v4068_v31 = vld [vmem:[%s3877_s22 + $0x38] sm:$0x1]  ;;  %v1410_v3 = vshll.u32 %v4047_v33, 16  ;;  %v1418_v60 = vshll.u32 %v4050_v29, 16  ;;  %v662_v37 = vshrl.u32 %v4023_v35, 16  ;;  %s2983_s5 = sshll.u32 %s301_s30, 2 }
  0x29   : > { %v3094_v51 = vcombine.low %v1355_v41, %v1365_v40  ;;  %v1384_v55 = vrot.slane %v1383_v58, 4  ;;  %v1379_v38 = vsel %vm4017_vm4, %v1374_v43, %v1378_v24  ;;  %v4058_v58 = vld [vmem:[%s3877_s22 + $0x34] sm:$0xf]  ;;  %v1394_v40 = vshll.u32 %v4032_v22, 16  ;;  %v4088_v4 = vld [vmem:[%s3877_s22 + $0x58] sm:$0xf]  ;;  %s4835_s8 = scalar_lea.vmem %s4921_s3, %s2983_s5 }
  0x2a   : > { %v1400_v24 = vshll.u32 %v4040_v49, 16  ;;  %v1404_v43 = vshrl.u32 %v4040_v49, 16  ;;  %v1393_v26 = vrot.slane %v1391_v34, 4  ;;  %v1412_v20 = vrot.slane %v1410_v3, 5  ;;  %s2987_s16 = sshll.u32 %s301_s30, 3 }
  0x2b   : > { %3417 = vmatprep.mubr.msk.bf16.mxu0 %vm396_vm1, %v3094_v51  ;;  %v1389_v41 = vsel %vm4017_vm4, %v1384_v55, %v1388_v46  ;;  %3354 = vmatmul.mubr.msk.bf16.gmra.mrb[8].mxu1 %vm396_vm1, %v2997_v7  ;;  %v1415_v51 = vshrl.u32 %v4050_v29, 16  ;;  %v1396_v46 = vrot.slane %v1394_v40, 5  ;;  %v1424_v34 = vshll.u32 %v4058_v58, 16  ;;  %s4851_s12 = scalar_lea.vmem %s4922_s4, %s2987_s16 }
  0x2c   : > { %v3095_v25 = vcombine.low %v1379_v38, %v1389_v41  ;;  %v1402_v7 = vrot.slane %v1400_v24, 5  ;;  %v1406_v55 = vrot.slane %v1404_v43, 4  ;;  %v1428_v41 = vshrl.u32 %v4058_v58, 16  ;;  %v4085_v43 = vld [vmem:[%s3877_s22 + $0x54] sm:$0xf] }
  0x2d   : > { %v1417_v38 = vrot.slane %v1415_v51, 4  ;;  %v1397_v44 = vor.u32 %v1396_v46, %v1393_v26  ;;  %v1420_v40 = vrot.slane %v1418_v60, 5  ;;  %v1434_v24 = vshll.u32 %v4068_v31, 16 }
  0x2e   : > { %3418 = vmatmul.mubr.msk.bf16.vlgmr.msra.gmra.mrb[0].mxu0 %vm396_vm1, %v3095_v25  ;;  %v1407_v39 = vor.u32 %v1406_v55, %v1402_v7  ;;  %v1426_v25 = vrot.slane %v1424_v34, 5  ;;  %v1430_v3 = vrot.slane %v1428_v41, 4  ;;  %v2998_v51 = vcombine.low %v4073_v1, %v4077_v56 }
  0x2f   : > { %3434 = vmatpush3.bf16.msra.mxu0 %v3871_v10  ;;  %v1398_v60 = vrot.slane %v1397_v44, 4  ;;  %v1421_v46 = vor.u32 %v1420_v40, %v1417_v38  ;;  %v675_v55 = vshrl.u32 %v4026_v50, 16  ;;  %v1436_v27 = vrot.slane %v1434_v24, 5  ;;  %v4106_v44 = vld [vmem:[%s3877_s22 + $0x8] sm:$0x1] }
  0x30   : > { %3658 = vmatprep.subr.msk.bf16.mxu0 %vm421_vm0, %v3854_v6  ;;  %v1408_v26 = vrot.slane %v1407_v39, 4  ;;  %v1431_v2 = vor.u32 %v1430_v3, %v1426_v25  ;;  %3357 = vmatprep.mubr.msk.bf16.mxu1 %vm396_vm1, %v2998_v51  ;;  %v2999_v34 = vcombine.low %v4085_v43, %v4088_v4  ;;  %v3110_v51 = vrot.slane %v3959_v52, 9 }
  0x31   : > { %v1403_v41 = vsel %vm4017_vm4, %v1398_v60, %v1402_v7  ;;  %v1422_v10 = vrot.slane %v1421_v46, 4  ;;  %v1710_v60 = vrot.slane %v3967_v57, 5 }
  0x32   : > { %v1413_v6 = vsel %vm4017_vm4, %v1408_v26, %v1412_v20  ;;  %v1432_v40 = vrot.slane %v1431_v2, 4  ;;  %v3111_v2 = vrot.slane %v3982_v63, 9  ;;  %v4123_v26 = vld [vmem:[%s3877_s22 + $0x14] sm:$0x1] }
  0x33   : > { %v3096_v38 = vcombine.low %v1403_v41, %v1413_v6  ;;  %3358 = vmatmul.mubr.msk.bf16.gmra.mrb[12].mxu1 %vm396_vm1, %v2999_v34  ;;  %v1427_v20 = vsel %vm4017_vm4, %v1422_v10, %v1426_v25  ;;  %v4951_v34 = vrot.slane %v3994_v21, 5  ;;  %v554_v25 = vsel %vm4017_vm4, %v3961_v53, %v3922_v30 }
  0x34   : > { %v1437_v46 = vsel %vm4017_vm4, %v1432_v40, %v1436_v27  ;;  %v561_v10 = vshll.u32 %v4106_v44, 16  ;;  %v1711_v63 = vsel %vm4113_vm7, %v3110_v51, %v1710_v60  ;;  %v1712_v3 = vrot.slane %v1710_v60, 4 }
  0x35   : > { %3421 = vmatprep.mubr.msk.bf16.mxu0 %vm396_vm1, %v3096_v38  ;;  %v1719_v41 = vrot.slane %v4951_v34, 4  ;;  %v3097_v6 = vcombine.low %v1427_v20, %v1437_v46  ;;  %v4952_v38 = vmov %v4951_v34  ;;  %v4953_v40 = vrot.slane %v4000_v28, 5 }
  0x36   : > { %v1718_v27 = vsel %vm4113_vm7, %v3111_v2, %v4952_v38  ;;  %v563_v24 = vrot.slane %v561_v10, 5  ;;  %v578_v30 = vsel %vm4017_vm4, %v3984_v0, %v3944_v45  ;;  %v585_v53 = vshll.u32 %v4123_v26, 16 }
  0x37   : > { %v1721_v34 = vsel %vm4113_vm7, %v1719_v41, %v4953_v40  ;;  %3422 = vmatmul.mubr.msk.bf16.gmra.mrb[4].mxu0 %vm396_vm1, %v3097_v6  ;;  %v4954_v20 = vrot.slane %v3979_v62, 5  ;;  %v3112_v60 = vrot.slane %v4032_v22, 9  ;;  %v1724_v2 = vrot.slane %v4040_v49, 5 }
  0x38   : > { %v3120_v28 = vcombine.low %v1718_v27, %v1721_v34  ;;  %v564_v45 = vsel %vm4017_vm4, %v3963_v54, %v563_v24  ;;  %v587_v0 = vrot.slane %v585_v53, 5  ;;  %v1727_v41 = vrot.slane %v4047_v33, 5  ;;  %v4171_v33 = vld [vmem:[%s3877_s22 + $0x20] sm:$0x1] }
  0x39   : > { %v1714_v51 = vsel %vm4113_vm7, %v1712_v3, %v4954_v20  ;;  %v3009_v10 = vcombine.low %v554_v25, %v564_v45  ;;  %v1725_v62 = vsel %vm4113_vm7, %v3112_v60, %v1724_v2  ;;  %v1726_v6 = vrot.slane %v1724_v2, 4 }
  0x3a   : > { %v3119_v46 = vcombine.low %v1711_v63, %v1714_v51  ;;  %v3113_v3 = vrot.slane %v4050_v29, 9  ;;  %v588_v63 = vsel %vm4017_vm4, %v4013_v9, %v587_v0  ;;  %v1731_v54 = vrot.slane %v4058_v58, 5 }
  0x3b   : > { %v1734_v24 = vrot.slane %v4068_v31, 5  ;;  %v4955_v25 = vshrl.u32 %v3926_v32, 16  ;;  %3363 = vmatprep.mubr.msk.bf16.mxu1 %vm396_vm1, %v3009_v10  ;;  %v3010_v27 = vcombine.low %v578_v30, %v588_v63  ;;  %v1728_v40 = vsel %vm4113_vm7, %v1726_v6, %v1727_v41  ;;  %v4189_v30 = vld [vmem:[%s3877_s22 + $0x3c] sm:$0xf]  ;;  %v4196_v6 = vld [vmem:[%s3877_s22 + $0x40] sm:$0xf] }
  0x3c   : > { %3435 = vmatprep.mubr.msk.bf16.mxu0 %vm396_vm1, %v3119_v46  ;;  %v4956_v34 = vshll.u32 %v3926_v32, 16  ;;  %v599_v9 = vshll.u32 %v3932_v36, 16  ;;  %v3121_v20 = vcombine.low %v1725_v62, %v1728_v40  ;;  %v1732_v31 = vsel %vm4113_vm7, %v3113_v3, %v1731_v54  ;;  %v4186_v46 = vld [vmem:[%s3877_s22 + $0x2c] sm:$0x1]  ;;  %4958 = vst [vmem:[#allocation6_spill] sm:$0xff] %v4189_v30 }
  0x3d   : > { %v592_v38 = vrot.slane %v4955_v25, 4  ;;  %v1733_v51 = vrot.slane %v1731_v54, 4  ;;  %v4957_v60 = vshrl.u32 %v3932_v36, 16  ;;  %3364 = vmatmul.mubr.msk.bf16.vlgmr.msra.gmra.mrb[0].mxu1 %vm396_vm1, %v3010_v27  ;;  %v609_v41 = vshll.u32 %v4171_v33, 16  ;;  %v4207_v40 = vld [vmem:[%s3877_s22 + $0x44] sm:$0x1] }
  0x3e   : > { %v595_v53 = vrot.slane %v4956_v34, 5  ;;  %v601_v0 = vrot.slane %v599_v9, 5  ;;  %v4959_v10 = vshrl.u32 %v3941_v42, 16  ;;  %3380 = vmatpush3.bf16.msra.mxu1 %v3880_v12  ;;  %v4960_v63 = vshll.u32 %v3941_v42, 16  ;;  %4962 = vst [vmem:[#allocation7_spill] sm:$0xff] %v4207_v40 }
  0x3f   : > { %v605_v2 = vrot.slane %v4957_v60, 4  ;;  %v1735_v3 = vsel %vm4113_vm7, %v1733_v51, %v1734_v24  ;;  %v623_v25 = vshll.u32 %v3948_v47, 16  ;;  %3436 = vmatmul.mubr.msk.bf16.vlgmr.msra.gmra.mrb[0].mxu0 %vm396_vm1, %v3120_v28  ;;  %v611_v60 = vrot.slane %v609_v41, 5  ;;  %3654 = vmatprep.subr.msk.bf16.mxu1 %vm421_vm0, %v3889_v14  ;;  %v4221_v14 = vld [vmem:[%s3877_s22 + $0x48] sm:$0xf] }
  0x40   : > { %v596_v45 = vor.u32 %v595_v53, %v592_v38  ;;  %v616_v62 = vrot.slane %v4959_v10, 4  ;;  %v619_v54 = vrot.slane %v4960_v63, 5  ;;  %v4961_v38 = vshrl.u32 %v3948_v47, 16  ;;  %3452 = vmatpush3.bf16.msra.mxu0 %v3875_v11  ;;  %3439 = vmatprep.mubr.msk.bf16.mxu0 %vm396_vm1, %v3121_v20  ;;  %4963 = vst [vmem:[#allocation8_spill] sm:$0xff] %v4221_v14 }
  0x41   : > { %v3122_v34 = vcombine.low %v1732_v31, %v1735_v3  ;;  %v606_v9 = vor.u32 %v605_v2, %v601_v0  ;;  %v625_v24 = vrot.slane %v623_v25, 5  ;;  %v633_v51 = vshll.u32 %v4186_v46, 16  ;;  %3659 = vmatprep.subr.msk.bf16.mxu0 %vm421_vm0, %v3864_v8 }
  0x42   : > { %v629_v27 = vrot.slane %v4961_v38, 4  ;;  %v597_v53 = vrot.slane %v596_v45, 4  ;;  %v620_v12 = vor.u32 %v619_v54, %v616_v62  ;;  %v3114_v10 = vrot.slane %v4189_v30, 9 }
  0x43   : > { %v607_v31 = vrot.slane %v606_v9, 4  ;;  %v1738_v2 = vrot.slane %v4196_v6, 5  ;;  %v1741_v45 = vrot.slane %v4207_v40, 5  ;;  %v635_v41 = vrot.slane %v633_v51, 5  ;;  %v4242_v51 = vld [vmem:[%s3877_s22 + $0x50] sm:$0x1] }
  0x44   : > { %v602_v28 = vsel %vm4017_vm4, %v597_v53, %v601_v0  ;;  %v621_v11 = vrot.slane %v620_v12, 4  ;;  %v630_v20 = vor.u32 %v629_v27, %v625_v24  ;;  %v1463_v62 = vshrl.u32 %v4221_v14, 16  ;;  %v4235_v27 = vld [vmem:[%s3877_s22 + $0x4c] sm:$0xf] }
  0x45   : > { %v612_v0 = vsel %vm4017_vm4, %v607_v31, %v611_v60  ;;  %v1739_v3 = vsel %vm4113_vm7, %v3114_v10, %v1738_v2  ;;  %v1740_v63 = vrot.slane %v1738_v2, 4  ;;  %v1466_v54 = vshll.u32 %v4221_v14, 16 }
  0x46   : > { %v3011_v38 = vcombine.low %v602_v28, %v612_v0  ;;  %v626_v8 = vsel %vm4017_vm4, %v621_v11, %v625_v24  ;;  %v631_v53 = vrot.slane %v630_v20, 4  ;;  %v4244_v10 = vrot.slane %v1463_v62, 4  ;;  %v4257_v0 = vld [vmem:[%s3877_s22 + $0x38] sm:$0x1]  ;;  %v4276_v20 = vld [vmem:[%s3877_s22 + $0x54] sm:$0xf] }
  0x47   : > { %v1742_v12 = vsel %vm4113_vm7, %v1740_v63, %v1741_v45  ;;  %v4249_v31 = vrot.slane %v1466_v54, 5  ;;  %v3115_v2 = vrot.slane %v4221_v14, 9  ;;  %3440 = vmatmul.mubr.msk.bf16.gmra.mrb[4].mxu0 %vm396_vm1, %v3122_v34  ;;  %v1745_v62 = vrot.slane %v4235_v27, 5  ;;  %4969 = vst [vmem:[#allocation11_spill] sm:$0xff] %v4276_v20 }
  0x48   : > { %4964 = vst [vmem:[#allocation9_spill] sm:$0xff] %v4244_v10  ;;  %3367 = vmatprep.mubr.msk.bf16.mxu1 %vm396_vm1, %v3011_v38  ;;  %v636_v24 = vsel %vm4017_vm4, %v631_v53, %v635_v41  ;;  %v3123_v28 = vcombine.low %v1739_v3, %v1742_v12  ;;  %v1748_v3 = vrot.slane %v4242_v51, 5  ;;  %v4966_v63 = vshrl.u32 %v4008_v61, 16 }
  0x49   : > { %4965 = vst [vmem:[#allocation10_spill] sm:$0xff] %v4249_v31  ;;  %v3012_v11 = vcombine.low %v626_v8, %v636_v24  ;;  %v4967_v54 = vshll.u32 %v4008_v61, 16  ;;  %v4267_v8 = vld [vmem:[%s3877_s22 + $0x44] sm:$0x1]  ;;  %v1746_v53 = vsel %vm4113_vm7, %v3115_v2, %v1745_v62  ;;  %v1747_v12 = vrot.slane %v1745_v62, 4 }
  0x4a   : > { %3443 = vmatprep.mubr.msk.bf16.mxu0 %vm396_vm1, %v3123_v28  ;;  %v640_v34 = vrot.slane %v4966_v63, 4  ;;  %v647_v24 = vshll.u32 %v4011_v5, 16  ;;  %v4968_v28 = vshrl.u32 %v4011_v5, 16  ;;  %v664_v45 = vrot.slane %v662_v37, 4  ;;  %v4284_v2 = vld [vmem:[%s3877_s22 + $0x58] sm:$0xf] }
  0x4b   : > { %v643_v38 = vrot.slane %v4967_v54, 5  ;;  %3368 = vmatmul.mubr.msk.bf16.gmra.mrb[4].mxu1 %vm396_vm1, %v3012_v11  ;;  %v657_v54 = vshll.u32 %v4257_v0, 16  ;;  %v4970_v11 = vshll.u32 %v4023_v35, 16  ;;  %4971 = vst [vmem:[#allocation12_spill] sm:$0xff] %v4284_v2  ;;  %v1749_v62 = vsel %vm4113_vm7, %v1747_v12, %v1748_v3  ;;  %v4300_v12 = vld [vmem:[%s3877_s22 + $0x64] sm:$0xf] }
  0x4c   : > { %v653_v41 = vrot.slane %v4968_v28, 4  ;;  %v649_v9 = vrot.slane %v647_v24, 5  ;;  %v671_v28 = vshll.u32 %v4026_v50, 16  ;;  %v3124_v25 = vcombine.low %v1746_v53, %v1749_v62  ;;  %4974 = vst [vmem:[#allocation15_spill] sm:$0xff] %v4300_v12 }
  0x4d   : > { %v644_v63 = vor.u32 %v643_v38, %v640_v34  ;;  %v667_v60 = vrot.slane %v4970_v11, 5  ;;  %v677_v34 = vrot.slane %v675_v55, 4  ;;  %v4292_v38 = vld [vmem:[%s3877_s22 + $0x5c] sm:$0x1]  ;;  %v659_v39 = vrot.slane %v657_v54, 5 }
  0x4e   : > { %4972 = vst [vmem:[#allocation13_spill] sm:$0xff] %v4292_v38  ;;  %v4295_v11 = vld [vmem:[%s3877_s22 + $0x60] sm:$0xf]  ;;  %v654_v10 = vor.u32 %v653_v41, %v649_v9  ;;  %v673_v40 = vrot.slane %v671_v28, 5  ;;  %v681_v14 = vshll.u32 %v4267_v8, 16  ;;  %v3116_v3 = vrot.slane %v4276_v20, 9 }
  0x4f   : > { %v645_v37 = vrot.slane %v644_v63, 4  ;;  %v668_v31 = vor.u32 %v667_v60, %v664_v45  ;;  %4973 = vst [vmem:[#allocation14_spill] sm:$0xff] %v4295_v11  ;;  %v1752_v53 = vrot.slane %v4284_v2, 5  ;;  %v1755_v63 = vrot.slane %v4292_v38, 5  ;;  %v4307_v60 = vld [vmem:[%s3877_s22 + $0x68] sm:$0x1]  ;;  %3444 = vmatmul.mubr.msk.bf16.gmra.mrb[8].mxu0 %vm396_vm1, %v3124_v25 }
  0x50   : > { %4975 = vst [vmem:[#allocation16_spill] sm:$0xff] %v4307_v60  ;;  %v655_v45 = vrot.slane %v654_v10, 4  ;;  %v678_v41 = vor.u32 %v677_v34, %v673_v40  ;;  %v683_v54 = vrot.slane %v681_v14, 5  ;;  %v3117_v62 = vrot.slane %v4295_v11, 9  ;;  %v4320_v10 = vld [vmem:[%s3877_s22 + $0x50] sm:$0x1] }
  0x51   : > { %v650_v55 = vsel %vm4017_vm4, %v645_v37, %v649_v9  ;;  %v669_v24 = vrot.slane %v668_v31, 4  ;;  %v1753_v9 = vsel %vm4113_vm7, %v3116_v3, %v1752_v53  ;;  %v1754_v31 = vrot.slane %v1752_v53, 4 }
  0x52   : > { %v1759_v37 = vrot.slane %v4300_v12, 5  ;;  %v660_v38 = vsel %vm4017_vm4, %v655_v45, %v659_v39  ;;  %v679_v20 = vrot.slane %v678_v41, 4  ;;  %v1762_v25 = vrot.slane %v4307_v60, 5  ;;  %v4334_v12 = vld [vmem:[%s3877_s22 + $0x5c] sm:$0x1] }
  0x53   : > { %v674_v28 = vsel %vm4017_vm4, %v669_v24, %v673_v40  ;;  %v4976_v14 = vshrl.u32 %v4073_v1, 16  ;;  %v3013_v40 = vcombine.low %v650_v55, %v660_v38  ;;  %v1756_v3 = vsel %vm4113_vm7, %v1754_v31, %v1755_v63 }
  0x54   : > { %v1760_v24 = vsel %vm4113_vm7, %v3117_v62, %v1759_v37  ;;  %v1761_v53 = vrot.slane %v1759_v37, 4  ;;  %v684_v39 = vsel %vm4017_vm4, %v679_v20, %v683_v54  ;;  %v3125_v45 = vcombine.low %v1753_v9, %v1756_v3  ;;  %v4343_v20 = vld [vmem:[%s3877_s22 + $0x18] sm:$0xf]  ;;  %v4346_v54 = vld [vmem:[%s3877_s22 + $0x1c] sm:$0xf] }
  0x55   : > { %v688_v34 = vrot.slane %v4976_v14, 4  ;;  %v4977_v41 = vshll.u32 %v4073_v1, 16  ;;  %v695_v11 = vshll.u32 %v4077_v56, 16  ;;  %3371 = vmatprep.mubr.msk.bf16.mxu1 %vm396_vm1, %v3013_v40  ;;  %v3014_v38 = vcombine.low %v674_v28, %v684_v39 }
  0x56   : > { %v1763_v55 = vsel %vm4113_vm7, %v1761_v53, %v1762_v25  ;;  %v4978_v63 = vshrl.u32 %v4077_v56, 16  ;;  %v705_v31 = vshll.u32 %v4320_v10, 16  ;;  %3447 = vmatprep.mubr.msk.bf16.mxu0 %vm396_vm1, %v3125_v45  ;;  %v4979_v28 = vshrl.u32 %v4085_v43, 16  ;;  %v4362_v45 = vld [vmem:[%s3877_s22 + $0x24] sm:$0xf] }
  0x57   : > { %v691_v60 = vrot.slane %v4977_v41, 5  ;;  %v3126_v9 = vcombine.low %v1760_v24, %v1763_v55  ;;  %v697_v14 = vrot.slane %v695_v11, 5  ;;  %3372 = vmatmul.mubr.msk.bf16.gmra.mrb[8].mxu1 %vm396_vm1, %v3014_v38  ;;  %v4980_v3 = vshll.u32 %v4085_v43, 16 }
  0x58   : > { %v701_v62 = vrot.slane %v4978_v63, 4  ;;  %v712_v40 = vrot.slane %v4979_v28, 4  ;;  %v707_v25 = vrot.slane %v705_v31, 5  ;;  %v719_v39 = vshll.u32 %v4088_v4, 16 }
  0x59   : > { %v692_v37 = vor.u32 %v691_v60, %v688_v34  ;;  %v715_v53 = vrot.slane %v4980_v3, 5  ;;  %v4981_v41 = vshrl.u32 %v4088_v4, 16  ;;  %3448 = vmatmul.mubr.msk.bf16.gmra.mrb[12].mxu0 %vm396_vm1, %v3126_v9  ;;  %v729_v34 = vshll.u32 %v4334_v12, 16 }
  0x5a   : > { %v702_v11 = vor.u32 %v701_v62, %v697_v14  ;;  %v3162_v24 = vcombine.low %v4343_v20, %v4346_v54  ;;  %v4982_v38 = vshll.u32 %v4235_v27, 16  ;;  %v4984_v31 = vshrl.u32 %v4235_v27, 16 }
  0x5b   : > { %v725_v63 = vrot.slane %v4981_v41, 4  ;;  %v693_v60 = vrot.slane %v692_v37, 4  ;;  %v716_v9 = vor.u32 %v715_v53, %v712_v40  ;;  %v721_v3 = vrot.slane %v719_v39, 5  ;;  %v4373_v37 = vld [vmem:[%s3877_s22 + $0x28] sm:$0xf] }
  0x5c   : > { %v4366_v55 = vrot.slane %v4982_v38, 5  ;;  %v4370_v28 = vrot.slane %v4984_v31, 4  ;;  %v4986_v62 = vshll.u32 %v4242_v51, 16  ;;  %v703_v30 = vrot.slane %v702_v11, 4  ;;  %3453 = vmatprep.mubr.msk.bf16.mxu0 %vm396_vm1, %v3162_v24  ;;  %v4388_v51 = vld [vmem:[%s3877_s22 + $0x34] sm:$0xf] }
  0x5d   : > { %v698_v2 = vsel %vm4017_vm4, %v693_v60, %v697_v14  ;;  %v2141_v38 = vshrl.u32 %v4343_v20, 16  ;;  %v717_v31 = vrot.slane %v716_v9, 4  ;;  %v731_v40 = vrot.slane %v729_v34, 5 }
  0x5e   : > { %4983 = vst [vmem:[#allocation17_spill] sm:$0xff] %v4366_v55  ;;  %4985 = vst [vmem:[#allocation18_spill] sm:$0xff] %v4370_v28  ;;  %v4377_v41 = vrot.slane %v4986_v62, 5  ;;  %v4384_v55 = vld [vmem:[%s3877_s22 + $0x30] sm:$0xf]  ;;  %v726_v28 = vor.u32 %v725_v63, %v721_v3  ;;  %v708_v39 = vsel %vm4017_vm4, %v703_v30, %v707_v25  ;;  %v3163_v60 = vcombine.low %v4362_v45, %v4373_v37 }
  0x5f   : > { %v4987_v11 = vrot.slane %v3900_v17, 5  ;;  %v4988_v24 = vrot.slane %v3897_v16, 9  ;;  %v3015_v34 = vcombine.low %v698_v2, %v708_v39  ;;  %v722_v9 = vsel %vm4017_vm4, %v717_v31, %v721_v3  ;;  %v4417_v39 = vld [vmem:[%s3877_s22 + $0x3c] sm:$0xf] }
  0x60   : > { %v727_v62 = vrot.slane %v726_v28, 4  ;;  %v915_v53 = vrot.slane %v4106_v44, 5  ;;  %v2165_v30 = vshrl.u32 %v4362_v45, 16  ;;  %v4989_v25 = vrot.slane %v3911_v23, 5  ;;  %v4420_v28 = vld [vmem:[%s3877_s22 + $0x40] sm:$0xf] }
  0x61   : > { %v913_v63 = vsel %vm4113_vm7, %v4988_v24, %v4987_v11  ;;  %v4990_v14 = vrot.slane %v3903_v18, 9  ;;  %v922_v16 = vrot.slane %v4123_v26, 5  ;;  %v3164_v2 = vcombine.low %v4384_v55, %v4388_v51  ;;  %3375 = vmatprep.mubr.msk.bf16.mxu1 %vm396_vm1, %v3015_v34  ;;  %3454 = vmatmul.mubr.msk.bf16.vlgmr.msra.gmra.mrb[0].mxu0 %vm396_vm1, %v3163_v60  ;;  %v4443_v60 = vld [vmem:[%s3877_s22 + $0x48] sm:$0xf] }
  0x62   : > { %v732_v23 = vsel %vm4017_vm4, %v727_v62, %v731_v40  ;;  %v2168_v18 = vshll.u32 %v4362_v45, 16  ;;  %v2178_v44 = vshrl.u32 %v4373_v37, 16  ;;  %v916_v26 = vsel %vm4113_vm7, %v3953_v48, %v915_v53  ;;  %3470 = vmatpush3.bf16.msra.mxu0 %v3884_v13  ;;  %v4454_v62 = vld [vmem:[%s3877_s22 + $0x54] sm:$0xf] }
  0x63   : > { %v4411_v17 = vsel %vm4113_vm7, %v4990_v14, %v4989_v25  ;;  %v3016_v3 = vcombine.low %v722_v9, %v732_v23  ;;  %v3034_v31 = vcombine.low %v913_v63, %v916_v26  ;;  %v923_v14 = vsel %vm4113_vm7, %v3972_v59, %v922_v16  ;;  %3457 = vmatprep.mubr.msk.bf16.mxu0 %vm396_vm1, %v3164_v2  ;;  %v4446_v63 = vld [vmem:[%s3877_s22 + $0x4c] sm:$0xf] }
  0x64   : > { %v2189_v40 = vshrl.u32 %v4384_v55, 16  ;;  %v3035_v11 = vcombine.low %v4411_v17, %v923_v14  ;;  %v2192_v24 = vshll.u32 %v4384_v55, 16  ;;  %v2202_v48 = vshrl.u32 %v4388_v51, 16  ;;  %3660 = vmatprep.subr.msk.bf16.mxu0 %vm421_vm0, %v3894_v15 }
  0x65   : > { %v3165_v53 = vcombine.low %v4417_v39, %v4420_v28  ;;  %3376 = vmatmul.mubr.msk.bf16.gmra.mrb[12].mxu1 %vm396_vm1, %v3016_v3  ;;  %v3027_v13 = vrot.slane %v3926_v32, 9  ;;  %v926_v59 = vrot.slane %v3932_v36, 5  ;;  %v929_v34 = vrot.slane %v4171_v33, 5  ;;  %v4464_v36 = vld [vmem:[%s3877_s22 + $0x58] sm:$0xf] }
  0x66   : > { %v3028_v9 = vrot.slane %v3941_v42, 9  ;;  %3381 = vmatprep.mubr.msk.bf16.mxu1 %vm396_vm1, %v3034_v31  ;;  %v2213_v25 = vshrl.u32 %v4417_v39, 16  ;;  %v2216_v17 = vshll.u32 %v4417_v39, 16  ;;  %v933_v16 = vrot.slane %v3948_v47, 5  ;;  %v4486_v33 = vld [vmem:[%s3877_s22 + $0x60] sm:$0xf] }
  0x67   : > { %v936_v32 = vrot.slane %v4186_v46, 5  ;;  %v927_v42 = vsel %vm4113_vm7, %v3027_v13, %v926_v59  ;;  %v928_v15 = vrot.slane %v926_v59, 4  ;;  %v3166_v2 = vcombine.low %v4443_v60, %v4446_v63 }
  0x68   : > { %v935_v23 = vrot.slane %v933_v16, 4  ;;  %v934_v31 = vsel %vm4113_vm7, %v3028_v9, %v933_v16  ;;  %v3167_v14 = vcombine.low %v4454_v62, %v4464_v36  ;;  %v3029_v13 = vrot.slane %v4008_v61, 9 }
  0x69   : > { %v930_v3 = vsel %vm4113_vm7, %v928_v15, %v929_v34  ;;  %v940_v47 = vrot.slane %v4011_v5, 5  ;;  %v943_v46 = vrot.slane %v4257_v0, 5  ;;  %v4489_v34 = vld [vmem:[%s3877_s22 + $0x64] sm:$0xf]  ;;  %3458 = vmatmul.mubr.msk.bf16.gmra.mrb[4].mxu0 %vm396_vm1, %v3165_v53  ;;  %v2261_v9 = vshrl.u32 %v4454_v62, 16 }
  0x6a   : > { %v3036_v59 = vcombine.low %v927_v42, %v930_v3  ;;  %v937_v26 = vsel %vm4113_vm7, %v935_v23, %v936_v32  ;;  %v3030_v16 = vrot.slane %v4023_v35, 9  ;;  %v947_v61 = vrot.slane %v4026_v50, 5  ;;  %v4497_v32 = vld [vmem:[%s3877_s22 + $0x6c] sm:$0xf]  ;;  %3461 = vmatprep.mubr.msk.bf16.mxu0 %vm396_vm1, %v3166_v2  ;;  %v4505_v23 = vld [vmem:[%s3877_s22 + $0x70] sm:$0xf] }
  0x6b   : > { %v950_v42 = vrot.slane %v4267_v8, 5  ;;  %v2264_v5 = vshll.u32 %v4454_v62, 16  ;;  %v2274_v0 = vshrl.u32 %v4464_v36, 16  ;;  %v941_v15 = vsel %vm4113_vm7, %v3029_v13, %v940_v47  ;;  %v4991_v3 = vld [vmem:[#allocation4_spill] sm:$0xff] }
  0x6c   : > { %v942_v53 = vrot.slane %v940_v47, 4  ;;  %v3037_v35 = vcombine.low %v934_v31, %v937_v26  ;;  %v4510_v50 = vsel %vm4113_vm7, %v3030_v16, %v947_v61  ;;  %v949_v8 = vrot.slane %v947_v61, 4 }
  0x6d   : > { %3382 = vmatmul.mubr.msk.bf16.vlgmr.msra.gmra.mrb[0].mxu1 %vm396_vm1, %v3035_v11  ;;  %v3168_v2 = vcombine.low %v4486_v33, %v4489_v34  ;;  %v3169_v61 = vcombine.low %v4497_v32, %v4505_v23  ;;  %v957_v26 = vrot.slane %v4320_v10, 5  ;;  %v2150_v10 = vshll.u32 %v4346_v54, 16 }
  0x6e   : > { %3385 = vmatprep.mubr.msk.bf16.mxu1 %vm396_vm1, %v3036_v59  ;;  %3398 = vmatpush3.bf16.msra.mxu1 %v4991_v3  ;;  %v944_v47 = vsel %vm4113_vm7, %v942_v53, %v943_v46  ;;  %v4523_v16 = vsel %vm4113_vm7, %v949_v8, %v950_v42  ;;  %v3031_v59 = vrot.slane %v4073_v1, 9  ;;  %v4992_v3 = vld [vmem:[#allocation2_spill] sm:$0xff]  ;;  %v954_v53 = vrot.slane %v4077_v56, 5 }
  0x6f   : > { %v3038_v31 = vcombine.low %v941_v15, %v944_v47  ;;  %3656 = vmatprep.subr.msk.bf16.mxu1 %vm421_vm0, %v4992_v3  ;;  %v3039_v46 = vcombine.low %v4510_v50, %v4523_v16  ;;  %v3032_v15 = vrot.slane %v4085_v43, 9  ;;  %v4536_v47 = vld [vmem:[%s3877_s22 + $0x20] sm:$0x1]  ;;  %v961_v42 = vrot.slane %v4088_v4, 5 }
  0x70   : > { %v964_v8 = vrot.slane %v4334_v12, 5  ;;  %v2143_v1 = vrot.slane %v2141_v38, 4  ;;  %v4993_v3 = vshll.u32 %v4343_v20, 16  ;;  %v955_v56 = vsel %vm4113_vm7, %v3031_v59, %v954_v53 }
  0x71   : > { %v956_v50 = vrot.slane %v954_v53, 4  ;;  %v4994_v43 = vshrl.u32 %v4346_v54, 16  ;;  %3462 = vmatmul.mubr.msk.bf16.gmra.mrb[8].mxu0 %vm396_vm1, %v3167_v14  ;;  %v4552_v4 = vsel %vm4113_vm7, %v3032_v15, %v961_v42  ;;  %v963_v12 = vrot.slane %v961_v42, 4 }
  0x72   : > { %v2146_v11 = vrot.slane %v4993_v3, 5  ;;  %v2160_v13 = vshll.u32 %v4536_v47, 16  ;;  %3465 = vmatprep.mubr.msk.bf16.mxu0 %vm396_vm1, %v3168_v2  ;;  %v2152_v53 = vrot.slane %v2150_v10, 5  ;;  %v4559_v3 = vld [vmem:[%s3877_s22 + $0x2c] sm:$0x1]  ;;  %v2170_v14 = vrot.slane %v2168_v18, 5 }
  0x73   : > { %v2156_v16 = vrot.slane %v4994_v43, 4  ;;  %v958_v59 = vsel %vm4113_vm7, %v956_v50, %v957_v26  ;;  %v2167_v43 = vrot.slane %v2165_v30, 4  ;;  %v2174_v50 = vshll.u32 %v4373_v37, 16 }
  0x74   : > { %v2147_v38 = vor.u32 %v2146_v11, %v2143_v1  ;;  %v3040_v15 = vcombine.low %v955_v56, %v958_v59  ;;  %v4568_v11 = vsel %vm4113_vm7, %v963_v12, %v964_v8  ;;  %v2162_v42 = vrot.slane %v2160_v13, 5 }
  0x75   : > { %3386 = vmatmul.mubr.msk.bf16.gmra.mrb[4].mxu1 %vm396_vm1, %v3037_v35  ;;  %v3041_v26 = vcombine.low %v4552_v4, %v4568_v11  ;;  %v2157_v1 = vor.u32 %v2156_v16, %v2152_v53  ;;  %v2171_v30 = vor.u32 %v2170_v14, %v2167_v43  ;;  %v2309_v18 = vshrl.u32 %v4497_v32, 16  ;;  %v4582_v16 = vld [vmem:[%s3877_s22 + $0x38] sm:$0x1] }
  0x76   : > { %v2148_v2 = vrot.slane %v2147_v38, 4  ;;  %3389 = vmatprep.mubr.msk.bf16.mxu1 %vm396_vm1, %v3038_v31  ;;  %v2180_v8 = vrot.slane %v2178_v44, 4  ;;  %v2184_v56 = vshll.u32 %v4559_v3, 16  ;;  %v2176_v12 = vrot.slane %v2174_v50, 5 }
  0x77   : > { %v2158_v31 = vrot.slane %v2157_v1, 4  ;;  %v2172_v10 = vrot.slane %v2171_v30, 4  ;;  %v2191_v59 = vrot.slane %v2189_v40, 4  ;;  %v2194_v43 = vrot.slane %v2192_v24, 5  ;;  %v4598_v24 = vld [vmem:[%s3877_s22 + $0x44] sm:$0x1] }
  0x78   : > { %v2153_v13 = vsel %vm4017_vm4, %v2148_v2, %v2152_v53  ;;  %v2186_v38 = vrot.slane %v2184_v56, 5  ;;  %v2198_v44 = vshll.u32 %v4388_v51, 16  ;;  %v2181_v2 = vor.u32 %v2180_v8, %v2176_v12 }
  0x79   : > { %v2163_v14 = vsel %vm4017_vm4, %v2158_v31, %v2162_v42  ;;  %v2177_v53 = vsel %vm4017_vm4, %v2172_v10, %v2176_v12  ;;  %v2204_v1 = vrot.slane %v2202_v48, 4  ;;  %3466 = vmatmul.mubr.msk.bf16.gmra.mrb[12].mxu0 %vm396_vm1, %v3169_v61  ;;  %v2195_v50 = vor.u32 %v2194_v43, %v2191_v59 }
  0x7a   : > { %v3179_v30 = vcombine.low %v2153_v13, %v2163_v14  ;;  %v2200_v40 = vrot.slane %v2198_v44, 5  ;;  %v2208_v56 = vshll.u32 %v4582_v16, 16  ;;  %v2182_v35 = vrot.slane %v2181_v2, 4 }
  0x7b   : > { %v2215_v42 = vrot.slane %v2213_v25, 4  ;;  %v2218_v31 = vrot.slane %v2216_v17, 5  ;;  %v2222_v8 = vshll.u32 %v4420_v28, 16  ;;  %v2196_v48 = vrot.slane %v2195_v50, 4 }
  0x7c   : > { %3471 = vmatprep.mubr.msk.bf16.mxu0 %vm396_vm1, %v3179_v30  ;;  %v2205_v61 = vor.u32 %v2204_v1, %v2200_v40  ;;  %v2210_v13 = vrot.slane %v2208_v56, 5  ;;  %v4995_v10 = vshrl.u32 %v4420_v28, 16  ;;  %v2187_v25 = vsel %vm4017_vm4, %v2182_v35, %v2186_v38  ;;  %v4619_v56 = vld [vmem:[%s3877_s22 + $0x50] sm:$0x1] }
  0x7d   : > { %3390 = vmatmul.mubr.msk.bf16.gmra.mrb[8].mxu1 %vm396_vm1, %v3039_v46  ;;  %v2219_v59 = vor.u32 %v2218_v31, %v2215_v42  ;;  %v2224_v17 = vrot.slane %v2222_v8, 5  ;;  %v2232_v43 = vshll.u32 %v4598_v24, 16  ;;  %v2322_v46 = vshrl.u32 %v4505_v23, 16 }
  0x7e   : > { %v2228_v12 = vrot.slane %v4995_v10, 4  ;;  %3393 = vmatprep.mubr.msk.bf16.mxu1 %vm396_vm1, %v3040_v15  ;;  %v3180_v44 = vcombine.low %v2177_v53, %v2187_v25  ;;  %v2201_v14 = vsel %vm4017_vm4, %v2196_v48, %v2200_v40  ;;  %v2206_v2 = vrot.slane %v2205_v61, 4  ;;  %v4635_v25 = vld [vmem:[%s3877_s22 + $0x5c] sm:$0x1] }
  0x7f   : > { %v3077_v1 = vcombine.low %v3959_v52, %v3967_v57  ;;  %v2220_v30 = vrot.slane %v2219_v59, 4  ;;  %v2234_v50 = vrot.slane %v2232_v43, 5  ;;  %v4996_v38 = vshrl.u32 %v4443_v60, 16  ;;  %v4999_v43 = vld [vmem:[#allocation5_spill] sm:$0xff] }
  0x80   : > { %v2229_v15 = vor.u32 %v2228_v12, %v2224_v17  ;;  %v2211_v35 = vsel %vm4017_vm4, %v2206_v2, %v2210_v13  ;;  %v4997_v53 = vshll.u32 %v4443_v60, 16  ;;  %v2246_v40 = vshll.u32 %v4446_v63, 16 }
  0x81   : > { %v2239_v42 = vrot.slane %v4996_v38, 4  ;;  %v3181_v8 = vcombine.low %v2201_v14, %v2211_v35  ;;  %v2225_v52 = vsel %vm4017_vm4, %v2220_v30, %v2224_v17  ;;  %v4998_v48 = vshrl.u32 %v4446_v63, 16  ;;  %3472 = vmatmul.mubr.msk.bf16.vlgmr.msra.gmra.mrb[0].mxu0 %vm396_vm1, %v3180_v44 }
  0x82   : > { %v2242_v31 = vrot.slane %v4997_v53, 5  ;;  %v2230_v57 = vrot.slane %v2229_v15, 4  ;;  %v2248_v10 = vrot.slane %v2246_v40, 5  ;;  %v2256_v12 = vshll.u32 %v4619_v56, 16  ;;  %3488 = vmatpush3.bf16.msra.mxu0 %v4999_v43  ;;  %v4659_v53 = vld [vmem:[%s3877_s22 + $0x68] sm:$0x1] }
  0x83   : > { %v2252_v61 = vrot.slane %v4998_v48, 4  ;;  %v2263_v59 = vrot.slane %v2261_v9, 4  ;;  %3475 = vmatprep.mubr.msk.bf16.mxu0 %vm396_vm1, %v3181_v8  ;;  %v2266_v44 = vrot.slane %v2264_v5, 5  ;;  %v2270_v14 = vshll.u32 %v4464_v36, 16  ;;  %v3726_v9 = vld [vmem:[%s3877_s22 + $0x18] sm:$0xf] }
  0x84   : > { %v2243_v13 = vor.u32 %v2242_v31, %v2239_v42  ;;  %v2235_v17 = vsel %vm4017_vm4, %v2230_v57, %v2234_v50  ;;  %v2276_v2 = vrot.slane %v2274_v0, 4  ;;  %v3078_v30 = vcombine.low %v3726_v9, %v3994_v21 }
  0x85   : > { %3394 = vmatmul.mubr.msk.bf16.gmra.mrb[12].mxu1 %vm396_vm1, %v3041_v26  ;;  %v2253_v35 = vor.u32 %v2252_v61, %v2248_v10  ;;  %v2258_v38 = vrot.slane %v2256_v12, 5  ;;  %v3079_v5 = vcombine.low %v4032_v22, %v4040_v49  ;;  %v2267_v50 = vor.u32 %v2266_v44, %v2263_v59 }
  0x86   : > { %v2244_v15 = vrot.slane %v2243_v13, 4  ;;  %3399 = vmatprep.mubr.msk.bf16.mxu1 %vm396_vm1, %v3077_v1  ;;  %v2272_v42 = vrot.slane %v2270_v14, 5  ;;  %v2280_v0 = vshll.u32 %v4635_v25, 16  ;;  %v3182_v4 = vcombine.low %v2225_v52, %v2235_v17  ;;  %v4676_v17 = vld [vmem:[%s3877_s22 + $0x74] sm:$0x1] }
  0x87   : > { %v2254_v21 = vrot.slane %v2253_v35, 4  ;;  %v5000_v26 = vshrl.u32 %v4486_v33, 16  ;;  %v2268_v40 = vrot.slane %v2267_v50, 4  ;;  %v5001_v22 = vshll.u32 %v4486_v33, 16 }
  0x88   : > { %v2249_v11 = vsel %vm4017_vm4, %v2244_v15, %v2248_v10  ;;  %v2277_v1 = vor.u32 %v2276_v2, %v2272_v42  ;;  %v2282_v8 = vrot.slane %v2280_v0, 5  ;;  %v2294_v48 = vshll.u32 %v4489_v34, 16 }
  0x89   : > { %v2287_v31 = vrot.slane %v5000_v26, 4  ;;  %v2290_v49 = vrot.slane %v5001_v22, 5  ;;  %v2259_v57 = vsel %vm4017_vm4, %v2254_v21, %v2258_v38  ;;  %v5002_v52 = vshrl.u32 %v4489_v34, 16  ;;  %3476 = vmatmul.mubr.msk.bf16.gmra.mrb[4].mxu0 %vm396_vm1, %v3182_v4  ;;  %v5004_v4 = vld [vmem:[#allocation3_spill] sm:$0xff]  ;;  %v5005_v21 = vld [vmem:[#allocation6_spill] sm:$0xff] }
  0x8a   : > { %v2304_v13 = vshll.u32 %v4659_v53, 16  ;;  %v3080_v10 = vcombine.low %v4050_v29, %v4058_v58  ;;  %v3183_v12 = vcombine.low %v2249_v11, %v2259_v57  ;;  %v2278_v59 = vrot.slane %v2277_v1, 4 }
  0x8b   : > { %v2300_v61 = vrot.slane %v5002_v52, 4  ;;  %v2291_v43 = vor.u32 %v2290_v49, %v2287_v31  ;;  %v2273_v44 = vsel %vm4017_vm4, %v2268_v40, %v2272_v42  ;;  %v2296_v14 = vrot.slane %v2294_v48, 5  ;;  %v5006_v31 = vld [vmem:[#allocation8_spill] sm:$0xff] }
  0x8c   : > { %v2311_v2 = vrot.slane %v2309_v18, 4  ;;  %v5003_v9 = vshll.u32 %v4497_v32, 16  ;;  %3479 = vmatprep.mubr.msk.bf16.mxu0 %vm396_vm1, %v3183_v12  ;;  %v2283_v29 = vsel %vm4017_vm4, %v2278_v59, %v2282_v8  ;;  %v2318_v35 = vshll.u32 %v4505_v23, 16 }
  0x8d   : > { %v2292_v58 = vrot.slane %v2291_v43, 4  ;;  %v2324_v38 = vrot.slane %v2322_v46, 4  ;;  %3400 = vmatmul.mubr.msk.bf16.vlgmr.msra.gmra.mrb[0].mxu1 %vm396_vm1, %v3078_v30  ;;  %v2301_v50 = vor.u32 %v2300_v61, %v2296_v14  ;;  %v2306_v42 = vrot.slane %v2304_v13, 5 }
  0x8e   : > { %v2314_v15 = vrot.slane %v5003_v9, 5  ;;  %v2328_v18 = vshll.u32 %v4676_v17, 16  ;;  %3403 = vmatprep.mubr.msk.bf16.mxu1 %vm396_vm1, %v3079_v5  ;;  %3506 = vmatpush3.bf16.msra.mxu1 %v5004_v4  ;;  %v3184_v11 = vcombine.low %v2273_v44, %v2283_v29  ;;  %v3081_v26 = vcombine.low %v5005_v21, %v4196_v6  ;;  %v5007_v29 = vld [vmem:[#allocation12_spill] sm:$0xff] }
  0x8f   : > { %v3082_v40 = vcombine.low %v5006_v31, %v4235_v27  ;;  %v2320_v1 = vrot.slane %v2318_v35, 5  ;;  %v2297_v46 = vsel %vm4017_vm4, %v2292_v58, %v2296_v14  ;;  %v2302_v30 = vrot.slane %v2301_v50, 4  ;;  %v5008_v58 = vld [vmem:[#allocation11_spill] sm:$0xff] }
  0x90   : > { %v2315_v0 = vor.u32 %v2314_v15, %v2311_v2  ;;  %v3195_v22 = vrot.slane %v4343_v20, 9  ;;  %v2330_v57 = vrot.slane %v2328_v18, 5  ;;  %v2508_v5 = vrot.slane %v4346_v54, 5 }
  0x91   : > { %v2325_v49 = vor.u32 %v2324_v38, %v2320_v1  ;;  %v2511_v48 = vrot.slane %v4536_v47, 5  ;;  %v2307_v52 = vsel %vm4017_vm4, %v2302_v30, %v2306_v42  ;;  %v3196_v13 = vrot.slane %v4362_v45, 9  ;;  %3480 = vmatmul.mubr.msk.bf16.gmra.mrb[8].mxu0 %vm396_vm1, %v3184_v11  ;;  %v5012_v30 = vld [vmem:[#allocation17_spill] sm:$0xff] }
  0x92   : > { %v2316_v8 = vrot.slane %v2315_v0, 4  ;;  %v2515_v12 = vrot.slane %v4373_v37, 5  ;;  %v3185_v59 = vcombine.low %v2297_v46, %v2307_v52  ;;  %v2510_v44 = vrot.slane %v2508_v5, 4 }
  0x93   : > { %v2326_v43 = vrot.slane %v2325_v49, 4  ;;  %v2518_v20 = vrot.slane %v4559_v3, 5  ;;  %v2509_v54 = vsel %vm4113_vm7, %v3195_v22, %v2508_v5  ;;  %v1439_v14 = vshrl.u32 %v5005_v21, 16 }
  0x94   : > { %v2321_v61 = vsel %vm4017_vm4, %v2316_v8, %v2320_v1  ;;  %v2517_v47 = vrot.slane %v2515_v12, 4  ;;  %v1442_v2 = vshll.u32 %v5005_v21, 16  ;;  %3483 = vmatprep.mubr.msk.bf16.mxu0 %vm396_vm1, %v3185_v59  ;;  %v2512_v37 = vsel %vm4113_vm7, %v2510_v44, %v2511_v48  ;;  %v5011_v1 = vld [vmem:[#allocation10_spill] sm:$0xff] }
  0x95   : > { %v2331_v45 = vsel %vm4017_vm4, %v2326_v43, %v2330_v57  ;;  %v1448_v3 = vshll.u32 %v4196_v6, 16  ;;  %v1452_v9 = vshrl.u32 %v4196_v6, 16  ;;  %3404 = vmatmul.mubr.msk.bf16.gmra.mrb[4].mxu1 %vm396_vm1, %v3080_v10  ;;  %v3083_v35 = vcombine.low %v5008_v58, %v5007_v29  ;;  %v5009_v6 = vld [vmem:[#allocation7_spill] sm:$0xff]  ;;  %v5010_v10 = vld [vmem:[#allocation9_spill] sm:$0xff]  ;;  %v5013_v8 = vld [vmem:[#allocation18_spill] sm:$0xff] }
  0x96   : > { %v3186_v15 = vcombine.low %v2321_v61, %v2331_v45  ;;  %v2516_v38 = vsel %vm4113_vm7, %v3196_v13, %v2515_v12  ;;  %v1441_v50 = vrot.slane %v1439_v14, 4  ;;  %3407 = vmatprep.mubr.msk.bf16.mxu1 %vm396_vm1, %v3081_v26  ;;  %v3204_v42 = vcombine.low %v2509_v54, %v2512_v37  ;;  %v5014_v12 = vld [vmem:[#allocation15_spill] sm:$0xff]  ;;  %v5015_v59 = vld [vmem:[#allocation14_spill] sm:$0xff] }
  0x97   : > { %v1444_v0 = vrot.slane %v1442_v2, 5  ;;  %v1450_v18 = vrot.slane %v1448_v3, 5  ;;  %v1454_v4 = vrot.slane %v1452_v9, 4  ;;  %v2519_v11 = vsel %vm4113_vm7, %v2517_v47, %v2518_v20 }
  0x98   : > { %v1458_v21 = vshll.u32 %v5009_v6, 16  ;;  %v1469_v46 = vor.u32 %v5011_v1, %v5010_v10  ;;  %v1479_v22 = vor.u32 %v5013_v8, %v5012_v30  ;;  %v3197_v5 = vrot.slane %v4384_v55, 9 }
  0x99   : > { %v1445_v49 = vor.u32 %v1444_v0, %v1441_v50  ;;  %v1455_v57 = vor.u32 %v1454_v4, %v1450_v18  ;;  %v2522_v26 = vrot.slane %v4388_v51, 5  ;;  %v2525_v13 = vrot.slane %v4582_v16, 5  ;;  %3484 = vmatmul.mubr.msk.bf16.gmra.mrb[12].mxu0 %vm396_vm1, %v3186_v15 }
  0x9a   : > { %v1460_v48 = vrot.slane %v1458_v21, 5  ;;  %v1470_v52 = vrot.slane %v1469_v46, 4  ;;  %v1480_v61 = vrot.slane %v1479_v22, 4  ;;  %v3084_v43 = vcombine.low %v5015_v59, %v5014_v12  ;;  %3489 = vmatprep.mubr.msk.bf16.mxu0 %vm396_vm1, %v3204_v42 }
  0x9b   : > { %v1446_v44 = vrot.slane %v1445_v49, 4  ;;  %v1456_v20 = vrot.slane %v1455_v57, 4  ;;  %v2524_v54 = vrot.slane %v2522_v26, 4  ;;  %v3205_v47 = vcombine.low %v2516_v38, %v2519_v11 }
  0x9c   : > { %v1475_v55 = vsel %vm4017_vm4, %v1470_v52, %v5012_v30  ;;  %v1485_v51 = vsel %vm4017_vm4, %v1480_v61, %v4377_v41  ;;  %v2529_v14 = vrot.slane %v4420_v28, 5  ;;  %v3198_v37 = vrot.slane %v4417_v39, 9 }
  0x9d   : > { %v1451_v16 = vsel %vm4017_vm4, %v1446_v44, %v1450_v18  ;;  %v1461_v2 = vsel %vm4017_vm4, %v1456_v20, %v1460_v48  ;;  %v4754_v45 = vcombine.low %v1475_v55, %v1485_v51  ;;  %3408 = vmatmul.mubr.msk.bf16.gmra.mrb[8].mxu1 %vm396_vm1, %v3082_v40  ;;  %v2523_v41 = vsel %vm4113_vm7, %v3197_v5, %v2522_v26  ;;  %v5016_v40 = vld [vmem:[#allocation13_spill] sm:$0xff]  ;;  %v5017_v48 = vld [vmem:[#allocation16_spill] sm:$0xff] }
  0x9e   : > { %v2526_v28 = vsel %vm4113_vm7, %v2524_v54, %v2525_v13  ;;  %v2531_v3 = vrot.slane %v2529_v14, 4  ;;  %v2532_v9 = vrot.slane %v4598_v24, 5  ;;  %3411 = vmatprep.mubr.msk.bf16.mxu1 %vm396_vm1, %v3083_v35  ;;  %v1487_v15 = vshrl.u32 %v5008_v58, 16 }
  0x9f   : > { %v1490_v39 = vshll.u32 %v5008_v58, 16  ;;  %v1496_v38 = vshll.u32 %v5007_v29, 16  ;;  %v1500_v27 = vshrl.u32 %v5007_v29, 16  ;;  %v3098_v31 = vcombine.low %v1451_v16, %v1461_v2 }
  0xa0   : > { %v1506_v50 = vshll.u32 %v5016_v40, 16  ;;  %v1511_v42 = vshrl.u32 %v5015_v59, 16  ;;  %v1514_v0 = vshll.u32 %v5015_v59, 16  ;;  %v3206_v18 = vcombine.low %v2523_v41, %v2526_v28 }
  0xa1   : > { %v1489_v4 = vrot.slane %v1487_v15, 4  ;;  %v1492_v24 = vrot.slane %v1490_v39, 5  ;;  %v1498_v11 = vrot.slane %v1496_v38, 5  ;;  %v2530_v35 = vsel %vm4113_vm7, %v3198_v37, %v2529_v14  ;;  %3490 = vmatmul.mubr.msk.bf16.vlgmr.msra.gmra.mrb[0].mxu0 %vm396_vm1, %v3205_v47 }
  0xa2   : > { %v2533_v58 = vsel %vm4113_vm7, %v2531_v3, %v2532_v9  ;;  %v1502_v6 = vrot.slane %v1500_v27, 4  ;;  %v1513_v21 = vrot.slane %v1511_v42, 4  ;;  %v1516_v10 = vrot.slane %v1514_v0, 5  ;;  %3493 = vmatprep.mubr.msk.bf16.mxu0 %vm396_vm1, %v3206_v18 }
  0xa3   : > { %v1493_v29 = vor.u32 %v1492_v24, %v1489_v4  ;;  %v1520_v1 = vshll.u32 %v5014_v12, 16  ;;  %v1524_v46 = vshrl.u32 %v5014_v12, 16  ;;  %v1508_v8 = vrot.slane %v1506_v50, 5 }
  0xa4   : > { %v1503_v30 = vor.u32 %v1502_v6, %v1498_v11  ;;  %v3199_v22 = vrot.slane %v4443_v60, 9  ;;  %v2536_v49 = vrot.slane %v4446_v63, 5  ;;  %v1530_v52 = vshll.u32 %v5017_v48, 16  ;;  %v3224_v6 = vld [vmem:[%s4835_s8] sm:$0xff]  }
  0xa5   : > { %v1494_v57 = vrot.slane %v1493_v29, 4  ;;  %v1522_v5 = vrot.slane %v1520_v1, 5  ;;  %v1526_v26 = vrot.slane %v1524_v46, 4  ;;  %3412 = vmatmul.mubr.msk.bf16.gmra.mrb[12].mxu1 %vm396_vm1, %v3084_v43  ;;  %v1517_v12 = vor.u32 %v1516_v10, %v1513_v21 }
  0xa6   : > { %v1504_v61 = vrot.slane %v1503_v30, 4  ;;  %v2538_v13 = vrot.slane %v2536_v49, 4  ;;  %3425 = vmatprep.mubr.msk.bf16.mxu1 %vm396_vm1, %v3098_v31  ;;  %v2537_v60 = vsel %vm4113_vm7, %v3199_v22, %v2536_v49  ;;  %v2539_v63 = vrot.slane %v4619_v56, 5 }
  0xa7   : > { %v1527_v59 = vor.u32 %v1526_v26, %v1522_v5  ;;  %v3207_v44 = vcombine.low %v2530_v35, %v2533_v58  ;;  %v1499_v20 = vsel %vm4017_vm4, %v1494_v57, %v1498_v11  ;;  %v2543_v43 = vrot.slane %v4464_v36, 5  ;;  %v4840_v35 = vld [vmem:[%s4920_s2] ss:$0 sm:$0xff]  ;;  %v3255_v58 = vld [vmem:[%s4835_s8 + $0x8] sm:$0xff]  }
  0xa8   : > { %v1509_v54 = vsel %vm4017_vm4, %v1504_v61, %v1508_v8  ;;  %v1532_v47 = vrot.slane %v1530_v52, 5  ;;  %v2540_v55 = vsel %vm4113_vm7, %v2538_v13, %v2539_v63  ;;  %v3200_v51 = vrot.slane %v4454_v62, 9 }
  0xa9   : > { %v2546_v14 = vrot.slane %v4635_v25, 5  ;;  %v3208_v16 = vcombine.low %v2537_v60, %v2540_v55  ;;  %v2545_v2 = vrot.slane %v2543_v43, 4  ;;  %v3201_v56 = vrot.slane %v4486_v33, 9  ;;  %3494 = vmatmul.mubr.msk.bf16.gmra.mrb[4].mxu0 %vm396_vm1, %v3207_v44  ;;  %v3257_v60 = vld [vmem:[%s4835_s8 + $0x18] sm:$0xff]  }
  0xaa   : > { %v2550_v37 = vrot.slane %v4489_v34, 5  ;;  %v3100_v41 = vcombine.low %v1499_v20, %v1509_v54  ;;  %v1518_v28 = vrot.slane %v1517_v12, 4  ;;  %v1528_v3 = vrot.slane %v1527_v59, 4  ;;  %v3256_v20 = vld [vmem:[%s4835_s8 + $0x10] sm:$0xff]  }
  0xab   : > { %v2553_v9 = vrot.slane %v4659_v53, 5  ;;  %3497 = vmatprep.mubr.msk.bf16.mxu0 %vm396_vm1, %v3208_v16  ;;  %v2544_v62 = vsel %vm4113_vm7, %v3200_v51, %v2543_v43  ;;  %v2547_v25 = vsel %vm4113_vm7, %v2545_v2, %v2546_v14  ;;  %v2557_v33 = vrot.slane %v4505_v23, 5 }
  0xac   : > { %v2552_v36 = vrot.slane %v2550_v37, 4  ;;  %v2551_v34 = vsel %vm4113_vm7, %v3201_v56, %v2550_v37  ;;  %v1523_v15 = vsel %vm4017_vm4, %v1518_v28, %v1522_v5  ;;  %v1533_v39 = vsel %vm4017_vm4, %v1528_v3, %v1532_v47 }
  0xad   : > { %3426 = vmatmul.mubr.msk.bf16.vlgmr.msra.gmra.mrb[8].mxu1 %vm396_vm1, %v4754_v45  ;;  %v3209_v38 = vcombine.low %v2544_v62, %v2547_v25  ;;  %v3202_v27 = vrot.slane %v4497_v32, 9  ;;  %v2559_v45 = vrot.slane %v2557_v33, 4  ;;  %v2560_v31 = vrot.slane %v4676_v17, 5 }
  0xae   : > { %v2554_v53 = vsel %vm4113_vm7, %v2552_v36, %v2553_v9  ;;  %3429 = vmatprep.mubr.msk.bf16.mxu1 %vm396_vm1, %v3100_v41  ;;  %v3101_v40 = vcombine.low %v1523_v15, %v1533_v39  ;;  %v3229_v29 = vunpack.c.l.bf16 %v3255_v58  ;;  %v3225_v46 = vunpack.c.l.bf16 %v3224_v6 }
  0xaf   : > { %v3210_v23 = vcombine.low %v2551_v34, %v2554_v53  ;;  %v2558_v50 = vsel %vm4113_vm7, %v3202_v27, %v2557_v33  ;;  %v2561_v19 = vsel %vm4113_vm7, %v2559_v45, %v2560_v31  ;;  %v3230_v49 = vunpack.c.h.bf16 %v3255_v58  ;;  %v3259_v45 = vld [vmem:[%s4835_s8 + $0x28] sm:$0xff]  }
  0xb0   : > { %v3211_v42 = vcombine.low %v2558_v50, %v2561_v19  ;;  %v3226_v48 = vunpack.c.h.bf16 %v3224_v6  ;;  %v3237_v51 = vunpack.c.l.bf16 %v3257_v60  ;;  %v3233_v56 = vunpack.c.l.bf16 %v3256_v20  ;;  %v3258_v19 = vld [vmem:[%s4835_s8 + $0x20] sm:$0xff]  }
  0xb1   : > { %3498 = vmatmul.mubr.msk.bf16.gmra.mrb[8].mxu0 %vm396_vm1, %v3209_v38  ;;  %v3238_v3 = vunpack.c.h.bf16 %v3257_v60  ;;  %v3234_v33 = vunpack.c.h.bf16 %v3256_v20  ;;  %v3260_v60 = vld [vmem:[%s4835_s8 + $0x30] sm:$0xff]  }
  0xb2   : > { %3501 = vmatprep.mubr.msk.bf16.mxu0 %vm396_vm1, %v3210_v23 }
  0xb5   : > { %3430 = vmatmul.mubr.msk.bf16.gmra.mrb[12].mxu1 %vm396_vm1, %v3101_v40 }
  0xb9   : > { %3502 = vmatmul.mubr.msk.bf16.gmra.mrb[12].mxu0 %vm396_vm1, %v3211_v42 }
 0x160   : > { %v3401_v32 = vpop.f32.mrb[0].mxu1 }
 0x161   : > { %v1263_v17 = vpop.f32.mrb[1].mxu1  ;;  %v3507_v21 = vadd.f32 %v3401_v32, %v4840_v35 }
 0x162   : > { %v3402_v0 = vpop.f32.mrb[2].mxu1  ;;  %v3509_v10 = vadd.f32 %v4840_v35, %v1263_v17 }
 0x163   : > { %v1266_v18 = vpop.f32.mrb[3].mxu1  ;;  %v3511_v30 = vadd.f32 %v3402_v0, %v4840_v35 }
 0x164   : > { %v3513_v57 = vadd.f32 %v4840_v35, %v1266_v18  ;;  %v3245_v18 = vunpack.c.l.bf16 %v3259_v45 }
 0x168   : > { %v3405_v4 = vpop.f32.mrb[4].mxu1 }
 0x169   : > { %v1279_v24 = vpop.f32.mrb[5].mxu1  ;;  %v3515_v47 = vadd.f32 %v3405_v4, %v4840_v35 }
 0x16a   : > { %v3406_v11 = vpop.f32.mrb[6].mxu1  ;;  %v3517_v14 = vadd.f32 %v4840_v35, %v1279_v24 }
 0x16b   : > { %v1282_v7 = vpop.f32.mrb[7].mxu1  ;;  %v3519_v37 = vadd.f32 %v3406_v11, %v4840_v35 }
 0x16c   : > { %v3521_v9 = vadd.f32 %v4840_v35, %v1282_v7  ;;  %v3241_v7 = vunpack.c.l.bf16 %v3258_v19 }
 0x174   : > { %v3491_v1 = vpop.f32.mrb[0].mxu0 }
 0x175   : > { %v3508_v8 = vadd.f32 %v3507_v21, %v3491_v1  ;;  %v2649_v22 = vpop.f32.mrb[1].mxu0 }
 0x176   : > { %v3510_v5 = vadd.f32 %v3509_v10, %v2649_v22  ;;  %v3492_v26 = vpop.f32.mrb[2].mxu0 }
 0x177   : > { %v2762_v52 = vadd.f32 %v3508_v8, %v3229_v29  ;;  %v3512_v61 = vadd.f32 %v3511_v30, %v3492_v26  ;;  %v2652_v13 = vpop.f32.mrb[3].mxu0  ;;  %v3246_v29 = vunpack.c.h.bf16 %v3259_v45  ;;  %v3242_v8 = vunpack.c.h.bf16 %v3258_v19 }
 0x178   : > { %v2760_v12 = vadd.f32 %v3510_v5, %v3225_v46  ;;  %v3514_v59 = vadd.f32 %v3513_v57, %v2652_v13 }
 0x179   : > { %v2778_v63 = vmax.f32 %v2762_v52, 0.0  ;;  %v2763_v44 = vadd.f32 %v3512_v61, %v3230_v49  ;;  %v3261_v61 = vld [vmem:[%s4835_s8 + $0x38] sm:$0xff]  }
 0x17a   : > { %v2776_v54 = vmax.f32 %v2760_v12, 0.0  ;;  %v2761_v43 = vadd.f32 %v3514_v59, %v3226_v48 }
 0x17b   : > { %2794 = vst.msk [vmem:[%s4851_s12 + $0x10] sm:$0xff] %vm396_vm1, %v2778_v63  ;;  %v2779_v55 = vmax.f32 %v2763_v44, 0.0 }
 0x17c   : > { %2792 = vst.msk [vmem:[%s4851_s12] sm:$0xff] %vm396_vm1, %v2776_v54  ;;  %v2777_v16 = vmax.f32 %v2761_v43, 0.0  ;;  %v3495_v2 = vpop.f32.mrb[4].mxu0  ;;  %v3253_v43 = vunpack.c.l.bf16 %v3261_v61 }
 0x17d   : > { %2795 = vst.msk [vmem:[%s4851_s12 + $0x18] sm:$0xff] %vm396_vm1, %v2779_v55  ;;  %v3516_v41 = vadd.f32 %v3515_v47, %v3495_v2  ;;  %v2665_v28 = vpop.f32.mrb[5].mxu0 }
 0x17e   : > { %2793 = vst.msk [vmem:[%s4851_s12 + $0x8] sm:$0xff] %vm396_vm1, %v2777_v16  ;;  %v3518_v62 = vadd.f32 %v3517_v14, %v2665_v28  ;;  %v3496_v25 = vpop.f32.mrb[6].mxu0  ;;  %v3249_v14 = vunpack.c.l.bf16 %v3260_v60 }
 0x17f   : > { %v2766_v53 = vadd.f32 %v3516_v41, %v3237_v51  ;;  %v3520_v15 = vadd.f32 %v3519_v37, %v3496_v25  ;;  %v2668_v39 = vpop.f32.mrb[7].mxu0  ;;  %v3254_v37 = vunpack.c.h.bf16 %v3261_v61 }
 0x180   : > { %v3427_v36 = vpop.f32.mrb[8].mxu1  ;;  %v2764_v23 = vadd.f32 %v3518_v62, %v3233_v56  ;;  %v3522_v27 = vadd.f32 %v3521_v9, %v2668_v39  ;;  %v3250_v9 = vunpack.c.h.bf16 %v3260_v60 }
 0x181   : > { %v1653_v34 = vpop.f32.mrb[9].mxu1  ;;  %v2782_v31 = vmax.f32 %v2766_v53, 0.0  ;;  %v2767_v50 = vadd.f32 %v3520_v15, %v3238_v3  ;;  %v3523_v17 = vadd.f32 %v3427_v36, %v4840_v35 }
 0x182   : > { %v3428_v38 = vpop.f32.mrb[10].mxu1  ;;  %v2780_v42 = vmax.f32 %v2764_v23, 0.0  ;;  %v2765_v32 = vadd.f32 %v3522_v27, %v3234_v33  ;;  %v3525_v4 = vadd.f32 %v4840_v35, %v1653_v34 }
 0x183   : > { %v1656_v40 = vpop.f32.mrb[11].mxu1  ;;  %2798 = vst.msk [vmem:[%s4851_s12 + $0x30] sm:$0xff] %vm396_vm1, %v2782_v31  ;;  %v2783_v0 = vmax.f32 %v2767_v50, 0.0  ;;  %v3527_v58 = vadd.f32 %v3428_v38, %v4840_v35 }
 0x184   : > { %2796 = vst.msk [vmem:[%s4851_s12 + $0x20] sm:$0xff] %vm396_vm1, %v2780_v42  ;;  %v2781_v24 = vmax.f32 %v2765_v32, 0.0  ;;  %v3499_v11 = vpop.f32.mrb[8].mxu0  ;;  %v3529_v10 = vadd.f32 %v4840_v35, %v1656_v40 }
 0x185   : > { %2799 = vst.msk [vmem:[%s4851_s12 + $0x38] sm:$0xff] %vm396_vm1, %v2783_v0  ;;  %v3524_v6 = vadd.f32 %v3523_v17, %v3499_v11  ;;  %v2681_v21 = vpop.f32.mrb[9].mxu0 }
 0x186   : > { %2797 = vst.msk [vmem:[%s4851_s12 + $0x28] sm:$0xff] %vm396_vm1, %v2781_v24  ;;  %v3526_v46 = vadd.f32 %v3525_v4, %v2681_v21  ;;  %v3500_v30 = vpop.f32.mrb[10].mxu0 }
 0x187   : > { %v2770_v49 = vadd.f32 %v3524_v6, %v3245_v18  ;;  %v3528_v57 = vadd.f32 %v3527_v58, %v3500_v30  ;;  %v2684_v5 = vpop.f32.mrb[11].mxu0 }
 0x188   : > { %v3431_v1 = vpop.f32.mrb[12].mxu1  ;;  %v2768_v48 = vadd.f32 %v3526_v46, %v3241_v7  ;;  %v3530_v52 = vadd.f32 %v3529_v10, %v2684_v5 }
 0x189   : > { %v1669_v22 = vpop.f32.mrb[13].mxu1  ;;  %v2786_v13 = vmax.f32 %v2770_v49, 0.0  ;;  %v2771_v59 = vadd.f32 %v3528_v57, %v3246_v29  ;;  %v3531_v20 = vadd.f32 %v3431_v1, %v4840_v35 }
 0x18a   : > { %v3432_v26 = vpop.f32.mrb[14].mxu1  ;;  %v2784_v63 = vmax.f32 %v2768_v48, 0.0  ;;  %v2769_v44 = vadd.f32 %v3530_v52, %v3242_v8  ;;  %v3533_v47 = vadd.f32 %v4840_v35, %v1669_v22 }
 0x18b   : > { %v1672_v12 = vpop.f32.mrb[15].mxu1  ;;  %2802 = vst.msk [vmem:[%s4851_s12 + $0x50] sm:$0xff] %vm396_vm1, %v2786_v13  ;;  %v2787_v54 = vmax.f32 %v2771_v59, 0.0  ;;  %v3535_v16 = vadd.f32 %v3432_v26, %v4840_v35 }
 0x18c   : > { %2800 = vst.msk [vmem:[%s4851_s12 + $0x40] sm:$0xff] %vm396_vm1, %v2784_v63  ;;  %v2785_v55 = vmax.f32 %v2769_v44, 0.0  ;;  %v3503_v51 = vpop.f32.mrb[12].mxu0  ;;  %v3537_v41 = vadd.f32 %v4840_v35, %v1672_v12 }
 0x18d   : > { %2803 = vst.msk [vmem:[%s4851_s12 + $0x58] sm:$0xff] %vm396_vm1, %v2787_v54  ;;  %v3532_v2 = vadd.f32 %v3531_v20, %v3503_v51  ;;  %v2697_v56 = vpop.f32.mrb[13].mxu0 }
 0x18e   : > { %2801 = vst.msk [vmem:[%s4851_s12 + $0x48] sm:$0xff] %vm396_vm1, %v2785_v55  ;;  %v3534_v28 = vadd.f32 %v3533_v47, %v2697_v56  ;;  %v3504_v3 = vpop.f32.mrb[14].mxu0 }
 0x18f   : > { %v2774_v36 = vadd.f32 %v3532_v2, %v3253_v43  ;;  %v3536_v62 = vadd.f32 %v3535_v16, %v3504_v3  ;;  %v2700_v25 = vpop.f32.mrb[15].mxu0 }
 0x190   : > { %v2772_v33 = vadd.f32 %v3534_v28, %v3249_v14  ;;  %v3538_v34 = vadd.f32 %v3537_v41, %v2700_v25 }
 0x191   : > { %v2790_v53 = vmax.f32 %v2774_v36, 0.0  ;;  %v2775_v15 = vadd.f32 %v3536_v62, %v3254_v37 }
 0x192   : > { %v2788_v39 = vmax.f32 %v2772_v33, 0.0  ;;  %v2773_v38 = vadd.f32 %v3538_v34, %v3250_v9 }
 0x193   : > { %2806 = vst.msk [vmem:[%s4851_s12 + $0x70] sm:$0xff] %vm396_vm1, %v2790_v53  ;;  %v2791_v35 = vmax.f32 %v2775_v15, 0.0 }
 0x194   : > { %2804 = vst.msk [vmem:[%s4851_s12 + $0x60] sm:$0xff] %vm396_vm1, %v2788_v39  ;;  %v2789_v23 = vmax.f32 %v2773_v38, 0.0 }
 0x195   : > { %2807 = vst.msk [vmem:[%s4851_s12 + $0x78] sm:$0xff] %vm396_vm1, %v2791_v35 }
 0x196   : > { %2805 = vst.msk [vmem:[%s4851_s12 + $0x68] sm:$0xff] %vm396_vm1, %v2789_v23 }
 0x197 PF: > { %s14_s19 = sadd.s32 1, %s3765_s19   ;;  %s5018_s15 = smov %s3757_s17 }
 0x198   : > { %p11_p7 = scmp.ge.s32.totalorder %s14_s19, 6   ;;  %s5019_s16 = smov %s3761_s18 }
 0x199   : > { %s5020_s17 = smov %s5023_s20  ;;  %s5021_s18 = smov %s5027_s21 }
 0x19a   :  { %13 = sbr.rel (!%p11_p7) target bundleno = 3 (0x3), region = 86 }

// kernel: block_forward.2
= control target key start
LH: loop header
LB: loop body
LE: loop exit
PB: predicated region body
PF: predicated region fallthrough
CT: control target
= control target key end

     0   :  { %s3692_s12 = smov 0   ;;  %s3694_s13 = smov 0   ;;  %s4805_s0 = inlined_call_operand.vmem [shape: bf16[2,18,18,8], index: 0, kind: input, shape index: {}]   ;;  %s4806_s1 = inlined_call_operand.vmem [shape: bf16[9,8,8], index: 1, kind: input, shape index: {}]   ;;  %s4807_s2 = inlined_call_operand.vmem [shape: f32[1,8], index: 2, kind: input, shape index: {}]   ;;  %s4808_s3 = inlined_call_operand.vmem [shape: bf16[2,16,16,8], index: 3, kind: output, shape index: {}]  }
   0x1   :  { %s3696_s14 = smov 0   ;;  %s3698_s15 = smov 0  }
   0x2   :  { %s3700_s16 = smov 0  }
   0x3 LB: > { %s25_s17 = sadd.s32 1, %s3662_s14  ;;  %s32_s18 = sadd.s32 1, %s3666_s15  ;;  %s3670_s16 = sphi %s3700_s16, %s13_s16   ;;  %s3666_s15 = sphi %s3698_s15, %s4907_s15   ;;  %s3662_s14 = sphi %s3696_s14, %s4906_s14   ;;  %s3658_s13 = sphi %s3694_s13, %s4905_s13   ;;  %s3654_s12 = sphi %s3692_s12, %s4904_s12  }
   0x4   : > { %p26_p0 = scmp.ge.s32.totalorder %s25_s17, 2  ;;  %p2894_p1 = scmp.ge.s32.totalorder %s3670_s16, 1 }
   0x5   : > { %p177_p2 = scmp.lt.s32.totalorder %s3670_s16, 5 }
   0x6   : > { %s4909_s17 = smov (%p26_p0, %s25_s17), 0  ;;  %s4911_s18 = smov (!%p26_p0, %s32_s18), %s3666_s15 }
   0x7   : > { %p178_p3 = pnand %p2894_p1, %p177_p2  ;;  %p34_p4 = scmp.ge.s32.totalorder %s4911_s18, 2 }
   0x9   : > { %s4913_s18 = smov (%p34_p4, %s4911_s18), 0  ;;  %181 = sbr.rel (%p178_p3) target bundleno = 407 (0x197), region = 32 }
  0x10   : > { %v278_v0 = vld [vmem:[%s4806_s1] sm:$0xf]  ;;  %vm344_vm0 = vcmask 1043456   ;;  %p216_p5 = scmp.lt.s32.totalorder %s3658_s13, 1  ;;  %v3732_v2 = vld [vmem:[%s4806_s1 + $0x10] sm:$0xf] }
  0x11   : > { %3556 = vmatprep.subr.msk.bf16.mxu1 %vm344_vm0, %v278_v0  ;;  %v346_v1 = vsel %vm344_vm0, %v278_v0, 0  ;;  %4829 = vst [vmem:[#allocation2_spill] sm:$0xff] %v3732_v2  ;;  %v2920_v3 = vld [vmem:[%s4806_s1 + $0x4] sm:$0xf]  ;;  %3560 = vmatprep.subr.msk.bf16.mxu0 %vm344_vm0, %v3732_v2  ;;  %v3743_v4 = vsel %vm344_vm0, %v3732_v2, 0  ;;  %s3150_s25 = smul.u32 96, %s3654_s12 }
  0x12   : > { %3249 = vmatpush3.bf16.msra.mxu1 %v346_v1  ;;  %s4915_s13 = smov (!%p216_p5, %s3658_s13), 1  ;;  %4830 = vst [vmem:[#allocation3_spill] sm:$0xff] %v3743_v4  ;;  %3321 = vmatpush3.bf16.msra.mxu0 %v3743_v4  ;;  %v3030_v5 = vld [vmem:[%s4806_s1 + $0x14] sm:$0xf]  ;;  %v3754_v6 = vld [vmem:[%s4806_s1 + $0x18] sm:$0xf] }
  0x13   : > { %3557 = vmatprep.subr.msk.bf16.mxu1 %vm344_vm0, %v2920_v3  ;;  %s3566_s30 = smul.u32 216, %s4915_s13  ;;  %3562 = vmatprep.subr.msk.bf16.mxu0 %vm344_vm0, %v3030_v5  ;;  %v2945_v7 = vld [vmem:[%s4806_s1 + $0x8] sm:$0xf]  ;;  %v3764_v8 = vld [vmem:[%s4806_s1 + $0x1c] sm:$0xf]  ;;  %vm319_vm1 = vcmask 64512  }
  0x14   : > { %v707_v9 = vsel %vm344_vm0, %v2920_v3, 0  ;;  %v3771_v10 = vsel %vm344_vm0, %v3030_v5, 0  ;;  %v3775_v11 = vsel %vm344_vm0, %v3754_v6, 0  ;;  %v3780_v12 = vsel %vm344_vm0, %v2945_v7, 0  ;;  %v3789_v14 = vld [vmem:[%s4806_s1 + $0xc] sm:$0xf] }
  0x15   : > { %s220_s10 = scalar_lea.vmem %s4805_s0, %s3566_s30  ;;  %v3784_v13 = vsel %vm344_vm0, %v3764_v8, 0  ;;  %v3794_v15 = vld [vmem:[%s4806_s1 + $0x20] sm:$0xf]  ;;  %v3819_v27 = vsel %vm344_vm0, %v3789_v14, 0  ;;  %vm461_vm2 = vsmask.f32 3328 }
  0x16   : > { %s3777_s11 = scalar_lea.vmem %s220_s10, %s3150_s25  ;;  %4831 = vst [vmem:[#allocation4_spill] sm:$0xff] %v3819_v27  ;;  %v3836_v37 = vsel %vm344_vm0, %v3794_v15, 0  ;;  %vm462_vm3 = vsmask.f32 7440  ;;  %vm830_vm5 = vcmask 1042432   ;;  %vm831_vm6 = vcmask 1046532  }
  0x17   : > { %v3797_v16 = vld [vmem:[%s3777_s11] sm:$0xf]  ;;  %v3800_v17 = vld [vmem:[%s3777_s11 + $0x4] sm:$0xf]  ;;  %v3803_v18 = vld [vmem:[%s3777_s11 + $0xc] sm:$0xf] }
  0x18   : > { %v2904_v19 = vcombine.low %v3797_v16, %v3800_v17  ;;  %v465_v20 = vshrl.u32 %v3797_v16, 16  ;;  %v468_v21 = vshll.u32 %v3797_v16, 16  ;;  %v474_v22 = vshll.u32 %v3800_v17, 16  ;;  %v3811_v23 = vld [vmem:[%s3777_s11 + $0x10] sm:$0xf]  ;;  %4832 = vst [vmem:[#allocation5_spill] sm:$0xff] %v3836_v37  ;;  %vm3917_vm4 = vmor %vm461_vm2, %vm462_vm3 }
  0x19   : > { %v478_v24 = vshrl.u32 %v3800_v17, 16  ;;  %v4810_v25 = vrot.slane %v3800_v17, 5  ;;  %v2905_v26 = vcombine.low %v3803_v18, %v3811_v23  ;;  %v489_v31 = vshrl.u32 %v3803_v18, 16  ;;  %v3826_v32 = vld [vmem:[%s3777_s11 + $0x18] sm:$0xf]  ;;  %vm4013_vm7 = vmor %vm830_vm5, %vm831_vm6  ;;  %s2896_s23 = sshll.u32 %s3654_s12, 3 }
  0x1a   : > { %3250 = vmatprep.mubr.msk.bf16.mxu1 %vm319_vm1, %v2904_v19  ;;  %v467_v28 = vrot.slane %v465_v20, 4  ;;  %v470_v29 = vrot.slane %v468_v21, 5  ;;  %v3822_v30 = vrot.slane %v474_v22, 5  ;;  %v492_v34 = vshll.u32 %v3803_v18, 16  ;;  %v3832_v36 = vld [vmem:[%s3777_s11 + $0x1c] sm:$0xf] }
  0x1b   : > { %v480_v33 = vrot.slane %v478_v24, 4  ;;  %3251 = vmatmul.mubr.msk.bf16.vlgmr.msra.gmra.mrb[0].mxu1 %vm319_vm1, %v2905_v26  ;;  %v498_v35 = vshll.u32 %v3811_v23, 16  ;;  %v491_v40 = vrot.slane %v489_v31, 4  ;;  %v502_v41 = vshrl.u32 %v3811_v23, 16  ;;  %v3841_v42 = vld [vmem:[%s3777_s11 + $0x24] sm:$0xf] }
  0x1c   : > { %v471_v38 = vor.u32 %v470_v29, %v467_v28  ;;  %3267 = vmatpush3.bf16.msra.mxu1 %v707_v9  ;;  %v494_v44 = vrot.slane %v492_v34, 5  ;;  %v4809_v46 = vrot.slane %v3811_v23, 5  ;;  %v3848_v47 = vld [vmem:[%s3777_s11 + $0x28] sm:$0xf]  ;;  %v3853_v48 = vrot.slane %v4810_v25, 4  ;;  %p231_p6 = scmp.lt.s32.totalorder %s2896_s23, 15 }
  0x1d   : > { %v481_v43 = vor.u32 %v480_v33, %v3822_v30  ;;  %v3844_v45 = vrot.slane %v498_v35, 5  ;;  %3558 = vmatprep.subr.msk.bf16.mxu1 %vm344_vm0, %v2945_v7  ;;  %v504_v49 = vrot.slane %v502_v41, 4  ;;  %v2906_v51 = vcombine.low %v3826_v32, %v3832_v36  ;;  %v3859_v52 = vld [vmem:[%s3777_s11 + $0xc] sm:$0xf]  ;;  %v3867_v57 = vld [vmem:[%s3777_s11 + $0x10] sm:$0xf] }
  0x1e   : > { %v3861_v53 = vrot.slane %v471_v38, 4  ;;  %v495_v55 = vor.u32 %v494_v44, %v491_v40  ;;  %v3872_v59 = vrot.slane %v4809_v46, 4  ;;  %v2907_v61 = vcombine.low %v3841_v42, %v3848_v47  ;;  %v3879_v62 = vld [vmem:[%s3777_s11 + $0x14] sm:$0x1]  ;;  %v3882_v63 = vld [vmem:[%s3777_s11 + $0x18] sm:$0xf] }
  0x1f   : > { %v3863_v54 = vrot.slane %v481_v43, 4  ;;  %v505_v58 = vor.u32 %v504_v49, %v3844_v45  ;;  %3254 = vmatprep.mubr.msk.bf16.mxu1 %vm319_vm1, %v2906_v51  ;;  %v1266_v5 = vshrl.u32 %v3859_v52, 16  ;;  %v1269_v9 = vshll.u32 %v3859_v52, 16  ;;  %v3894_v21 = vld [vmem:[%s3777_s11 + $0x1c] sm:$0xf]  ;;  %s4917_s23 = smov (!%p231_p6, %s2896_s23), 15 }
  0x20   : > { %v3884_v0 = vrot.slane %v495_v55, 4  ;;  %v1275_v19 = vshll.u32 %v3867_v57, 16  ;;  %v1279_v20 = vshrl.u32 %v3867_v57, 16  ;;  %v1285_v26 = vshll.u32 %v3879_v62, 16  ;;  %v3900_v28 = vld [vmem:[%s3777_s11 + $0x20] sm:$0x1] }
  0x21   : > { %v1268_v24 = vrot.slane %v1266_v5, 4  ;;  %v1290_v29 = vshrl.u32 %v3882_v63, 16  ;;  %v1271_v31 = vrot.slane %v1269_v9, 5  ;;  %v1293_v35 = vshll.u32 %v3882_v63, 16  ;;  %v3911_v5 = vld [vmem:[%s3777_s11 + $0x34] sm:$0xf] }
  0x22   : > { %v1277_v33 = vrot.slane %v1275_v19, 5  ;;  %v1281_v34 = vrot.slane %v1279_v20, 4  ;;  %v1287_v38 = vrot.slane %v1285_v26, 5  ;;  %v1299_v41 = vshll.u32 %v3894_v21, 16  ;;  %v3926_v50 = vld [vmem:[%s3777_s11 + $0x40] sm:$0xf] }
  0x23   : > { %3255 = vmatmul.mubr.msk.bf16.gmra.mrb[4].mxu1 %vm319_vm1, %v2907_v61  ;;  %v1292_v40 = vrot.slane %v1290_v29, 4  ;;  %v1303_v43 = vshrl.u32 %v3894_v21, 16  ;;  %v1272_v44 = vor.u32 %v1271_v31, %v1268_v24  ;;  %v1295_v51 = vrot.slane %v1293_v35, 5  ;;  %v3908_v61 = vld [vmem:[%s3777_s11 + $0x30] sm:$0xf]  ;;  %s2897_s24 = sshll.u32 %s4917_s23, 1 }
  0x24   : > { %v1282_v49 = vor.u32 %v1281_v34, %v1277_v33  ;;  %v1309_v55 = vshll.u32 %v3900_v28, 16  ;;  %v3913_v9 = vrot.slane %v505_v58, 4  ;;  %v1301_v24 = vrot.slane %v1299_v41, 5  ;;  %v3923_v35 = vld [vmem:[%s3777_s11 + $0x3c] sm:$0xf]  ;;  %s2898_s25 = sshll.u32 %s4915_s13, 5 }
  0x25   : > { %v1305_v26 = vrot.slane %v1303_v43, 4  ;;  %v1273_v29 = vrot.slane %v1272_v44, 4  ;;  %v1296_v34 = vor.u32 %v1295_v51, %v1292_v40  ;;  %v2908_v25 = vcombine.low %v3908_v61, %v3911_v5  ;;  %v3932_v22 = vld [vmem:[%s3777_s11 + $0x24] sm:$0xf]  ;;  %v3973_v1 = vld [vmem:[%s3777_s11 + $0x48] sm:$0xf]  ;;  %s238_s28 = sadd.s32 %s2898_s25, %s2897_s24 }
  0x26   : > { %v1283_v31 = vrot.slane %v1282_v49, 4  ;;  %v1311_v46 = vrot.slane %v1309_v55, 5  ;;  %v3940_v49 = vld [vmem:[%s3777_s11 + $0x28] sm:$0xf]  ;;  %v2909_v7 = vcombine.low %v3923_v35, %v3926_v50  ;;  %v3977_v56 = vld [vmem:[%s3777_s11 + $0x4c] sm:$0xf] }
  0x27   : > { %v1306_v58 = vor.u32 %v1305_v26, %v1301_v24  ;;  %v1278_v41 = vsel %vm3917_vm4, %v1273_v29, %v1277_v33  ;;  %v1297_v43 = vrot.slane %v1296_v34, 4  ;;  %3258 = vmatprep.mubr.msk.bf16.mxu1 %vm319_vm1, %v2908_v25  ;;  %v3947_v33 = vld [vmem:[%s3777_s11 + $0x2c] sm:$0x1]  ;;  %v3950_v29 = vld [vmem:[%s3777_s11 + $0x30] sm:$0xf]  ;;  %v1314_v34 = vshrl.u32 %v3932_v22, 16 }
  0x28   : > { %v1288_v40 = vsel %vm3917_vm4, %v1283_v31, %v1287_v38  ;;  %v3968_v31 = vld [vmem:[%s3777_s11 + $0x38] sm:$0x1]  ;;  %v1333_v3 = vshll.u32 %v3947_v33, 16  ;;  %v1341_v60 = vshll.u32 %v3950_v29, 16  ;;  %v585_v37 = vshrl.u32 %v3923_v35, 16  ;;  %s2899_s12 = sshll.u32 %s238_s28, 2 }
  0x29   : > { %v3006_v51 = vcombine.low %v1278_v41, %v1288_v40  ;;  %v1307_v55 = vrot.slane %v1306_v58, 4  ;;  %v1302_v38 = vsel %vm3917_vm4, %v1297_v43, %v1301_v24  ;;  %v3958_v58 = vld [vmem:[%s3777_s11 + $0x34] sm:$0xf]  ;;  %v1317_v40 = vshll.u32 %v3932_v22, 16  ;;  %v3988_v4 = vld [vmem:[%s3777_s11 + $0x58] sm:$0xf]  ;;  %s4744_s30 = scalar_lea.vmem %s4808_s3, %s2899_s12 }
  0x2a   : > { %v1323_v24 = vshll.u32 %v3940_v49, 16  ;;  %v1327_v43 = vshrl.u32 %v3940_v49, 16  ;;  %v1316_v26 = vrot.slane %v1314_v34, 4  ;;  %v1335_v20 = vrot.slane %v1333_v3, 5 }
  0x2b   : > { %3322 = vmatprep.mubr.msk.bf16.mxu0 %vm319_vm1, %v3006_v51  ;;  %v1312_v41 = vsel %vm3917_vm4, %v1307_v55, %v1311_v46  ;;  %3259 = vmatmul.mubr.msk.bf16.gmra.mrb[8].mxu1 %vm319_vm1, %v2909_v7  ;;  %v1338_v51 = vshrl.u32 %v3950_v29, 16  ;;  %v1319_v46 = vrot.slane %v1317_v40, 5  ;;  %v1347_v34 = vshll.u32 %v3958_v58, 16 }
  0x2c   : > { %v3007_v25 = vcombine.low %v1302_v38, %v1312_v41  ;;  %v1325_v7 = vrot.slane %v1323_v24, 5  ;;  %v1329_v55 = vrot.slane %v1327_v43, 4  ;;  %v1351_v41 = vshrl.u32 %v3958_v58, 16  ;;  %v3985_v43 = vld [vmem:[%s3777_s11 + $0x54] sm:$0xf] }
  0x2d   : > { %v1340_v38 = vrot.slane %v1338_v51, 4  ;;  %v1320_v44 = vor.u32 %v1319_v46, %v1316_v26  ;;  %v1343_v40 = vrot.slane %v1341_v60, 5  ;;  %v1357_v24 = vshll.u32 %v3968_v31, 16 }
  0x2e   : > { %3323 = vmatmul.mubr.msk.bf16.vlgmr.msra.gmra.mrb[0].mxu0 %vm319_vm1, %v3007_v25  ;;  %v1330_v39 = vor.u32 %v1329_v55, %v1325_v7  ;;  %v1349_v25 = vrot.slane %v1347_v34, 5  ;;  %v1353_v3 = vrot.slane %v1351_v41, 4  ;;  %v2910_v51 = vcombine.low %v3973_v1, %v3977_v56 }
  0x2f   : > { %3339 = vmatpush3.bf16.msra.mxu0 %v3771_v10  ;;  %v1321_v60 = vrot.slane %v1320_v44, 4  ;;  %v1344_v46 = vor.u32 %v1343_v40, %v1340_v38  ;;  %v598_v55 = vshrl.u32 %v3926_v50, 16  ;;  %v1359_v27 = vrot.slane %v1357_v24, 5  ;;  %v4006_v44 = vld [vmem:[%s3777_s11 + $0x8] sm:$0x1] }
  0x30   : > { %3563 = vmatprep.subr.msk.bf16.mxu0 %vm344_vm0, %v3754_v6  ;;  %v1331_v26 = vrot.slane %v1330_v39, 4  ;;  %v1354_v2 = vor.u32 %v1353_v3, %v1349_v25  ;;  %3262 = vmatprep.mubr.msk.bf16.mxu1 %vm319_vm1, %v2910_v51  ;;  %v2911_v34 = vcombine.low %v3985_v43, %v3988_v4  ;;  %v3022_v51 = vrot.slane %v3859_v52, 9 }
  0x31   : > { %v1326_v41 = vsel %vm3917_vm4, %v1321_v60, %v1325_v7  ;;  %v1345_v10 = vrot.slane %v1344_v46, 4  ;;  %v1633_v60 = vrot.slane %v3867_v57, 5  ;;  %v4735_v7 = vld [vmem:[%s4807_s2] ss:$0 sm:$0xff]  ;;  %vm2731_vm8 = vcmask 60416  }
  0x32   : > { %v1336_v6 = vsel %vm3917_vm4, %v1331_v26, %v1335_v20  ;;  %v1355_v40 = vrot.slane %v1354_v2, 4  ;;  %v3023_v2 = vrot.slane %v3882_v63, 9  ;;  %v4023_v26 = vld [vmem:[%s3777_s11 + $0x14] sm:$0x1] }
  0x33   : > { %v3008_v38 = vcombine.low %v1326_v41, %v1336_v6  ;;  %3263 = vmatmul.mubr.msk.bf16.gmra.mrb[12].mxu1 %vm319_vm1, %v2911_v34  ;;  %v1350_v20 = vsel %vm3917_vm4, %v1345_v10, %v1349_v25  ;;  %v4837_v34 = vrot.slane %v3894_v21, 5  ;;  %v477_v25 = vsel %vm3917_vm4, %v3861_v53, %v3822_v30 }
  0x34   : > { %v1360_v46 = vsel %vm3917_vm4, %v1355_v40, %v1359_v27  ;;  %v484_v10 = vshll.u32 %v4006_v44, 16  ;;  %v1634_v63 = vsel %vm4013_vm7, %v3022_v51, %v1633_v60  ;;  %v1635_v3 = vrot.slane %v1633_v60, 4 }
  0x35   : > { %3326 = vmatprep.mubr.msk.bf16.mxu0 %vm319_vm1, %v3008_v38  ;;  %v1642_v41 = vrot.slane %v4837_v34, 4  ;;  %v3009_v6 = vcombine.low %v1350_v20, %v1360_v46  ;;  %v4838_v38 = vmov %v4837_v34  ;;  %v4839_v40 = vrot.slane %v3900_v28, 5 }
  0x36   : > { %v1641_v27 = vsel %vm4013_vm7, %v3023_v2, %v4838_v38  ;;  %v486_v24 = vrot.slane %v484_v10, 5  ;;  %v501_v30 = vsel %vm3917_vm4, %v3884_v0, %v3844_v45  ;;  %v508_v53 = vshll.u32 %v4023_v26, 16 }
  0x37   : > { %v1644_v34 = vsel %vm4013_vm7, %v1642_v41, %v4839_v40  ;;  %3327 = vmatmul.mubr.msk.bf16.gmra.mrb[4].mxu0 %vm319_vm1, %v3009_v6  ;;  %v4840_v20 = vrot.slane %v3879_v62, 5  ;;  %v3024_v60 = vrot.slane %v3932_v22, 9  ;;  %v1647_v2 = vrot.slane %v3940_v49, 5 }
  0x38   : > { %v3032_v28 = vcombine.low %v1641_v27, %v1644_v34  ;;  %v487_v45 = vsel %vm3917_vm4, %v3863_v54, %v486_v24  ;;  %v510_v0 = vrot.slane %v508_v53, 5  ;;  %v1650_v41 = vrot.slane %v3947_v33, 5  ;;  %v4071_v33 = vld [vmem:[%s3777_s11 + $0x20] sm:$0x1] }
  0x39   : > { %v1637_v51 = vsel %vm4013_vm7, %v1635_v3, %v4840_v20  ;;  %v2921_v10 = vcombine.low %v477_v25, %v487_v45  ;;  %v1648_v62 = vsel %vm4013_vm7, %v3024_v60, %v1647_v2  ;;  %v1649_v6 = vrot.slane %v1647_v2, 4 }
  0x3a   : > { %v3031_v46 = vcombine.low %v1634_v63, %v1637_v51  ;;  %v3025_v3 = vrot.slane %v3950_v29, 9  ;;  %v511_v63 = vsel %vm3917_vm4, %v3913_v9, %v510_v0  ;;  %v1654_v54 = vrot.slane %v3958_v58, 5 }
  0x3b   : > { %v1657_v24 = vrot.slane %v3968_v31, 5  ;;  %v4841_v25 = vshrl.u32 %v3826_v32, 16  ;;  %3268 = vmatprep.mubr.msk.bf16.mxu1 %vm319_vm1, %v2921_v10  ;;  %v2922_v27 = vcombine.low %v501_v30, %v511_v63  ;;  %v1651_v40 = vsel %vm4013_vm7, %v1649_v6, %v1650_v41  ;;  %v4089_v30 = vld [vmem:[%s3777_s11 + $0x3c] sm:$0xf]  ;;  %v4096_v6 = vld [vmem:[%s3777_s11 + $0x40] sm:$0xf] }
  0x3c   : > { %3340 = vmatprep.mubr.msk.bf16.mxu0 %vm319_vm1, %v3031_v46  ;;  %v4842_v34 = vshll.u32 %v3826_v32, 16  ;;  %v522_v9 = vshll.u32 %v3832_v36, 16  ;;  %v3033_v20 = vcombine.low %v1648_v62, %v1651_v40  ;;  %v1655_v31 = vsel %vm4013_vm7, %v3025_v3, %v1654_v54  ;;  %v4086_v46 = vld [vmem:[%s3777_s11 + $0x2c] sm:$0x1]  ;;  %4844 = vst [vmem:[#allocation6_spill] sm:$0xff] %v4089_v30 }
  0x3d   : > { %v515_v38 = vrot.slane %v4841_v25, 4  ;;  %v1656_v51 = vrot.slane %v1654_v54, 4  ;;  %v4843_v60 = vshrl.u32 %v3832_v36, 16  ;;  %3269 = vmatmul.mubr.msk.bf16.vlgmr.msra.gmra.mrb[0].mxu1 %vm319_vm1, %v2922_v27  ;;  %v532_v41 = vshll.u32 %v4071_v33, 16  ;;  %v4107_v40 = vld [vmem:[%s3777_s11 + $0x44] sm:$0x1] }
  0x3e   : > { %v518_v53 = vrot.slane %v4842_v34, 5  ;;  %v524_v0 = vrot.slane %v522_v9, 5  ;;  %v4845_v10 = vshrl.u32 %v3841_v42, 16  ;;  %3285 = vmatpush3.bf16.msra.mxu1 %v3780_v12  ;;  %v4846_v63 = vshll.u32 %v3841_v42, 16  ;;  %4848 = vst [vmem:[#allocation7_spill] sm:$0xff] %v4107_v40 }
  0x3f   : > { %v528_v2 = vrot.slane %v4843_v60, 4  ;;  %v1658_v3 = vsel %vm4013_vm7, %v1656_v51, %v1657_v24  ;;  %v546_v25 = vshll.u32 %v3848_v47, 16  ;;  %3341 = vmatmul.mubr.msk.bf16.vlgmr.msra.gmra.mrb[0].mxu0 %vm319_vm1, %v3032_v28  ;;  %v534_v60 = vrot.slane %v532_v41, 5  ;;  %3559 = vmatprep.subr.msk.bf16.mxu1 %vm344_vm0, %v3789_v14  ;;  %v4121_v14 = vld [vmem:[%s3777_s11 + $0x48] sm:$0xf] }
  0x40   : > { %v519_v45 = vor.u32 %v518_v53, %v515_v38  ;;  %v539_v62 = vrot.slane %v4845_v10, 4  ;;  %v542_v54 = vrot.slane %v4846_v63, 5  ;;  %v4847_v38 = vshrl.u32 %v3848_v47, 16  ;;  %3357 = vmatpush3.bf16.msra.mxu0 %v3775_v11  ;;  %3344 = vmatprep.mubr.msk.bf16.mxu0 %vm319_vm1, %v3033_v20  ;;  %4849 = vst [vmem:[#allocation8_spill] sm:$0xff] %v4121_v14 }
  0x41   : > { %v3034_v34 = vcombine.low %v1655_v31, %v1658_v3  ;;  %v529_v9 = vor.u32 %v528_v2, %v524_v0  ;;  %v548_v24 = vrot.slane %v546_v25, 5  ;;  %v556_v51 = vshll.u32 %v4086_v46, 16  ;;  %3564 = vmatprep.subr.msk.bf16.mxu0 %vm344_vm0, %v3764_v8 }
  0x42   : > { %v552_v27 = vrot.slane %v4847_v38, 4  ;;  %v520_v53 = vrot.slane %v519_v45, 4  ;;  %v543_v12 = vor.u32 %v542_v54, %v539_v62  ;;  %v3026_v10 = vrot.slane %v4089_v30, 9 }
  0x43   : > { %v530_v31 = vrot.slane %v529_v9, 4  ;;  %v1661_v2 = vrot.slane %v4096_v6, 5  ;;  %v1664_v45 = vrot.slane %v4107_v40, 5  ;;  %v558_v41 = vrot.slane %v556_v51, 5  ;;  %v4142_v51 = vld [vmem:[%s3777_s11 + $0x50] sm:$0x1] }
  0x44   : > { %v525_v28 = vsel %vm3917_vm4, %v520_v53, %v524_v0  ;;  %v544_v11 = vrot.slane %v543_v12, 4  ;;  %v553_v20 = vor.u32 %v552_v27, %v548_v24  ;;  %v1386_v62 = vshrl.u32 %v4121_v14, 16  ;;  %v4135_v27 = vld [vmem:[%s3777_s11 + $0x4c] sm:$0xf] }
  0x45   : > { %v535_v0 = vsel %vm3917_vm4, %v530_v31, %v534_v60  ;;  %v1662_v3 = vsel %vm4013_vm7, %v3026_v10, %v1661_v2  ;;  %v1663_v63 = vrot.slane %v1661_v2, 4  ;;  %v1389_v54 = vshll.u32 %v4121_v14, 16 }
  0x46   : > { %v2923_v38 = vcombine.low %v525_v28, %v535_v0  ;;  %v549_v8 = vsel %vm3917_vm4, %v544_v11, %v548_v24  ;;  %v554_v53 = vrot.slane %v553_v20, 4  ;;  %v4144_v10 = vrot.slane %v1386_v62, 4  ;;  %v4157_v0 = vld [vmem:[%s3777_s11 + $0x38] sm:$0x1]  ;;  %v4176_v20 = vld [vmem:[%s3777_s11 + $0x54] sm:$0xf] }
  0x47   : > { %v1665_v12 = vsel %vm4013_vm7, %v1663_v63, %v1664_v45  ;;  %v4149_v31 = vrot.slane %v1389_v54, 5  ;;  %v3027_v2 = vrot.slane %v4121_v14, 9  ;;  %3345 = vmatmul.mubr.msk.bf16.gmra.mrb[4].mxu0 %vm319_vm1, %v3034_v34  ;;  %v1668_v62 = vrot.slane %v4135_v27, 5  ;;  %4855 = vst [vmem:[#allocation11_spill] sm:$0xff] %v4176_v20 }
  0x48   : > { %4850 = vst [vmem:[#allocation9_spill] sm:$0xff] %v4144_v10  ;;  %3272 = vmatprep.mubr.msk.bf16.mxu1 %vm319_vm1, %v2923_v38  ;;  %v559_v24 = vsel %vm3917_vm4, %v554_v53, %v558_v41  ;;  %v3035_v28 = vcombine.low %v1662_v3, %v1665_v12  ;;  %v1671_v3 = vrot.slane %v4142_v51, 5  ;;  %v4852_v63 = vshrl.u32 %v3908_v61, 16 }
  0x49   : > { %4851 = vst [vmem:[#allocation10_spill] sm:$0xff] %v4149_v31  ;;  %v2924_v11 = vcombine.low %v549_v8, %v559_v24  ;;  %v4853_v54 = vshll.u32 %v3908_v61, 16  ;;  %v4167_v8 = vld [vmem:[%s3777_s11 + $0x44] sm:$0x1]  ;;  %v1669_v53 = vsel %vm4013_vm7, %v3027_v2, %v1668_v62  ;;  %v1670_v12 = vrot.slane %v1668_v62, 4 }
  0x4a   : > { %3348 = vmatprep.mubr.msk.bf16.mxu0 %vm319_vm1, %v3035_v28  ;;  %v563_v34 = vrot.slane %v4852_v63, 4  ;;  %v570_v24 = vshll.u32 %v3911_v5, 16  ;;  %v4854_v28 = vshrl.u32 %v3911_v5, 16  ;;  %v587_v45 = vrot.slane %v585_v37, 4  ;;  %v4184_v2 = vld [vmem:[%s3777_s11 + $0x58] sm:$0xf] }
  0x4b   : > { %v566_v38 = vrot.slane %v4853_v54, 5  ;;  %3273 = vmatmul.mubr.msk.bf16.gmra.mrb[4].mxu1 %vm319_vm1, %v2924_v11  ;;  %v580_v54 = vshll.u32 %v4157_v0, 16  ;;  %v4856_v11 = vshll.u32 %v3923_v35, 16  ;;  %4857 = vst [vmem:[#allocation12_spill] sm:$0xff] %v4184_v2  ;;  %v1672_v62 = vsel %vm4013_vm7, %v1670_v12, %v1671_v3  ;;  %v4200_v12 = vld [vmem:[%s3777_s11 + $0x64] sm:$0xf] }
  0x4c   : > { %v576_v41 = vrot.slane %v4854_v28, 4  ;;  %v572_v9 = vrot.slane %v570_v24, 5  ;;  %v594_v28 = vshll.u32 %v3926_v50, 16  ;;  %v3036_v25 = vcombine.low %v1669_v53, %v1672_v62  ;;  %4860 = vst [vmem:[#allocation15_spill] sm:$0xff] %v4200_v12 }
  0x4d   : > { %v567_v63 = vor.u32 %v566_v38, %v563_v34  ;;  %v590_v60 = vrot.slane %v4856_v11, 5  ;;  %v600_v34 = vrot.slane %v598_v55, 4  ;;  %v4192_v38 = vld [vmem:[%s3777_s11 + $0x5c] sm:$0x1]  ;;  %v582_v39 = vrot.slane %v580_v54, 5 }
  0x4e   : > { %4858 = vst [vmem:[#allocation13_spill] sm:$0xff] %v4192_v38  ;;  %v4195_v11 = vld [vmem:[%s3777_s11 + $0x60] sm:$0xf]  ;;  %v577_v10 = vor.u32 %v576_v41, %v572_v9  ;;  %v596_v40 = vrot.slane %v594_v28, 5  ;;  %v604_v14 = vshll.u32 %v4167_v8, 16  ;;  %v3028_v3 = vrot.slane %v4176_v20, 9 }
  0x4f   : > { %v568_v37 = vrot.slane %v567_v63, 4  ;;  %v591_v31 = vor.u32 %v590_v60, %v587_v45  ;;  %4859 = vst [vmem:[#allocation14_spill] sm:$0xff] %v4195_v11  ;;  %v1675_v53 = vrot.slane %v4184_v2, 5  ;;  %v1678_v63 = vrot.slane %v4192_v38, 5  ;;  %v4207_v60 = vld [vmem:[%s3777_s11 + $0x68] sm:$0x1]  ;;  %3349 = vmatmul.mubr.msk.bf16.gmra.mrb[8].mxu0 %vm319_vm1, %v3036_v25 }
  0x50   : > { %4861 = vst [vmem:[#allocation16_spill] sm:$0xff] %v4207_v60  ;;  %v578_v45 = vrot.slane %v577_v10, 4  ;;  %v601_v41 = vor.u32 %v600_v34, %v596_v40  ;;  %v606_v54 = vrot.slane %v604_v14, 5  ;;  %v3029_v62 = vrot.slane %v4195_v11, 9  ;;  %v4220_v10 = vld [vmem:[%s3777_s11 + $0x50] sm:$0x1] }
  0x51   : > { %v573_v55 = vsel %vm3917_vm4, %v568_v37, %v572_v9  ;;  %v592_v24 = vrot.slane %v591_v31, 4  ;;  %v1676_v9 = vsel %vm4013_vm7, %v3028_v3, %v1675_v53  ;;  %v1677_v31 = vrot.slane %v1675_v53, 4 }
  0x52   : > { %v1682_v37 = vrot.slane %v4200_v12, 5  ;;  %v583_v38 = vsel %vm3917_vm4, %v578_v45, %v582_v39  ;;  %v602_v20 = vrot.slane %v601_v41, 4  ;;  %v1685_v25 = vrot.slane %v4207_v60, 5  ;;  %v4234_v12 = vld [vmem:[%s3777_s11 + $0x5c] sm:$0x1] }
  0x53   : > { %v597_v28 = vsel %vm3917_vm4, %v592_v24, %v596_v40  ;;  %v4862_v14 = vshrl.u32 %v3973_v1, 16  ;;  %v2925_v40 = vcombine.low %v573_v55, %v583_v38  ;;  %v1679_v3 = vsel %vm4013_vm7, %v1677_v31, %v1678_v63 }
  0x54   : > { %v1683_v24 = vsel %vm4013_vm7, %v3029_v62, %v1682_v37  ;;  %v1684_v53 = vrot.slane %v1682_v37, 4  ;;  %v607_v39 = vsel %vm3917_vm4, %v602_v20, %v606_v54  ;;  %v3037_v45 = vcombine.low %v1676_v9, %v1679_v3  ;;  %v4243_v20 = vld [vmem:[%s3777_s11 + $0x18] sm:$0xf]  ;;  %v4246_v54 = vld [vmem:[%s3777_s11 + $0x1c] sm:$0xf] }
  0x55   : > { %v611_v34 = vrot.slane %v4862_v14, 4  ;;  %v4863_v41 = vshll.u32 %v3973_v1, 16  ;;  %v618_v11 = vshll.u32 %v3977_v56, 16  ;;  %3276 = vmatprep.mubr.msk.bf16.mxu1 %vm319_vm1, %v2925_v40  ;;  %v2926_v38 = vcombine.low %v597_v28, %v607_v39 }
  0x56   : > { %v1686_v55 = vsel %vm4013_vm7, %v1684_v53, %v1685_v25  ;;  %v4864_v63 = vshrl.u32 %v3977_v56, 16  ;;  %v628_v31 = vshll.u32 %v4220_v10, 16  ;;  %3352 = vmatprep.mubr.msk.bf16.mxu0 %vm319_vm1, %v3037_v45  ;;  %v4865_v28 = vshrl.u32 %v3985_v43, 16  ;;  %v4262_v45 = vld [vmem:[%s3777_s11 + $0x24] sm:$0xf] }
  0x57   : > { %v614_v60 = vrot.slane %v4863_v41, 5  ;;  %v3038_v9 = vcombine.low %v1683_v24, %v1686_v55  ;;  %v620_v14 = vrot.slane %v618_v11, 5  ;;  %3277 = vmatmul.mubr.msk.bf16.gmra.mrb[8].mxu1 %vm319_vm1, %v2926_v38  ;;  %v4866_v3 = vshll.u32 %v3985_v43, 16 }
  0x58   : > { %v624_v62 = vrot.slane %v4864_v63, 4  ;;  %v635_v40 = vrot.slane %v4865_v28, 4  ;;  %v630_v25 = vrot.slane %v628_v31, 5  ;;  %v642_v39 = vshll.u32 %v3988_v4, 16 }
  0x59   : > { %v615_v37 = vor.u32 %v614_v60, %v611_v34  ;;  %v638_v53 = vrot.slane %v4866_v3, 5  ;;  %v4867_v41 = vshrl.u32 %v3988_v4, 16  ;;  %3353 = vmatmul.mubr.msk.bf16.gmra.mrb[12].mxu0 %vm319_vm1, %v3038_v9  ;;  %v652_v34 = vshll.u32 %v4234_v12, 16 }
  0x5a   : > { %v625_v11 = vor.u32 %v624_v62, %v620_v14  ;;  %v3074_v24 = vcombine.low %v4243_v20, %v4246_v54  ;;  %v4868_v38 = vshll.u32 %v4135_v27, 16  ;;  %v4870_v31 = vshrl.u32 %v4135_v27, 16 }
  0x5b   : > { %v648_v63 = vrot.slane %v4867_v41, 4  ;;  %v616_v60 = vrot.slane %v615_v37, 4  ;;  %v639_v9 = vor.u32 %v638_v53, %v635_v40  ;;  %v644_v3 = vrot.slane %v642_v39, 5  ;;  %v4273_v37 = vld [vmem:[%s3777_s11 + $0x28] sm:$0xf] }
  0x5c   : > { %v4266_v55 = vrot.slane %v4868_v38, 5  ;;  %v4270_v28 = vrot.slane %v4870_v31, 4  ;;  %v4872_v62 = vshll.u32 %v4142_v51, 16  ;;  %v626_v30 = vrot.slane %v625_v11, 4  ;;  %3358 = vmatprep.mubr.msk.bf16.mxu0 %vm319_vm1, %v3074_v24  ;;  %v4288_v51 = vld [vmem:[%s3777_s11 + $0x34] sm:$0xf] }
  0x5d   : > { %v621_v2 = vsel %vm3917_vm4, %v616_v60, %v620_v14  ;;  %v2064_v38 = vshrl.u32 %v4243_v20, 16  ;;  %v640_v31 = vrot.slane %v639_v9, 4  ;;  %v654_v40 = vrot.slane %v652_v34, 5 }
  0x5e   : > { %4869 = vst [vmem:[#allocation17_spill] sm:$0xff] %v4266_v55  ;;  %4871 = vst [vmem:[#allocation18_spill] sm:$0xff] %v4270_v28  ;;  %v4277_v41 = vrot.slane %v4872_v62, 5  ;;  %v4284_v55 = vld [vmem:[%s3777_s11 + $0x30] sm:$0xf]  ;;  %v649_v28 = vor.u32 %v648_v63, %v644_v3  ;;  %v631_v39 = vsel %vm3917_vm4, %v626_v30, %v630_v25  ;;  %v3075_v60 = vcombine.low %v4262_v45, %v4273_v37 }
  0x5f   : > { %v4873_v11 = vrot.slane %v3800_v17, 5  ;;  %v4874_v24 = vrot.slane %v3797_v16, 9  ;;  %v2927_v34 = vcombine.low %v621_v2, %v631_v39  ;;  %v645_v9 = vsel %vm3917_vm4, %v640_v31, %v644_v3  ;;  %v4317_v39 = vld [vmem:[%s3777_s11 + $0x3c] sm:$0xf] }
  0x60   : > { %v650_v62 = vrot.slane %v649_v28, 4  ;;  %v838_v53 = vrot.slane %v4006_v44, 5  ;;  %v2088_v30 = vshrl.u32 %v4262_v45, 16  ;;  %v4875_v25 = vrot.slane %v3811_v23, 5  ;;  %v4320_v28 = vld [vmem:[%s3777_s11 + $0x40] sm:$0xf] }
  0x61   : > { %v836_v63 = vsel %vm4013_vm7, %v4874_v24, %v4873_v11  ;;  %v4876_v14 = vrot.slane %v3803_v18, 9  ;;  %v845_v16 = vrot.slane %v4023_v26, 5  ;;  %v3076_v2 = vcombine.low %v4284_v55, %v4288_v51  ;;  %3280 = vmatprep.mubr.msk.bf16.mxu1 %vm319_vm1, %v2927_v34  ;;  %3359 = vmatmul.mubr.msk.bf16.vlgmr.msra.gmra.mrb[0].mxu0 %vm319_vm1, %v3075_v60  ;;  %v4343_v60 = vld [vmem:[%s3777_s11 + $0x48] sm:$0xf] }
  0x62   : > { %v655_v23 = vsel %vm3917_vm4, %v650_v62, %v654_v40  ;;  %v2091_v18 = vshll.u32 %v4262_v45, 16  ;;  %v2101_v44 = vshrl.u32 %v4273_v37, 16  ;;  %v839_v26 = vsel %vm4013_vm7, %v3853_v48, %v838_v53  ;;  %3375 = vmatpush3.bf16.msra.mxu0 %v3784_v13  ;;  %v4354_v62 = vld [vmem:[%s3777_s11 + $0x54] sm:$0xf] }
  0x63   : > { %v4311_v17 = vsel %vm4013_vm7, %v4876_v14, %v4875_v25  ;;  %v2928_v3 = vcombine.low %v645_v9, %v655_v23  ;;  %v2946_v31 = vcombine.low %v836_v63, %v839_v26  ;;  %v846_v14 = vsel %vm4013_vm7, %v3872_v59, %v845_v16  ;;  %3362 = vmatprep.mubr.msk.bf16.mxu0 %vm319_vm1, %v3076_v2  ;;  %v4346_v63 = vld [vmem:[%s3777_s11 + $0x4c] sm:$0xf] }
  0x64   : > { %v2112_v40 = vshrl.u32 %v4284_v55, 16  ;;  %v2947_v11 = vcombine.low %v4311_v17, %v846_v14  ;;  %v2115_v24 = vshll.u32 %v4284_v55, 16  ;;  %v2125_v48 = vshrl.u32 %v4288_v51, 16  ;;  %3565 = vmatprep.subr.msk.bf16.mxu0 %vm344_vm0, %v3794_v15 }
  0x65   : > { %v3077_v53 = vcombine.low %v4317_v39, %v4320_v28  ;;  %3281 = vmatmul.mubr.msk.bf16.gmra.mrb[12].mxu1 %vm319_vm1, %v2928_v3  ;;  %v2939_v13 = vrot.slane %v3826_v32, 9  ;;  %v849_v59 = vrot.slane %v3832_v36, 5  ;;  %v852_v34 = vrot.slane %v4071_v33, 5  ;;  %v4364_v36 = vld [vmem:[%s3777_s11 + $0x58] sm:$0xf] }
  0x66   : > { %v2940_v9 = vrot.slane %v3841_v42, 9  ;;  %3286 = vmatprep.mubr.msk.bf16.mxu1 %vm319_vm1, %v2946_v31  ;;  %v2136_v25 = vshrl.u32 %v4317_v39, 16  ;;  %v2139_v17 = vshll.u32 %v4317_v39, 16  ;;  %v856_v16 = vrot.slane %v3848_v47, 5  ;;  %v4386_v33 = vld [vmem:[%s3777_s11 + $0x60] sm:$0xf] }
  0x67   : > { %v859_v32 = vrot.slane %v4086_v46, 5  ;;  %v850_v42 = vsel %vm4013_vm7, %v2939_v13, %v849_v59  ;;  %v851_v15 = vrot.slane %v849_v59, 4  ;;  %v3078_v2 = vcombine.low %v4343_v60, %v4346_v63 }
  0x68   : > { %v858_v23 = vrot.slane %v856_v16, 4  ;;  %v857_v31 = vsel %vm4013_vm7, %v2940_v9, %v856_v16  ;;  %v3079_v14 = vcombine.low %v4354_v62, %v4364_v36  ;;  %v2941_v13 = vrot.slane %v3908_v61, 9 }
  0x69   : > { %v853_v3 = vsel %vm4013_vm7, %v851_v15, %v852_v34  ;;  %v863_v47 = vrot.slane %v3911_v5, 5  ;;  %v866_v46 = vrot.slane %v4157_v0, 5  ;;  %v4389_v34 = vld [vmem:[%s3777_s11 + $0x64] sm:$0xf]  ;;  %3363 = vmatmul.mubr.msk.bf16.gmra.mrb[4].mxu0 %vm319_vm1, %v3077_v53  ;;  %v2184_v9 = vshrl.u32 %v4354_v62, 16 }
  0x6a   : > { %v2948_v59 = vcombine.low %v850_v42, %v853_v3  ;;  %v860_v26 = vsel %vm4013_vm7, %v858_v23, %v859_v32  ;;  %v2942_v16 = vrot.slane %v3923_v35, 9  ;;  %v870_v61 = vrot.slane %v3926_v50, 5  ;;  %v4397_v32 = vld [vmem:[%s3777_s11 + $0x6c] sm:$0xf]  ;;  %3366 = vmatprep.mubr.msk.bf16.mxu0 %vm319_vm1, %v3078_v2  ;;  %v4405_v23 = vld [vmem:[%s3777_s11 + $0x70] sm:$0xf] }
  0x6b   : > { %v873_v42 = vrot.slane %v4167_v8, 5  ;;  %v2187_v5 = vshll.u32 %v4354_v62, 16  ;;  %v2197_v0 = vshrl.u32 %v4364_v36, 16  ;;  %v864_v15 = vsel %vm4013_vm7, %v2941_v13, %v863_v47  ;;  %v4877_v3 = vld [vmem:[#allocation4_spill] sm:$0xff] }
  0x6c   : > { %v865_v53 = vrot.slane %v863_v47, 4  ;;  %v2949_v35 = vcombine.low %v857_v31, %v860_v26  ;;  %v4410_v50 = vsel %vm4013_vm7, %v2942_v16, %v870_v61  ;;  %v872_v8 = vrot.slane %v870_v61, 4 }
  0x6d   : > { %3287 = vmatmul.mubr.msk.bf16.vlgmr.msra.gmra.mrb[0].mxu1 %vm319_vm1, %v2947_v11  ;;  %v3080_v2 = vcombine.low %v4386_v33, %v4389_v34  ;;  %v3081_v61 = vcombine.low %v4397_v32, %v4405_v23  ;;  %v880_v26 = vrot.slane %v4220_v10, 5  ;;  %v2073_v10 = vshll.u32 %v4246_v54, 16 }
  0x6e   : > { %3290 = vmatprep.mubr.msk.bf16.mxu1 %vm319_vm1, %v2948_v59  ;;  %3303 = vmatpush3.bf16.msra.mxu1 %v4877_v3  ;;  %v867_v47 = vsel %vm4013_vm7, %v865_v53, %v866_v46  ;;  %v4423_v16 = vsel %vm4013_vm7, %v872_v8, %v873_v42  ;;  %v2943_v59 = vrot.slane %v3973_v1, 9  ;;  %v4878_v3 = vld [vmem:[#allocation2_spill] sm:$0xff]  ;;  %v877_v53 = vrot.slane %v3977_v56, 5 }
  0x6f   : > { %v2950_v31 = vcombine.low %v864_v15, %v867_v47  ;;  %3561 = vmatprep.subr.msk.bf16.mxu1 %vm344_vm0, %v4878_v3  ;;  %v2951_v46 = vcombine.low %v4410_v50, %v4423_v16  ;;  %v2944_v15 = vrot.slane %v3985_v43, 9  ;;  %v4436_v47 = vld [vmem:[%s3777_s11 + $0x20] sm:$0x1]  ;;  %v884_v42 = vrot.slane %v3988_v4, 5 }
  0x70   : > { %v887_v8 = vrot.slane %v4234_v12, 5  ;;  %v2066_v1 = vrot.slane %v2064_v38, 4  ;;  %v4879_v3 = vshll.u32 %v4243_v20, 16  ;;  %v878_v56 = vsel %vm4013_vm7, %v2943_v59, %v877_v53 }
  0x71   : > { %v879_v50 = vrot.slane %v877_v53, 4  ;;  %v4880_v43 = vshrl.u32 %v4246_v54, 16  ;;  %3367 = vmatmul.mubr.msk.bf16.gmra.mrb[8].mxu0 %vm319_vm1, %v3079_v14  ;;  %v4452_v4 = vsel %vm4013_vm7, %v2944_v15, %v884_v42  ;;  %v886_v12 = vrot.slane %v884_v42, 4 }
  0x72   : > { %v2069_v11 = vrot.slane %v4879_v3, 5  ;;  %v2083_v13 = vshll.u32 %v4436_v47, 16  ;;  %3370 = vmatprep.mubr.msk.bf16.mxu0 %vm319_vm1, %v3080_v2  ;;  %v2075_v53 = vrot.slane %v2073_v10, 5  ;;  %v4459_v3 = vld [vmem:[%s3777_s11 + $0x2c] sm:$0x1]  ;;  %v2093_v14 = vrot.slane %v2091_v18, 5 }
  0x73   : > { %v2079_v16 = vrot.slane %v4880_v43, 4  ;;  %v881_v59 = vsel %vm4013_vm7, %v879_v50, %v880_v26  ;;  %v2090_v43 = vrot.slane %v2088_v30, 4  ;;  %v2097_v50 = vshll.u32 %v4273_v37, 16 }
  0x74   : > { %v2070_v38 = vor.u32 %v2069_v11, %v2066_v1  ;;  %v2952_v15 = vcombine.low %v878_v56, %v881_v59  ;;  %v4468_v11 = vsel %vm4013_vm7, %v886_v12, %v887_v8  ;;  %v2085_v42 = vrot.slane %v2083_v13, 5 }
  0x75   : > { %3291 = vmatmul.mubr.msk.bf16.gmra.mrb[4].mxu1 %vm319_vm1, %v2949_v35  ;;  %v2953_v26 = vcombine.low %v4452_v4, %v4468_v11  ;;  %v2080_v1 = vor.u32 %v2079_v16, %v2075_v53  ;;  %v2094_v30 = vor.u32 %v2093_v14, %v2090_v43  ;;  %v2232_v18 = vshrl.u32 %v4397_v32, 16  ;;  %v4482_v16 = vld [vmem:[%s3777_s11 + $0x38] sm:$0x1] }
  0x76   : > { %v2071_v2 = vrot.slane %v2070_v38, 4  ;;  %3294 = vmatprep.mubr.msk.bf16.mxu1 %vm319_vm1, %v2950_v31  ;;  %v2103_v8 = vrot.slane %v2101_v44, 4  ;;  %v2107_v56 = vshll.u32 %v4459_v3, 16  ;;  %v2099_v12 = vrot.slane %v2097_v50, 5 }
  0x77   : > { %v2081_v31 = vrot.slane %v2080_v1, 4  ;;  %v2095_v10 = vrot.slane %v2094_v30, 4  ;;  %v2114_v59 = vrot.slane %v2112_v40, 4  ;;  %v2117_v43 = vrot.slane %v2115_v24, 5  ;;  %v4498_v24 = vld [vmem:[%s3777_s11 + $0x44] sm:$0x1] }
  0x78   : > { %v2076_v13 = vsel %vm3917_vm4, %v2071_v2, %v2075_v53  ;;  %v2109_v38 = vrot.slane %v2107_v56, 5  ;;  %v2121_v44 = vshll.u32 %v4288_v51, 16  ;;  %v2104_v2 = vor.u32 %v2103_v8, %v2099_v12 }
  0x79   : > { %v2086_v14 = vsel %vm3917_vm4, %v2081_v31, %v2085_v42  ;;  %v2100_v53 = vsel %vm3917_vm4, %v2095_v10, %v2099_v12  ;;  %v2127_v1 = vrot.slane %v2125_v48, 4  ;;  %3371 = vmatmul.mubr.msk.bf16.gmra.mrb[12].mxu0 %vm319_vm1, %v3081_v61  ;;  %v2118_v50 = vor.u32 %v2117_v43, %v2114_v59 }
  0x7a   : > { %v3091_v30 = vcombine.low %v2076_v13, %v2086_v14  ;;  %v2123_v40 = vrot.slane %v2121_v44, 5  ;;  %v2131_v56 = vshll.u32 %v4482_v16, 16  ;;  %v2105_v35 = vrot.slane %v2104_v2, 4 }
  0x7b   : > { %v2138_v42 = vrot.slane %v2136_v25, 4  ;;  %v2141_v31 = vrot.slane %v2139_v17, 5  ;;  %v2145_v8 = vshll.u32 %v4320_v28, 16  ;;  %v2119_v48 = vrot.slane %v2118_v50, 4 }
  0x7c   : > { %3376 = vmatprep.mubr.msk.bf16.mxu0 %vm319_vm1, %v3091_v30  ;;  %v2128_v61 = vor.u32 %v2127_v1, %v2123_v40  ;;  %v2133_v13 = vrot.slane %v2131_v56, 5  ;;  %v4881_v10 = vshrl.u32 %v4320_v28, 16  ;;  %v2110_v25 = vsel %vm3917_vm4, %v2105_v35, %v2109_v38  ;;  %v4519_v56 = vld [vmem:[%s3777_s11 + $0x50] sm:$0x1] }
  0x7d   : > { %3295 = vmatmul.mubr.msk.bf16.gmra.mrb[8].mxu1 %vm319_vm1, %v2951_v46  ;;  %v2142_v59 = vor.u32 %v2141_v31, %v2138_v42  ;;  %v2147_v17 = vrot.slane %v2145_v8, 5  ;;  %v2155_v43 = vshll.u32 %v4498_v24, 16  ;;  %v2245_v46 = vshrl.u32 %v4405_v23, 16 }
  0x7e   : > { %v2151_v12 = vrot.slane %v4881_v10, 4  ;;  %3298 = vmatprep.mubr.msk.bf16.mxu1 %vm319_vm1, %v2952_v15  ;;  %v3092_v44 = vcombine.low %v2100_v53, %v2110_v25  ;;  %v2124_v14 = vsel %vm3917_vm4, %v2119_v48, %v2123_v40  ;;  %v2129_v2 = vrot.slane %v2128_v61, 4  ;;  %v4535_v25 = vld [vmem:[%s3777_s11 + $0x5c] sm:$0x1] }
  0x7f   : > { %v2989_v1 = vcombine.low %v3859_v52, %v3867_v57  ;;  %v2143_v30 = vrot.slane %v2142_v59, 4  ;;  %v2157_v50 = vrot.slane %v2155_v43, 5  ;;  %v4882_v38 = vshrl.u32 %v4343_v60, 16  ;;  %v4885_v43 = vld [vmem:[#allocation5_spill] sm:$0xff] }
  0x80   : > { %v2152_v15 = vor.u32 %v2151_v12, %v2147_v17  ;;  %v2134_v35 = vsel %vm3917_vm4, %v2129_v2, %v2133_v13  ;;  %v4883_v53 = vshll.u32 %v4343_v60, 16  ;;  %v2169_v40 = vshll.u32 %v4346_v63, 16 }
  0x81   : > { %v2162_v42 = vrot.slane %v4882_v38, 4  ;;  %v3093_v8 = vcombine.low %v2124_v14, %v2134_v35  ;;  %v2148_v52 = vsel %vm3917_vm4, %v2143_v30, %v2147_v17  ;;  %v4884_v48 = vshrl.u32 %v4346_v63, 16  ;;  %3377 = vmatmul.mubr.msk.bf16.vlgmr.msra.gmra.mrb[0].mxu0 %vm319_vm1, %v3092_v44 }
  0x82   : > { %v2165_v31 = vrot.slane %v4883_v53, 5  ;;  %v2153_v57 = vrot.slane %v2152_v15, 4  ;;  %v2171_v10 = vrot.slane %v2169_v40, 5  ;;  %v2179_v12 = vshll.u32 %v4519_v56, 16  ;;  %3393 = vmatpush3.bf16.msra.mxu0 %v4885_v43  ;;  %v4559_v53 = vld [vmem:[%s3777_s11 + $0x68] sm:$0x1] }
  0x83   : > { %v2175_v61 = vrot.slane %v4884_v48, 4  ;;  %v2186_v59 = vrot.slane %v2184_v9, 4  ;;  %3380 = vmatprep.mubr.msk.bf16.mxu0 %vm319_vm1, %v3093_v8  ;;  %v2189_v44 = vrot.slane %v2187_v5, 5  ;;  %v2193_v14 = vshll.u32 %v4364_v36, 16  ;;  %v3631_v9 = vld [vmem:[%s3777_s11 + $0x18] sm:$0xf] }
  0x84   : > { %v2166_v13 = vor.u32 %v2165_v31, %v2162_v42  ;;  %v2158_v17 = vsel %vm3917_vm4, %v2153_v57, %v2157_v50  ;;  %v2199_v2 = vrot.slane %v2197_v0, 4  ;;  %v2990_v30 = vcombine.low %v3631_v9, %v3894_v21 }
  0x85   : > { %3299 = vmatmul.mubr.msk.bf16.gmra.mrb[12].mxu1 %vm319_vm1, %v2953_v26  ;;  %v2176_v35 = vor.u32 %v2175_v61, %v2171_v10  ;;  %v2181_v38 = vrot.slane %v2179_v12, 5  ;;  %v2991_v5 = vcombine.low %v3932_v22, %v3940_v49  ;;  %v2190_v50 = vor.u32 %v2189_v44, %v2186_v59 }
  0x86   : > { %v2167_v15 = vrot.slane %v2166_v13, 4  ;;  %3304 = vmatprep.mubr.msk.bf16.mxu1 %vm319_vm1, %v2989_v1  ;;  %v2195_v42 = vrot.slane %v2193_v14, 5  ;;  %v2203_v0 = vshll.u32 %v4535_v25, 16  ;;  %v3094_v4 = vcombine.low %v2148_v52, %v2158_v17  ;;  %v4576_v17 = vld [vmem:[%s3777_s11 + $0x74] sm:$0x1] }
  0x87   : > { %v2177_v21 = vrot.slane %v2176_v35, 4  ;;  %v4886_v26 = vshrl.u32 %v4386_v33, 16  ;;  %v2191_v40 = vrot.slane %v2190_v50, 4  ;;  %v4887_v22 = vshll.u32 %v4386_v33, 16 }
  0x88   : > { %v2172_v11 = vsel %vm3917_vm4, %v2167_v15, %v2171_v10  ;;  %v2200_v1 = vor.u32 %v2199_v2, %v2195_v42  ;;  %v2205_v8 = vrot.slane %v2203_v0, 5  ;;  %v2217_v48 = vshll.u32 %v4389_v34, 16 }
  0x89   : > { %v2210_v31 = vrot.slane %v4886_v26, 4  ;;  %v2213_v49 = vrot.slane %v4887_v22, 5  ;;  %v2182_v57 = vsel %vm3917_vm4, %v2177_v21, %v2181_v38  ;;  %v4888_v52 = vshrl.u32 %v4389_v34, 16  ;;  %3381 = vmatmul.mubr.msk.bf16.gmra.mrb[4].mxu0 %vm319_vm1, %v3094_v4  ;;  %v4890_v4 = vld [vmem:[#allocation3_spill] sm:$0xff]  ;;  %v4891_v21 = vld [vmem:[#allocation6_spill] sm:$0xff] }
  0x8a   : > { %v2227_v13 = vshll.u32 %v4559_v53, 16  ;;  %v2992_v10 = vcombine.low %v3950_v29, %v3958_v58  ;;  %v3095_v12 = vcombine.low %v2172_v11, %v2182_v57  ;;  %v2201_v59 = vrot.slane %v2200_v1, 4 }
  0x8b   : > { %v2223_v61 = vrot.slane %v4888_v52, 4  ;;  %v2214_v43 = vor.u32 %v2213_v49, %v2210_v31  ;;  %v2196_v44 = vsel %vm3917_vm4, %v2191_v40, %v2195_v42  ;;  %v2219_v14 = vrot.slane %v2217_v48, 5  ;;  %v4892_v31 = vld [vmem:[#allocation8_spill] sm:$0xff] }
  0x8c   : > { %v2234_v2 = vrot.slane %v2232_v18, 4  ;;  %v4889_v9 = vshll.u32 %v4397_v32, 16  ;;  %3384 = vmatprep.mubr.msk.bf16.mxu0 %vm319_vm1, %v3095_v12  ;;  %v2206_v29 = vsel %vm3917_vm4, %v2201_v59, %v2205_v8  ;;  %v2241_v35 = vshll.u32 %v4405_v23, 16 }
  0x8d   : > { %v2215_v58 = vrot.slane %v2214_v43, 4  ;;  %v2247_v38 = vrot.slane %v2245_v46, 4  ;;  %3305 = vmatmul.mubr.msk.bf16.vlgmr.msra.gmra.mrb[0].mxu1 %vm319_vm1, %v2990_v30  ;;  %v2224_v50 = vor.u32 %v2223_v61, %v2219_v14  ;;  %v2229_v42 = vrot.slane %v2227_v13, 5 }
  0x8e   : > { %v2237_v15 = vrot.slane %v4889_v9, 5  ;;  %v2251_v18 = vshll.u32 %v4576_v17, 16  ;;  %3308 = vmatprep.mubr.msk.bf16.mxu1 %vm319_vm1, %v2991_v5  ;;  %3411 = vmatpush3.bf16.msra.mxu1 %v4890_v4  ;;  %v3096_v11 = vcombine.low %v2196_v44, %v2206_v29  ;;  %v2993_v26 = vcombine.low %v4891_v21, %v4096_v6  ;;  %v4893_v29 = vld [vmem:[#allocation12_spill] sm:$0xff] }
  0x8f   : > { %v2994_v40 = vcombine.low %v4892_v31, %v4135_v27  ;;  %v2243_v1 = vrot.slane %v2241_v35, 5  ;;  %v2220_v46 = vsel %vm3917_vm4, %v2215_v58, %v2219_v14  ;;  %v2225_v30 = vrot.slane %v2224_v50, 4  ;;  %v4894_v58 = vld [vmem:[#allocation11_spill] sm:$0xff] }
  0x90   : > { %v2238_v0 = vor.u32 %v2237_v15, %v2234_v2  ;;  %v3107_v22 = vrot.slane %v4243_v20, 9  ;;  %v2253_v57 = vrot.slane %v2251_v18, 5  ;;  %v2431_v5 = vrot.slane %v4246_v54, 5 }
  0x91   : > { %v2248_v49 = vor.u32 %v2247_v38, %v2243_v1  ;;  %v2434_v48 = vrot.slane %v4436_v47, 5  ;;  %v2230_v52 = vsel %vm3917_vm4, %v2225_v30, %v2229_v42  ;;  %v3108_v13 = vrot.slane %v4262_v45, 9  ;;  %3385 = vmatmul.mubr.msk.bf16.gmra.mrb[8].mxu0 %vm319_vm1, %v3096_v11  ;;  %v4898_v30 = vld [vmem:[#allocation17_spill] sm:$0xff] }
  0x92   : > { %v2239_v8 = vrot.slane %v2238_v0, 4  ;;  %v2438_v12 = vrot.slane %v4273_v37, 5  ;;  %v3097_v59 = vcombine.low %v2220_v46, %v2230_v52  ;;  %v2433_v44 = vrot.slane %v2431_v5, 4 }
  0x93   : > { %v2249_v43 = vrot.slane %v2248_v49, 4  ;;  %v2441_v20 = vrot.slane %v4459_v3, 5  ;;  %v2432_v54 = vsel %vm4013_vm7, %v3107_v22, %v2431_v5  ;;  %v1362_v14 = vshrl.u32 %v4891_v21, 16 }
  0x94   : > { %v2244_v61 = vsel %vm3917_vm4, %v2239_v8, %v2243_v1  ;;  %v2440_v47 = vrot.slane %v2438_v12, 4  ;;  %v1365_v2 = vshll.u32 %v4891_v21, 16  ;;  %3388 = vmatprep.mubr.msk.bf16.mxu0 %vm319_vm1, %v3097_v59  ;;  %v2435_v37 = vsel %vm4013_vm7, %v2433_v44, %v2434_v48  ;;  %v4897_v1 = vld [vmem:[#allocation10_spill] sm:$0xff] }
  0x95   : > { %v2254_v45 = vsel %vm3917_vm4, %v2249_v43, %v2253_v57  ;;  %v1371_v3 = vshll.u32 %v4096_v6, 16  ;;  %v1375_v9 = vshrl.u32 %v4096_v6, 16  ;;  %3309 = vmatmul.mubr.msk.bf16.gmra.mrb[4].mxu1 %vm319_vm1, %v2992_v10  ;;  %v2995_v35 = vcombine.low %v4894_v58, %v4893_v29  ;;  %v4895_v6 = vld [vmem:[#allocation7_spill] sm:$0xff]  ;;  %v4896_v10 = vld [vmem:[#allocation9_spill] sm:$0xff]  ;;  %v4899_v8 = vld [vmem:[#allocation18_spill] sm:$0xff] }
  0x96   : > { %v3098_v15 = vcombine.low %v2244_v61, %v2254_v45  ;;  %v2439_v38 = vsel %vm4013_vm7, %v3108_v13, %v2438_v12  ;;  %v1364_v50 = vrot.slane %v1362_v14, 4  ;;  %3312 = vmatprep.mubr.msk.bf16.mxu1 %vm319_vm1, %v2993_v26  ;;  %v3116_v42 = vcombine.low %v2432_v54, %v2435_v37  ;;  %v4900_v12 = vld [vmem:[#allocation15_spill] sm:$0xff]  ;;  %v4901_v59 = vld [vmem:[#allocation14_spill] sm:$0xff] }
  0x97   : > { %v1367_v0 = vrot.slane %v1365_v2, 5  ;;  %v1373_v18 = vrot.slane %v1371_v3, 5  ;;  %v1377_v4 = vrot.slane %v1375_v9, 4  ;;  %v2442_v11 = vsel %vm4013_vm7, %v2440_v47, %v2441_v20 }
  0x98   : > { %v1381_v21 = vshll.u32 %v4895_v6, 16  ;;  %v1392_v46 = vor.u32 %v4897_v1, %v4896_v10  ;;  %v1402_v22 = vor.u32 %v4899_v8, %v4898_v30  ;;  %v3109_v5 = vrot.slane %v4284_v55, 9 }
  0x99   : > { %v1368_v49 = vor.u32 %v1367_v0, %v1364_v50  ;;  %v1378_v57 = vor.u32 %v1377_v4, %v1373_v18  ;;  %v2445_v26 = vrot.slane %v4288_v51, 5  ;;  %v2448_v13 = vrot.slane %v4482_v16, 5  ;;  %3389 = vmatmul.mubr.msk.bf16.gmra.mrb[12].mxu0 %vm319_vm1, %v3098_v15 }
  0x9a   : > { %v1383_v48 = vrot.slane %v1381_v21, 5  ;;  %v1393_v52 = vrot.slane %v1392_v46, 4  ;;  %v1403_v61 = vrot.slane %v1402_v22, 4  ;;  %v2996_v43 = vcombine.low %v4901_v59, %v4900_v12  ;;  %3394 = vmatprep.mubr.msk.bf16.mxu0 %vm319_vm1, %v3116_v42 }
  0x9b   : > { %v1369_v44 = vrot.slane %v1368_v49, 4  ;;  %v1379_v20 = vrot.slane %v1378_v57, 4  ;;  %v2447_v54 = vrot.slane %v2445_v26, 4  ;;  %v3117_v47 = vcombine.low %v2439_v38, %v2442_v11 }
  0x9c   : > { %v1398_v55 = vsel %vm3917_vm4, %v1393_v52, %v4898_v30  ;;  %v1408_v51 = vsel %vm3917_vm4, %v1403_v61, %v4277_v41  ;;  %v2452_v14 = vrot.slane %v4320_v28, 5  ;;  %v3110_v37 = vrot.slane %v4317_v39, 9 }
  0x9d   : > { %v1374_v16 = vsel %vm3917_vm4, %v1369_v44, %v1373_v18  ;;  %v1384_v2 = vsel %vm3917_vm4, %v1379_v20, %v1383_v48  ;;  %v4654_v45 = vcombine.low %v1398_v55, %v1408_v51  ;;  %3313 = vmatmul.mubr.msk.bf16.gmra.mrb[8].mxu1 %vm319_vm1, %v2994_v40  ;;  %v2446_v41 = vsel %vm4013_vm7, %v3109_v5, %v2445_v26  ;;  %v4902_v40 = vld [vmem:[#allocation13_spill] sm:$0xff]  ;;  %v4903_v48 = vld [vmem:[#allocation16_spill] sm:$0xff] }
  0x9e   : > { %v2449_v28 = vsel %vm4013_vm7, %v2447_v54, %v2448_v13  ;;  %v2454_v3 = vrot.slane %v2452_v14, 4  ;;  %v2455_v9 = vrot.slane %v4498_v24, 5  ;;  %3316 = vmatprep.mubr.msk.bf16.mxu1 %vm319_vm1, %v2995_v35  ;;  %v1410_v15 = vshrl.u32 %v4894_v58, 16 }
  0x9f   : > { %v1413_v39 = vshll.u32 %v4894_v58, 16  ;;  %v1419_v38 = vshll.u32 %v4893_v29, 16  ;;  %v1423_v27 = vshrl.u32 %v4893_v29, 16  ;;  %v3010_v31 = vcombine.low %v1374_v16, %v1384_v2 }
  0xa0   : > { %v1429_v50 = vshll.u32 %v4902_v40, 16  ;;  %v1434_v42 = vshrl.u32 %v4901_v59, 16  ;;  %v1437_v0 = vshll.u32 %v4901_v59, 16  ;;  %v3118_v18 = vcombine.low %v2446_v41, %v2449_v28 }
  0xa1   : > { %v1412_v4 = vrot.slane %v1410_v15, 4  ;;  %v1415_v24 = vrot.slane %v1413_v39, 5  ;;  %v1421_v11 = vrot.slane %v1419_v38, 5  ;;  %v2453_v35 = vsel %vm4013_vm7, %v3110_v37, %v2452_v14  ;;  %3395 = vmatmul.mubr.msk.bf16.vlgmr.msra.gmra.mrb[0].mxu0 %vm319_vm1, %v3117_v47 }
  0xa2   : > { %v2456_v58 = vsel %vm4013_vm7, %v2454_v3, %v2455_v9  ;;  %v1425_v6 = vrot.slane %v1423_v27, 4  ;;  %v1436_v21 = vrot.slane %v1434_v42, 4  ;;  %v1439_v10 = vrot.slane %v1437_v0, 5  ;;  %3398 = vmatprep.mubr.msk.bf16.mxu0 %vm319_vm1, %v3118_v18 }
  0xa3   : > { %v1416_v29 = vor.u32 %v1415_v24, %v1412_v4  ;;  %v1443_v1 = vshll.u32 %v4900_v12, 16  ;;  %v1447_v46 = vshrl.u32 %v4900_v12, 16  ;;  %v1431_v8 = vrot.slane %v1429_v50, 5 }
  0xa4   : > { %v1426_v30 = vor.u32 %v1425_v6, %v1421_v11  ;;  %v3111_v22 = vrot.slane %v4343_v60, 9  ;;  %v2459_v49 = vrot.slane %v4346_v63, 5  ;;  %v1453_v52 = vshll.u32 %v4903_v48, 16 }
  0xa5   : > { %v1417_v57 = vrot.slane %v1416_v29, 4  ;;  %v1445_v5 = vrot.slane %v1443_v1, 5  ;;  %v1449_v26 = vrot.slane %v1447_v46, 4  ;;  %3317 = vmatmul.mubr.msk.bf16.gmra.mrb[12].mxu1 %vm319_vm1, %v2996_v43  ;;  %v1440_v12 = vor.u32 %v1439_v10, %v1436_v21 }
  0xa6   : > { %v1427_v61 = vrot.slane %v1426_v30, 4  ;;  %v2461_v13 = vrot.slane %v2459_v49, 4  ;;  %3330 = vmatprep.mubr.msk.bf16.mxu1 %vm319_vm1, %v3010_v31  ;;  %v2460_v60 = vsel %vm4013_vm7, %v3111_v22, %v2459_v49  ;;  %v2462_v63 = vrot.slane %v4519_v56, 5 }
  0xa7   : > { %v1450_v59 = vor.u32 %v1449_v26, %v1445_v5  ;;  %v3119_v44 = vcombine.low %v2453_v35, %v2456_v58  ;;  %v1422_v20 = vsel %vm3917_vm4, %v1417_v57, %v1421_v11  ;;  %v2466_v43 = vrot.slane %v4364_v36, 5 }
  0xa8   : > { %v1432_v54 = vsel %vm3917_vm4, %v1427_v61, %v1431_v8  ;;  %v1455_v47 = vrot.slane %v1453_v52, 5  ;;  %v2463_v55 = vsel %vm4013_vm7, %v2461_v13, %v2462_v63  ;;  %v3112_v51 = vrot.slane %v4354_v62, 9 }
  0xa9   : > { %v2469_v14 = vrot.slane %v4535_v25, 5  ;;  %v3120_v16 = vcombine.low %v2460_v60, %v2463_v55  ;;  %v2468_v2 = vrot.slane %v2466_v43, 4  ;;  %v3113_v56 = vrot.slane %v4386_v33, 9  ;;  %3399 = vmatmul.mubr.msk.bf16.gmra.mrb[4].mxu0 %vm319_vm1, %v3119_v44 }
  0xaa   : > { %v2473_v37 = vrot.slane %v4389_v34, 5  ;;  %v3012_v41 = vcombine.low %v1422_v20, %v1432_v54  ;;  %v1441_v28 = vrot.slane %v1440_v12, 4  ;;  %v1451_v3 = vrot.slane %v1450_v59, 4 }
  0xab   : > { %v2476_v9 = vrot.slane %v4559_v53, 5  ;;  %3402 = vmatprep.mubr.msk.bf16.mxu0 %vm319_vm1, %v3120_v16  ;;  %v2467_v62 = vsel %vm4013_vm7, %v3112_v51, %v2466_v43  ;;  %v2470_v25 = vsel %vm4013_vm7, %v2468_v2, %v2469_v14  ;;  %v2480_v33 = vrot.slane %v4405_v23, 5 }
  0xac   : > { %v2475_v36 = vrot.slane %v2473_v37, 4  ;;  %v2474_v34 = vsel %vm4013_vm7, %v3113_v56, %v2473_v37  ;;  %v1446_v15 = vsel %vm3917_vm4, %v1441_v28, %v1445_v5  ;;  %v1456_v39 = vsel %vm3917_vm4, %v1451_v3, %v1455_v47 }
  0xad   : > { %3331 = vmatmul.mubr.msk.bf16.vlgmr.msra.gmra.mrb[8].mxu1 %vm319_vm1, %v4654_v45  ;;  %v3121_v38 = vcombine.low %v2467_v62, %v2470_v25  ;;  %v3114_v23 = vrot.slane %v4397_v32, 9  ;;  %v2482_v45 = vrot.slane %v2480_v33, 4  ;;  %v2483_v31 = vrot.slane %v4576_v17, 5 }
  0xae   : > { %v2477_v53 = vsel %vm4013_vm7, %v2475_v36, %v2476_v9  ;;  %3334 = vmatprep.mubr.msk.bf16.mxu1 %vm319_vm1, %v3012_v41  ;;  %v3013_v40 = vcombine.low %v1446_v15, %v1456_v39 }
  0xaf   : > { %v3122_v27 = vcombine.low %v2474_v34, %v2477_v53  ;;  %v2481_v50 = vsel %vm4013_vm7, %v3114_v23, %v2480_v33  ;;  %v2484_v19 = vsel %vm4013_vm7, %v2482_v45, %v2483_v31 }
  0xb0   : > { %v3123_v42 = vcombine.low %v2481_v50, %v2484_v19 }
  0xb1   : > { %3403 = vmatmul.mubr.msk.bf16.gmra.mrb[8].mxu0 %vm319_vm1, %v3121_v38 }
  0xb2   : > { %3406 = vmatprep.mubr.msk.bf16.mxu0 %vm319_vm1, %v3122_v27 }
  0xb5   : > { %3335 = vmatmul.mubr.msk.bf16.gmra.mrb[12].mxu1 %vm319_vm1, %v3013_v40 }
  0xb9   : > { %3407 = vmatmul.mubr.msk.bf16.gmra.mrb[12].mxu0 %vm319_vm1, %v3123_v42 }
 0x160   : > { %v3306_v32 = vpop.f32.mrb[0].mxu1 }
 0x161   : > { %v1186_v0 = vpop.f32.mrb[1].mxu1  ;;  %v3412_v58 = vadd.f32 %v3306_v32, %v4735_v7 }
 0x162   : > { %v3307_v17 = vpop.f32.mrb[2].mxu1  ;;  %v3414_v6 = vadd.f32 %v4735_v7, %v1186_v0 }
 0x163   : > { %v1189_v18 = vpop.f32.mrb[3].mxu1  ;;  %v3416_v29 = vadd.f32 %v3307_v17, %v4735_v7 }
 0x164   : > { %v3418_v46 = vadd.f32 %v4735_v7, %v1189_v18 }
 0x168   : > { %v3310_v4 = vpop.f32.mrb[4].mxu1 }
 0x169   : > { %v1202_v24 = vpop.f32.mrb[5].mxu1  ;;  %v3420_v12 = vadd.f32 %v3310_v4, %v4735_v7 }
 0x16a   : > { %v3311_v11 = vpop.f32.mrb[6].mxu1  ;;  %v3422_v60 = vadd.f32 %v4735_v7, %v1202_v24 }
 0x16b   : > { %v1205_v35 = vpop.f32.mrb[7].mxu1  ;;  %v3424_v20 = vadd.f32 %v3311_v11, %v4735_v7 }
 0x16c   : > { %v3426_v47 = vadd.f32 %v4735_v7, %v1205_v35 }
 0x174   : > { %v3396_v21 = vpop.f32.mrb[0].mxu0 }
 0x175   : > { %v3413_v10 = vadd.f32 %v3412_v58, %v3396_v21  ;;  %v2572_v1 = vpop.f32.mrb[1].mxu0 }
 0x176   : > { %v3415_v30 = vadd.f32 %v3414_v6, %v2572_v1  ;;  %v3397_v8 = vpop.f32.mrb[2].mxu0 }
 0x177   : > { %v2653_v22 = vmax.f32 %v3413_v10, 0.0  ;;  %v3417_v49 = vadd.f32 %v3416_v29, %v3397_v8  ;;  %v2575_v57 = vpop.f32.mrb[3].mxu0 }
 0x178   : > { %v2651_v5 = vmax.f32 %v3415_v30, 0.0  ;;  %v3419_v26 = vadd.f32 %v3418_v46, %v2575_v57 }
 0x179   : > { %v3153_v48 = vpack.c.bf16 %v2653_v22, %v2653_v22  ;;  %v2654_v52 = vmax.f32 %v3417_v49, 0.0 }
 0x17a   : > { %v3151_v61 = vpack.c.bf16 %v2651_v5, %v2651_v5  ;;  %v2652_v13 = vmax.f32 %v3419_v26, 0.0 }
 0x17b   : > { %2734 = vst.msk [vmem:[%s4744_s30 + $0x8] sm:$0xf] %vm2731_vm8, %v3153_v48  ;;  %v3154_v59 = vpack.c.bf16 %v2654_v52, %v2654_v52 }
 0x17c   : > { %2732 = vst.msk [vmem:[%s4744_s30] sm:$0xf] %vm2731_vm8, %v3151_v61  ;;  %v3152_v63 = vpack.c.bf16 %v2652_v13, %v2652_v13  ;;  %v3400_v44 = vpop.f32.mrb[4].mxu0 }
 0x17d   : > { %2735 = vst.msk [vmem:[%s4744_s30 + $0xc] sm:$0xf] %vm2731_vm8, %v3154_v59  ;;  %v3421_v54 = vadd.f32 %v3420_v12, %v3400_v44  ;;  %v2588_v43 = vpop.f32.mrb[5].mxu0 }
 0x17e   : > { %2733 = vst.msk [vmem:[%s4744_s30 + $0x4] sm:$0xf] %vm2731_vm8, %v3152_v63  ;;  %v3423_v51 = vadd.f32 %v3422_v60, %v2588_v43  ;;  %v3401_v14 = vpop.f32.mrb[6].mxu0 }
 0x17f   : > { %v2657_v2 = vmax.f32 %v3421_v54, 0.0  ;;  %v3425_v56 = vadd.f32 %v3424_v20, %v3401_v14  ;;  %v2591_v37 = vpop.f32.mrb[7].mxu0 }
 0x180   : > { %v3332_v55 = vpop.f32.mrb[8].mxu1  ;;  %v2655_v28 = vmax.f32 %v3423_v51, 0.0  ;;  %v3427_v3 = vadd.f32 %v3426_v47, %v2591_v37 }
 0x181   : > { %v1576_v16 = vpop.f32.mrb[9].mxu1  ;;  %v3157_v9 = vpack.c.bf16 %v2657_v2, %v2657_v2  ;;  %v2658_v62 = vmax.f32 %v3425_v56, 0.0  ;;  %v3428_v34 = vadd.f32 %v3332_v55, %v4735_v7 }
 0x182   : > { %v3333_v41 = vpop.f32.mrb[10].mxu1  ;;  %v3155_v25 = vpack.c.bf16 %v2655_v28, %v2655_v28  ;;  %v2656_v33 = vmax.f32 %v3427_v3, 0.0  ;;  %v3430_v15 = vadd.f32 %v4735_v7, %v1576_v16 }
 0x183   : > { %v1579_v36 = vpop.f32.mrb[11].mxu1  ;;  %2738 = vst.msk [vmem:[%s4744_s30 + $0x18] sm:$0xf] %vm2731_vm8, %v3157_v9  ;;  %v3158_v53 = vpack.c.bf16 %v2658_v62, %v2658_v62  ;;  %v3432_v27 = vadd.f32 %v3333_v41, %v4735_v7 }
 0x184   : > { %2736 = vst.msk [vmem:[%s4744_s30 + $0x10] sm:$0xf] %vm2731_vm8, %v3155_v25  ;;  %v3156_v39 = vpack.c.bf16 %v2656_v33, %v2656_v33  ;;  %v3404_v38 = vpop.f32.mrb[8].mxu0  ;;  %v3434_v31 = vadd.f32 %v4735_v7, %v1579_v36 }
 0x185   : > { %2739 = vst.msk [vmem:[%s4744_s30 + $0x1c] sm:$0xf] %vm2731_vm8, %v3158_v53  ;;  %v3429_v23 = vadd.f32 %v3428_v34, %v3404_v38  ;;  %v2604_v45 = vpop.f32.mrb[9].mxu0 }
 0x186   : > { %2737 = vst.msk [vmem:[%s4744_s30 + $0x14] sm:$0xf] %vm2731_vm8, %v3156_v39  ;;  %v3431_v50 = vadd.f32 %v3430_v15, %v2604_v45  ;;  %v3405_v19 = vpop.f32.mrb[10].mxu0 }
 0x187   : > { %v2661_v32 = vmax.f32 %v3429_v23, 0.0  ;;  %v3433_v0 = vadd.f32 %v3432_v27, %v3405_v19  ;;  %v2607_v17 = vpop.f32.mrb[11].mxu0 }
 0x188   : > { %v3336_v40 = vpop.f32.mrb[12].mxu1  ;;  %v2659_v4 = vmax.f32 %v3431_v50, 0.0  ;;  %v3435_v24 = vadd.f32 %v3434_v31, %v2607_v17 }
 0x189   : > { %v1592_v42 = vpop.f32.mrb[13].mxu1  ;;  %v3161_v11 = vpack.c.bf16 %v2661_v32, %v2661_v32  ;;  %v2662_v58 = vmax.f32 %v3433_v0, 0.0  ;;  %v3436_v29 = vadd.f32 %v3336_v40, %v4735_v7 }
 0x18a   : > { %v3337_v18 = vpop.f32.mrb[14].mxu1  ;;  %v3159_v6 = vpack.c.bf16 %v2659_v4, %v2659_v4  ;;  %v2660_v21 = vmax.f32 %v3435_v24, 0.0  ;;  %v3438_v1 = vadd.f32 %v4735_v7, %v1592_v42 }
 0x18b   : > { %v1595_v35 = vpop.f32.mrb[15].mxu1  ;;  %2742 = vst.msk [vmem:[%s4744_s30 + $0x28] sm:$0xf] %vm2731_vm8, %v3161_v11  ;;  %v3162_v10 = vpack.c.bf16 %v2662_v58, %v2662_v58  ;;  %v3440_v8 = vadd.f32 %v3337_v18, %v4735_v7 }
 0x18c   : > { %2740 = vst.msk [vmem:[%s4744_s30 + $0x20] sm:$0xf] %vm2731_vm8, %v3159_v6  ;;  %v3160_v46 = vpack.c.bf16 %v2660_v21, %v2660_v21  ;;  %v3408_v30 = vpop.f32.mrb[12].mxu0  ;;  %v3442_v57 = vadd.f32 %v4735_v7, %v1595_v35 }
 0x18d   : > { %2743 = vst.msk [vmem:[%s4744_s30 + $0x2c] sm:$0xf] %vm2731_vm8, %v3162_v10  ;;  %v3437_v22 = vadd.f32 %v3436_v29, %v3408_v30  ;;  %v2620_v49 = vpop.f32.mrb[13].mxu0 }
 0x18e   : > { %2741 = vst.msk [vmem:[%s4744_s30 + $0x24] sm:$0xf] %vm2731_vm8, %v3160_v46  ;;  %v3439_v5 = vadd.f32 %v3438_v1, %v2620_v49  ;;  %v3409_v26 = vpop.f32.mrb[14].mxu0 }
 0x18f   : > { %v2665_v48 = vmax.f32 %v3437_v22, 0.0  ;;  %v3441_v52 = vadd.f32 %v3440_v8, %v3409_v26  ;;  %v2623_v61 = vpop.f32.mrb[15].mxu0 }
 0x190   : > { %v2663_v13 = vmax.f32 %v3439_v5, 0.0  ;;  %v3443_v12 = vadd.f32 %v3442_v57, %v2623_v61 }
 0x191   : > { %v3165_v59 = vpack.c.bf16 %v2665_v48, %v2665_v48  ;;  %v2666_v60 = vmax.f32 %v3441_v52, 0.0 }
 0x192   : > { %v3163_v63 = vpack.c.bf16 %v2663_v13, %v2663_v13  ;;  %v2664_v44 = vmax.f32 %v3443_v12, 0.0 }
 0x193   : > { %2746 = vst.msk [vmem:[%s4744_s30 + $0x38] sm:$0xf] %vm2731_vm8, %v3165_v59  ;;  %v3166_v20 = vpack.c.bf16 %v2666_v60, %v2666_v60 }
 0x194   : > { %2744 = vst.msk [vmem:[%s4744_s30 + $0x30] sm:$0xf] %vm2731_vm8, %v3163_v63  ;;  %v3164_v7 = vpack.c.bf16 %v2664_v44, %v2664_v44 }
 0x195   : > { %2747 = vst.msk [vmem:[%s4744_s30 + $0x3c] sm:$0xf] %vm2731_vm8, %v3166_v20 }
 0x196   : > { %2745 = vst.msk [vmem:[%s4744_s30 + $0x34] sm:$0xf] %vm2731_vm8, %v3164_v7 }
 0x197 PF: > { %s13_s16 = sadd.s32 1, %s3670_s16   ;;  %s4904_s12 = smov %s3662_s14 }
 0x198   : > { %p10_p7 = scmp.ge.s32.totalorder %s13_s16, 6   ;;  %s4905_s13 = smov %s3666_s15 }
 0x199   : > { %s4906_s14 = smov %s4909_s17  ;;  %s4907_s15 = smov %s4913_s18 }
 0x19a   :  { %12 = sbr.rel (!%p10_p7) target bundleno = 3 (0x3), region = 79 }

</bundles_post_ra>
